<compile_context>
chip_gen: v6e
topology: v6e:2x2x1
jax: 0.10.0
libtpu: 0.0.40
codegen_flags: <defaults>
</compile_context>

<pallas_src>
import jax
import jax.numpy as jnp
from jax.experimental import pallas as pl
from jax.experimental.pallas import tpu as pltpu

EPS = 1e-6


def ln_linear_kernel(x_ref, gamma_ref, beta_ref, w_ref, b_ref, o_ref):
    # x_ref:     (Rp, Cin)   rows to normalize (resident across the Cout grid)
    # gamma_ref: (1, Cin)    LayerNorm weight (f32)
    # beta_ref:  (1, Cin)    LayerNorm bias   (f32)
    # w_ref:     (Cin, TN)   Linear weight tile, pre-transposed, bf16
    # b_ref:     (1, TN)     Linear bias tile (f32)
    # o_ref:     (Rp, TN)    output tile
    x = x_ref[...].astype(jnp.float32)

    # LayerNorm over the channel dim (biased variance, eps inside rsqrt).
    # Recomputed per Cout tile: it is tiny (Rp x Cin VPU work) and keeping it
    # local makes the Cout axis safely "parallel" on v7x megacore.
    mean = jnp.mean(x, axis=-1, keepdims=True)
    centered = x - mean
    var = jnp.mean(centered * centered, axis=-1, keepdims=True)
    xn = centered * jax.lax.rsqrt(var + EPS)
    y = xn * gamma_ref[...] + beta_ref[...]

    # Linear tile: bf16 operands into the MXU, f32 accumulate, f32 bias add.
    out = jnp.dot(
        y.astype(jnp.bfloat16), w_ref[...], preferred_element_type=jnp.float32
    )
    out = out + b_ref[...]
    o_ref[...] = out.astype(o_ref.dtype)


def prepare_weights(w):
    """Hoistable one-time prep: transpose PyTorch-style (Cout, Cin) weight to
    (Cin, Cout) and cast to bf16 so the per-call path never re-transposes it."""
    return jnp.asarray(w.T, dtype=jnp.bfloat16)


def layernorm_linear(x, gamma, beta, wT_bf16, b, *, tn=512):
    """x: (N, H, W, Cin). wT_bf16: (Cin, Cout) bf16 (from prepare_weights).
    Returns (N, H, W, Cout)."""
    N, H, W, Cin = x.shape
    Cout = wT_bf16.shape[1]
    rows = N * H * W

    # Sublane-align the row dim (8-row tiles) so loads/stores and the MXU M
    # dimension are unmasked. Padded rows are garbage but sliced off below.
    rows_pad = pl.cdiv(rows, 8) * 8

    x2 = x.reshape(rows, Cin)
    if rows_pad != rows:
        x2 = jnp.pad(x2, ((0, rows_pad - rows), (0, 0)))

    gamma2 = gamma.reshape(1, Cin).astype(jnp.float32)
    beta2 = beta.reshape(1, Cin).astype(jnp.float32)
    b2 = b.reshape(1, Cout).astype(jnp.float32)

    if Cout % tn != 0:
        tn = Cout  # fall back to a single tile for odd sizes
    n_tiles = Cout // tn

    out = pl.pallas_call(
        ln_linear_kernel,
        out_shape=jax.ShapeDtypeStruct((rows_pad, Cout), x.dtype),
        grid_spec=pltpu.PrefetchScalarGridSpec(
            num_scalar_prefetch=0,
            grid=(n_tiles,),
            in_specs=[
                # activations / LN params stay resident across the Cout axis
                pl.BlockSpec((rows_pad, Cin), lambda j: (0, 0)),
                pl.BlockSpec((1, Cin), lambda j: (0, 0)),
                pl.BlockSpec((1, Cin), lambda j: (0, 0)),
                # weight / bias / output tiled along Cout -> pipelined DMA
                pl.BlockSpec((Cin, tn), lambda j: (0, j)),
                pl.BlockSpec((1, tn), lambda j: (0, j)),
            ],
            out_specs=pl.BlockSpec((rows_pad, tn), lambda j: (0, j)),
        ),
        compiler_params=pltpu.CompilerParams(
            # Cout tiles are independent -> lets v7x split them across its
            # two TensorCores; no-op on v5e/v6e.
            dimension_semantics=("parallel",),
        ),
    )(x2, gamma2, beta2, wT_bf16, b2)

    return out[:rows].reshape(N, H, W, Cout)


def reference_f32(x, gamma, beta, w, b):
    xf = x.astype(jnp.float32)
    mean = jnp.mean(xf, axis=-1, keepdims=True)
    var = jnp.mean((xf - mean) ** 2, axis=-1, keepdims=True)
    xn = (xf - mean) / jnp.sqrt(var + EPS)
    y = xn * gamma + beta
    return (y @ w.T + b).astype(x.dtype)


def reference_bf16_matmul(x, gamma, beta, wT_bf16, b):
    xf = x.astype(jnp.float32)
    mean = jnp.mean(xf, axis=-1, keepdims=True)
    var = jnp.mean((xf - mean) ** 2, axis=-1, keepdims=True)
    xn = (xf - mean) / jnp.sqrt(var + EPS)
    y = (xn * gamma + beta).astype(jnp.bfloat16)
    out = jnp.dot(y, wT_bf16, preferred_element_type=jnp.float32) + b
    return out.astype(x.dtype)


if __name__ == "__main__":
    key = jax.random.PRNGKey(0)
    k_x, k_g, k_b, k_w, k_bias = jax.random.split(key, 5)

    N, H, W, Cin, Cout = 1, 14, 14, 384, 1536

    x = jax.random.normal(k_x, (N, H, W, Cin), dtype=jnp.float32)
    # Deterministic synthetic params (not a checkpoint load)
    gamma = 1.0 + 0.02 * jax.random.normal(k_g, (Cin,), dtype=jnp.float32)
    beta = 0.02 * jax.random.normal(k_b, (Cin,), dtype=jnp.float32)
    w = 0.02 * jax.random.normal(k_w, (Cout, Cin), dtype=jnp.float32)
    b = 0.02 * jax.random.normal(k_bias, (Cout,), dtype=jnp.float32)

    # One-time weight prep (transpose + bf16 cast), hoisted out of the call.
    wT_bf16 = jax.block_until_ready(prepare_weights(w))

    out = layernorm_linear(x, gamma, beta, wT_bf16, b)
    out = jax.block_until_ready(out)
    assert out.shape == (N, H, W, Cout), out.shape

    # Tight check vs a reference that uses the same bf16 matmul operands
    # (validates the kernel structure exactly).
    ref_bf16 = reference_bf16_matmul(x, gamma, beta, wT_bf16, b)
    err_bf16 = float(jnp.max(jnp.abs(out - ref_bf16)))
    assert jnp.allclose(out, ref_bf16, atol=2e-3, rtol=2e-3), err_bf16

    # Looser check vs the pure-f32 PyTorch-equivalent reference
    # (confirms bf16 operand precision is acceptable end-to-end).
    ref_f32 = reference_f32(x, gamma, beta, w, b)
    err_f32 = float(jnp.max(jnp.abs(out - ref_f32)))
    assert jnp.allclose(out, ref_f32, atol=2e-2, rtol=2e-2), err_f32

    print("KERNEL_OK")
</pallas_src>

<mosaic_0001>
module attributes {stable_mosaic.version = 11 : i64} {
  func.func @ln_linear_kernel(%arg0: i32, %arg1: memref<200x384xf32, #tpu.memory_space<vmem>>, %arg2: memref<1x384xf32, #tpu.memory_space<vmem>>, %arg3: memref<1x384xf32, #tpu.memory_space<vmem>>, %arg4: memref<384x512xbf16, #tpu.memory_space<vmem>>, %arg5: memref<1x512xf32, #tpu.memory_space<vmem>>, %arg6: memref<200x512xf32, #tpu.memory_space<vmem>>) attributes {dimension_semantics = [#tpu.dimension_semantics<parallel>], iteration_bounds = array<i64: 3>, scalar_prefetch = 0 : i64, scratch_operands = 0 : i64, tpu.core_type = #tpu.core_type<tc>, window_params = [{pipeline_mode = #tpu.pipeline_mode<synchronous>, transform_indices = @transform_0, window_bounds = array<i64: 200, 384>}, {pipeline_mode = #tpu.pipeline_mode<synchronous>, transform_indices = @transform_1, window_bounds = array<i64: 1, 384>}, {pipeline_mode = #tpu.pipeline_mode<synchronous>, transform_indices = @transform_2, window_bounds = array<i64: 1, 384>}, {transform_indices = @transform_3, window_bounds = array<i64: 384, 512>}, {transform_indices = @transform_4, window_bounds = array<i64: 1, 512>}, {transform_indices = @transform_5, window_bounds = array<i64: 200, 512>}]} {
    %c0 = arith.constant 0 : index
    %c0_0 = arith.constant 0 : index
    %0 = vector.load %arg1[%c0, %c0_0] : memref<200x384xf32, #tpu.memory_space<vmem>>, vector<200x384xf32>
    %cst = arith.constant dense<0.000000e+00> : vector<200xf32>
    %1 = vector.multi_reduction <add>, %0, %cst [1] : vector<200x384xf32> to vector<200xf32>
    %2 = vector.shape_cast %1 : vector<200xf32> to vector<200x1xf32>
    %cst_1 = arith.constant 3.840000e+02 : f32
    %3 = vector.broadcast %cst_1 : f32 to vector<200x1xf32>
    %4 = arith.divf %2, %3 : vector<200x1xf32>
    %5 = vector.broadcast %4 : vector<200x1xf32> to vector<200x384xf32>
    %6 = arith.subf %0, %5 : vector<200x384xf32>
    %7 = arith.mulf %6, %6 : vector<200x384xf32>
    %cst_2 = arith.constant dense<0.000000e+00> : vector<200xf32>
    %8 = vector.multi_reduction <add>, %7, %cst_2 [1] : vector<200x384xf32> to vector<200xf32>
    %9 = vector.shape_cast %8 : vector<200xf32> to vector<200x1xf32>
    %cst_3 = arith.constant 3.840000e+02 : f32
    %10 = vector.broadcast %cst_3 : f32 to vector<200x1xf32>
    %11 = arith.divf %9, %10 : vector<200x1xf32>
    %cst_4 = arith.constant 9.99999997E-7 : f32
    %12 = vector.broadcast %cst_4 : f32 to vector<200x1xf32>
    %13 = arith.addf %11, %12 : vector<200x1xf32>
    %14 = math.rsqrt %13 : vector<200x1xf32>
    %15 = vector.broadcast %14 : vector<200x1xf32> to vector<200x384xf32>
    %16 = arith.mulf %6, %15 : vector<200x384xf32>
    %c0_5 = arith.constant 0 : index
    %c0_6 = arith.constant 0 : index
    %17 = vector.load %arg2[%c0_5, %c0_6] : memref<1x384xf32, #tpu.memory_space<vmem>>, vector<1x384xf32>
    %18 = vector.broadcast %17 : vector<1x384xf32> to vector<200x384xf32>
    %19 = arith.mulf %16, %18 : vector<200x384xf32>
    %c0_7 = arith.constant 0 : index
    %c0_8 = arith.constant 0 : index
    %20 = vector.load %arg3[%c0_7, %c0_8] : memref<1x384xf32, #tpu.memory_space<vmem>>, vector<1x384xf32>
    %21 = vector.broadcast %20 : vector<1x384xf32> to vector<200x384xf32>
    %22 = arith.addf %19, %21 : vector<200x384xf32>
    %23 = arith.truncf %22 : vector<200x384xf32> to vector<200x384xbf16>
    %c0_9 = arith.constant 0 : index
    %c0_10 = arith.constant 0 : index
    %24 = vector.load %arg4[%c0_9, %c0_10] : memref<384x512xbf16, #tpu.memory_space<vmem>>, vector<384x512xbf16>
    %cst_11 = arith.constant dense<0.000000e+00> : vector<200x512xf32>
    %25 = tpu.matmul %23, %24, %cst_11 {dimension_numbers = #tpu.dot_dimension_numbers<[1], [0], [0], [1], [0, 0, 1, 1], [], []>} : vector<200x384xbf16>, vector<384x512xbf16>, vector<200x512xf32> -> vector<200x512xf32>
    %c0_12 = arith.constant 0 : index
    %c0_13 = arith.constant 0 : index
    %26 = vector.load %arg5[%c0_12, %c0_13] : memref<1x512xf32, #tpu.memory_space<vmem>>, vector<1x512xf32>
    %27 = vector.broadcast %26 : vector<1x512xf32> to vector<200x512xf32>
    %28 = arith.addf %25, %27 : vector<200x512xf32>
    %c0_14 = arith.constant 0 : index
    %c0_15 = arith.constant 0 : index
    %29 = vector.load %arg6[%c0_14, %c0_15] : memref<200x512xf32, #tpu.memory_space<vmem>>, vector<200x512xf32>
    tpu.vector_store %arg6[%c0_14, %c0_15], %28 {strides = array<i32>} : memref<200x512xf32, #tpu.memory_space<vmem>>, vector<200x512xf32>,
    return
  }
  func.func @transform_0(%arg0: i32) -> (i32, i32) {
    %c0_i32 = arith.constant 0 : i32
    %c0_i32_0 = arith.constant 0 : i32
    %c0_i32_1 = arith.constant 0 : i32
    return %c0_i32, %c0_i32_0 : i32, i32
  }
  func.func @transform_1(%arg0: i32) -> (i32, i32) {
    %c0_i32 = arith.constant 0 : i32
    %c0_i32_0 = arith.constant 0 : i32
    %c0_i32_1 = arith.constant 0 : i32
    return %c0_i32, %c0_i32_0 : i32, i32
  }
  func.func @transform_2(%arg0: i32) -> (i32, i32) {
    %c0_i32 = arith.constant 0 : i32
    %c0_i32_0 = arith.constant 0 : i32
    %c0_i32_1 = arith.constant 0 : i32
    return %c0_i32, %c0_i32_0 : i32, i32
  }
  func.func @transform_3(%arg0: i32) -> (i32, i32) {
    %c0_i32 = arith.constant 0 : i32
    %c0_i32_0 = arith.constant 0 : i32
    return %c0_i32, %arg0 : i32, i32
  }
  func.func @transform_4(%arg0: i32) -> (i32, i32) {
    %c0_i32 = arith.constant 0 : i32
    %c0_i32_0 = arith.constant 0 : i32
    return %c0_i32, %arg0 : i32, i32
  }
  func.func @transform_5(%arg0: i32) -> (i32, i32) {
    %c0_i32 = arith.constant 0 : i32
    %c0_i32_0 = arith.constant 0 : i32
    return %c0_i32, %arg0 : i32, i32
  }
}

</mosaic_0001>

<bundles_post_ra>
// kernel: tpu_custom_call.1
= control target key start
LH: loop header
LB: loop body
LE: loop exit
PB: predicated region body
PF: predicated region fallthrough
CT: control target
= control target key end

     0   :  { %s4994_s0 = inlined_call_operand.hbm [shape: f32[200,384], index: 0, kind: input, shape index: {}]   ;;  %s4995_s1 = inlined_call_operand.hbm [shape: f32[1,384], index: 1, kind: input, shape index: {}]   ;;  %s4996_s2 = inlined_call_operand.hbm [shape: f32[1,384], index: 2, kind: input, shape index: {}]   ;;  %s4997_s3 = inlined_call_operand.hbm [shape: bf16[384,1536], index: 3, kind: input, shape index: {}]   ;;  %s4998_s4 = inlined_call_operand.hbm [shape: f32[1,1536], index: 4, kind: input, shape index: {}]   ;;  %s4999_s5 = inlined_call_operand.hbm [shape: f32[200,1536], index: 5, kind: output, shape index: {}]  }
   0x1   :  { %5091 = sst [smem:[#allocation62_spill]] %s4994_s0 }
   0x2   :  { %10 = vsyncpa [#allocation3], 0 }
   0x3   :  { %11 = vsyncpa [#allocation6], 0 }
   0x4   :  { %12 = vsyncpa [#allocation9], 0 }
   0x5   :  { %14 = vsyncpa [#allocation9 + $0x1], 0 }
   0x6   :  { %15 = vsyncpa [#allocation4], 0 }
   0x7   :  { %17 = vsyncpa [#allocation4 + $0x1], 0  ;;  %s3303_s18 = smov 0   ;;  %s3305_s19 = smov 0  }
   0x8   :  { %s3307_s20 = smov 0   ;;  %s3309_s21 = smov 0  }
   0x9 LB: > { %s3324_s22 = sadd.s32 4294967295, %s3256_s21   ;;  %s2626_s23 = sadd.s32 4294967294, %s3256_s21   ;;  %s3256_s21 = sphi %s3309_s21, %s5281_s21   ;;  %s3252_s20 = sphi %s3307_s20, %s5280_s20   ;;  %s3248_s19 = sphi %s3305_s19, %s5279_s19   ;;  %s3244_s18 = sphi %s3303_s18, %s5278_s18  }
   0xa   : > { %s3328_s24 = sadd.s32 1, %s3256_s21   ;;  %s93_s25 = sadd.s32 1, %s3252_s20 }
   0xb   : > { %s90_s26 = ssub.s32 %s3256_s21, %s3328_s24  ;;  %p100_p0 = scmp.ne.s32.totalorder %s3252_s20, %s3248_s19 }
   0xc   : > { %p91_p1 = scmp.eq.s32.totalorder %s90_s26, 0  ;;  %p101_p2 = scmp.eq.s32.totalorder %s3256_s21, 0 }
   0xd   : > { %p106_p3 = scmp.ne.s32.totalorder %s3248_s19, %s3244_s18  ;;  %p5000_p4 = scmp.eq.s32.totalorder %s3324_s22, 0 }
   0xe   : > { %s3340_s27 = scalar_select %p91_p1, %s3252_s20, %s93_s25  }
   0xf   : > { %p3342_p5 = por %p101_p2, %p100_p0  ;;  %p3348_p6 = por %p5000_p4, %p106_p3 }
  0x10   : > { %p156_p7 = scmp.eq.s32.totalorder %s3324_s22, 2  ;;  %p162_p8 = scmp.eq.s32.totalorder %s2626_s23, 2 }
  0x11   : > { %s5093_s29 = scalar_select %p3348_p6, 1, 0 }
  0x12   : > { %p2627_p9 = scmp.ge.s32.totalorder %s3256_s21, 1  ;;  %p169_p10 = scmp.lt.s32.totalorder %s3256_s21, 4 }
  0x13   : > { %p3355_p11 = por %p156_p7, %p100_p0  ;;  %p3359_p12 = por %p162_p8, %p106_p3 }
  0x14   : > { %p3363_p13 = pnand %p2627_p9, %p169_p10  ;;  %s3258_s8 = smov [#allocation5]  }
  0x15   : > { %s5094_s30 = scalar_select %p3355_p11, 1, 0 }
  0x16   : > { %s5095_s6 = scalar_select %p3359_p12, 1, 0 }
  0x17   : > { %s5096_s7 = scalar_select %p3363_p13, 1, 0 }
  0x18   : > { %p2782_p1 = pneg %p3363_p13  ;;  %s195_s9 = sshll.u32 %s3258_s8, 4  ;;  %s196_s9 = int_to_ptr.vmem [resolvable:$true] %s195_s9 }
  0x19   : > { %p2806_p2 = scmp.lt.s32.totalorder %s3256_s21, 3  ;;  %s217_s11 = sand.u32 1, %s3256_s21  }
  0x1a   : > { %p3372_p0 = pnand %p2782_p1, %p5000_p4  ;;  %s5002_s13 = sand.u32 1, %s3252_s20  }
  0x1b   : > { %p3379_p3 = pnand %p2806_p2, %p3342_p5  ;;  %s3061_s14 = scalar_lea.vmem %s196_s9, 48 }
  0x1c   : > { %p5003_p7 = pneg %p3372_p0  ;;  %p3062_p8 = scmp.ne.s32.totalorder %s196_s9, %s3061_s14 }
  0x1d   : > { %s3068_s15 = scalar_lea.vmem %s196_s9, 64  ;;  %p3069_p1 = scmp.lt.s32.totalorder %s196_s9, %s196_s9 }
  0x1e   : > { %p3064_p9 = pnand %p3062_p8, %p5003_p7  ;;  %p3070_p4 = scmp.lt.s32.totalorder %s3068_s15, %s3061_s14 }
  0x20   : > { %p3065_p10 = pneg %p3064_p9  ;;  %p3071_p12 = por %p3070_p4, %p3069_p1 }
  0x22   : > { %p3072_p11 = pnand %p3071_p12, %p3065_p10 }
  0x24   : > { %3075 = shalt.err (!%p3072_p11)
}
  0x25   : > { %2788 = dma.hbm_to_vmem [thread:$0]  (!%p3372_p0), %s4995_s1, 48, %s196_s9, [#allocation6]  }
  0x26   : > { %s2761_s23 = smul.u32 768, %s5002_s13  ;;  %s2742_s25 = sshll.u32 %s3256_s21, 8 }
  0x27   : > { %s3400_s8 = scalar_lea.hbm %s4997_s3, %s2742_s25  ;;  %s3404_s16 = scalar_lea.sflag [#allocation9], %s217_s11 }
  0x28   : > { %s221_s14 = scalar_lea.vmem [#allocation8], %s2761_s23  ;;  %s3076_s17 = scalar_lea.hbm %s3400_s8, 12288 }
  0x29   : > { %s228_s15 = sshll.u32 %s221_s14, 4  ;;  %p3077_p4 = scmp.ne.s32.totalorder %s3400_s8, %s3076_s17  ;;  %s3402_s15 = int_to_ptr.vmem [resolvable:$true] %s228_s15 }
  0x2a   : > { %p3078_p5 = pneg %p3379_p3  ;;  %s3081_s26 = scalar_lea.hbm %s4997_s3, 36864 }
  0x2b   : > { %p3082_p2 = scmp.lt.s32.totalorder %s3400_s8, %s4997_s3  ;;  %p3083_p8 = scmp.lt.s32.totalorder %s3081_s26, %s3076_s17 }
  0x2c   : > { %p3079_p11 = pnand %p3078_p5, %p3077_p4 }
  0x2d   : > { %p3084_p9 = por %p3083_p8, %p3082_p2 }
  0x2e   : > { %p3080_p12 = pneg %p3079_p11 }
  0x30   : > { %p3085_p10 = pnand %p3084_p9, %p3080_p12 }
  0x32   : > { %3088 = shalt.err (!%p3085_p10)
}
  0x33   : > { %s3089_s11 = scalar_lea.vmem %s3402_s15, 12288  ;;  %s3259_s23 = smov [#allocation8]  }
  0x34   : > { %p3090_p1 = scmp.ne.s32.totalorder %s3402_s15, %s3089_s11  ;;  %s3094_s14 = sshll.u32 %s3259_s23, 4  ;;  %s3095_s14 = int_to_ptr.vmem [resolvable:$false] %s3094_s14 }
  0x35   : > { %s3096_s9 = scalar_lea.vmem %s3095_s14, 24576  ;;  %p3097_p7 = scmp.lt.s32.totalorder %s3402_s15, %s3095_s14 }
  0x36   : > { %p3092_p4 = pnand %p3090_p1, %p3078_p5  ;;  %p3098_p6 = scmp.lt.s32.totalorder %s3096_s9, %s3089_s11 }
  0x38   : > { %p3093_p11 = pneg %p3092_p4  ;;  %p3099_p13 = por %p3098_p6, %p3097_p7 }
  0x3a   : > { %p3100_p2 = pnand %p3099_p13, %p3093_p11 }
  0x3c   : > { %3103 = shalt.err (!%p3100_p2)
}
  0x3d   : > { %s3260_s13 = smov 768   ;;  %s3261_s17 = smov 256  }
  0x3e   : > { %s3262_s25 = smov 16   ;;  %s3263_s26 = smov [#allocation2]  }
  0x3f   : > { %2795 = dma.hbm_to_vmem [thread:$0]  (!%p3379_p3), %s3400_s8, 12288, %s3402_s15, %s3404_s16, %s3260_s13, %s3261_s17, %s3262_s25  }
  0x40   : > { %s181_s28 = sshll.u32 %s3263_s26, 4  ;;  %p5099_p8 = pneg %p3372_p0  ;;  %s182_s28 = int_to_ptr.vmem [resolvable:$true] %s181_s28 }
  0x41   : > { %s3115_s23 = scalar_lea.vmem %s182_s28, 9600  ;;  %p3123_p7 = scmp.lt.s32.totalorder %s182_s28, %s182_s28 }
  0x42   : > { %p3116_p12 = scmp.ne.s32.totalorder %s182_s28, %s3115_s23  ;;  %p3124_p9 = scmp.lt.s32.totalorder %s3115_s23, %s3115_s23 }
  0x44   : > { %p3118_p6 = pnand %p3116_p12, %p5099_p8  ;;  %p3125_p10 = por %p3124_p9, %p3123_p7 }
  0x46   : > { %p3119_p13 = pneg %p3118_p6 }
  0x48   : > { %p3126_p1 = pnand %p3125_p10, %p3119_p13 }
  0x4a   : > { %3129 = shalt.err (!%p3126_p1)
}
  0x4b   : > { %s3264_s11 = smov 384   ;;  %s3265_s14 = smov 24  }
  0x4c   : > { %s5100_s0 = sld [smem:[#allocation62_spill]]  ;;  %s3266_s9 = smov [#allocation7]  }
  0x4d   : > { %s206_s13 = sshll.u32 %s3266_s9, 4  ;;  %s5101_s17 = sand.u32 1, %s3252_s20   ;;  %s207_s13 = int_to_ptr.vmem [resolvable:$true] %s206_s13 }
  0x4e   : > { %s2634_s25 = sshll.u32 %s5101_s17, 2  ;;  %s3141_s26 = scalar_lea.vmem %s207_s13, 48 }
  0x4f   : > { %p3142_p4 = scmp.ne.s32.totalorder %s207_s13, %s3141_s26  ;;  %p5102_p11 = pmov %p5099_p8 }
  0x50   : > { %s3148_s23 = scalar_lea.vmem %s207_s13, 64  ;;  %p3149_p8 = scmp.lt.s32.totalorder %s207_s13, %s207_s13 }
  0x51   : > { %p3144_p2 = pnand %p3142_p4, %p5102_p11  ;;  %p3150_p6 = scmp.lt.s32.totalorder %s3148_s23, %s3141_s26 }
  0x52   : > { %2785 = dma.hbm_to_vmem [thread:$0]  (!%p3372_p0), %s5100_s0, 9600, %s182_s28, [#allocation3], %s3264_s11, %s3264_s11, %s3265_s14  }
  0x53   : > { %p3145_p12 = pneg %p3144_p2  ;;  %p3151_p13 = por %p3150_p6, %p3149_p8 }
  0x55   : > { %p3152_p7 = pnand %p3151_p13, %p3145_p12 }
  0x57   : > { %3155 = shalt.err (!%p3152_p7)
}
  0x58   : > { %2791 = dma.hbm_to_vmem [thread:$0]  (!%p3372_p0), %s4996_s2, 48, %s207_s13, [#allocation6]  }
  0x59   : > { %s2743_s14 = sshll.u32 %s3256_s21, 6  ;;  %s242_s8 = scalar_lea.vmem [#allocation10], %s2634_s25 }
  0x5a   : > { %s250_s15 = sshll.u32 %s242_s8, 4  ;;  %s248_s0 = scalar_lea.hbm %s4998_s4, %s2743_s14  ;;  %s251_s15 = int_to_ptr.vmem [resolvable:$true] %s250_s15 }
  0x5b   : > { %s3156_s26 = scalar_lea.hbm %s248_s0, 64  ;;  %s3161_s28 = scalar_lea.hbm %s4998_s4, 192 }
  0x5c   : > { %p3157_p9 = scmp.ne.s32.totalorder %s248_s0, %s3156_s26  ;;  %p3162_p0 = scmp.lt.s32.totalorder %s248_s0, %s4998_s4 }
  0x5d   : > { %p3163_p4 = scmp.lt.s32.totalorder %s3161_s28, %s3156_s26 }
  0x5e   : > { %p3159_p10 = pnand %p3157_p9, %p3078_p5 }
  0x5f   : > { %p3164_p11 = por %p3163_p4, %p3162_p0 }
  0x60   : > { %p3160_p1 = pneg %p3159_p10 }
  0x62   : > { %p3165_p2 = pnand %p3164_p11, %p3160_p1 }
  0x64   : > { %3168 = shalt.err (!%p3165_p2)
}
  0x65   : > { %s3169_s25 = scalar_lea.vmem %s251_s15, 64  ;;  %s3267_s14 = smov [#allocation10]  }
  0x66   : > { %p3170_p12 = scmp.ne.s32.totalorder %s251_s15, %s3169_s25  ;;  %s3174_s8 = sshll.u32 %s3267_s14, 4  ;;  %s3175_s8 = int_to_ptr.vmem [resolvable:$false] %s3174_s8 }
  0x67   : > { %s3176_s9 = scalar_lea.vmem %s3175_s8, 128  ;;  %p3177_p13 = scmp.lt.s32.totalorder %s251_s15, %s3175_s8 }
  0x68   : > { %p3172_p8 = pnand %p3170_p12, %p3078_p5  ;;  %p3178_p7 = scmp.lt.s32.totalorder %s3176_s9, %s3169_s25 }
  0x6a   : > { %p3173_p6 = pneg %p3172_p8  ;;  %p3179_p9 = por %p3178_p7, %p3177_p13 }
  0x6c   : > { %p3180_p10 = pnand %p3179_p9, %p3173_p6 }
  0x6e   : > { %3183 = shalt.err (!%p3180_p10)
}
  0x6f   : > { %2798 = dma.hbm_to_vmem [thread:$0]  (!%p3379_p3), %s248_s0, 64, %s251_s15, %s3404_s16  }
  0x70   : > { %p5103_p1 = scmp.ne.s32.totalorder %s5096_s7, 0 }
  0x72   : > { %259 = sbr.rel (%p5103_p1) target bundleno = 946 (0x3b2), region = 40 }
  0x77   : > { %p5104_p0 = scmp.eq.s32.totalorder %s3324_s22, 0 }
  0x79   : > { %3227 = dma.done.wait (%p5104_p0), [#allocation3], 9600   ;;  %p5105_p5 = pmov %p5104_p0 }
  0x7a   : > { %p5106_p4 = pmov %p5104_p0 }
  0x7b   : > { %3229 = vsyncadd (%p5105_p5), [#allocation3], 4294957696 }
  0x7c   : > { %3231 = dma.done.wait (%p5106_p4), [#allocation6], 96   ;;  %p5107_p11 = pmov %p5104_p0 }
  0x7d   : > { %s273_s12 = sand.u32 1, %s3324_s22   ;;  %s3480_s0 = sand.u32 1, %s3248_s19  }
  0x7e   : > { %3233 = vsyncadd (%p5107_p11), [#allocation6], 4294967200  ;;  %s2762_s7 = smul.u32 768, %s3480_s0  ;;  %s274_s16 = scalar_lea.sflag [#allocation9], %s273_s12 }
  0x7f   : > { %p5108_p3 = scmp.ne.s32.totalorder %s5093_s29, 0 }
  0x80   : > { %s3483_s15 = scalar_lea.vmem [#allocation8], %s2762_s7 }
  0x81   : > { %3235 = dma.done.wait (%p5108_p3), %s274_s16, 12352  }
  0x82   : > { %3237 = vsyncadd (%p5108_p3), %s274_s16, 4294954944  ;;  %v3489_v0 = vld [vmem:[#allocation2] sm:$0xff]  ;;  %v3491_v1 = vld [vmem:[#allocation2 + $0x8] sm:$0xff]  ;;  %s2641_s29 = sshll.u32 %s3480_s0, 2  ;;  %s2763_s26 = smul.u32 800, %s3480_s0 }
  0x83   : > { %v3493_v2 = vld [vmem:[#allocation2 + $0x10] sm:$0xff]  ;;  %v397_v3 = vadd.f32 %v3491_v1, %v3489_v0  ;;  %v3497_v4 = vld [vmem:[#allocation2 + $0x18] sm:$0xff]  ;;  %v3499_v5 = vld [vmem:[#allocation2 + $0x20] sm:$0xff]  ;;  %s286_s17 = scalar_lea.vmem [#allocation10], %s2641_s29  ;;  %s2744_s23 = sshll.u32 %s3324_s22, 9 }
  0x84   : > { %v3501_v6 = vld [vmem:[#allocation2 + $0x28] sm:$0xff]  ;;  %v401_v7 = vadd.f32 %v3499_v5, %v3497_v4  ;;  %v3505_v8 = vld [vmem:[#allocation2 + $0x30] sm:$0xff]  ;;  %v3507_v9 = vld [vmem:[#allocation2 + $0x38] sm:$0xff]  ;;  %s4702_s10 = scalar_lea.vmem [#allocation11], %s2763_s26  ;;  %s4948_s25 = scalar_lea.hbm %s4999_s5, %s2744_s23 }
  0x85   : > { %v3509_v10 = vld [vmem:[#allocation2 + $0x40] sm:$0xff]  ;;  %v398_v11 = vadd.f32 %v397_v3, %v3493_v2  ;;  %v405_v12 = vadd.f32 %v3507_v9, %v3505_v8  ;;  %v3514_v13 = vld [vmem:[#allocation2 + $0x48] sm:$0xff]  ;;  %v3516_v14 = vld [vmem:[#allocation2 + $0x50] sm:$0xff]  ;;  %s2502_s28 = sshll.u32 %s4702_s10, 4  ;;  %s2489_s22 = scalar_lea.sflag [#allocation4], %s3480_s0  ;;  %s4950_s28 = int_to_ptr.vmem [resolvable:$true] %s2502_s28 }
  0x86   : > { %v3518_v15 = vld [vmem:[#allocation2 + $0x58] sm:$0xff]  ;;  %v409_v16 = vadd.f32 %v3516_v14, %v3514_v13  ;;  %v3524_v18 = vld [vmem:[#allocation2 + $0x80] sm:$0xff]  ;;  %v402_v19 = vadd.f32 %v401_v7, %v3501_v6  ;;  %v3530_v22 = vld [vmem:[#allocation2 + $0x68] sm:$0xff]  ;;  %s3184_s14 = scalar_lea.vmem %s4950_s28, 12800  ;;  %p5276_p12 = scmp.ne.s32.totalorder %s5094_s30, 0 }
  0x87   : > { %v3522_v17 = vld [vmem:[#allocation2 + $0x78] sm:$0xff]  ;;  %399 = vadd.xlane.f32.xlu0 %v398_v11  ;;  %v406_v20 = vadd.f32 %v405_v12, %v3509_v10  ;;  %v3528_v21 = vld [vmem:[#allocation2 + $0x60] sm:$0xff]  ;;  %v3532_v23 = vld [vmem:[#allocation2 + $0x70] sm:$0xff]  ;;  %p3185_p2 = scmp.ne.s32.totalorder %s4950_s28, %s3184_s14  ;;  %s3269_s8 = smov [#allocation11]  }
  0x88   : > { %v413_v24 = vadd.f32 %v3530_v22, %v3528_v21  ;;  %v410_v25 = vadd.f32 %v409_v16, %v3518_v15  ;;  %v417_v26 = vadd.f32 %v3524_v18, %v3522_v17  ;;  %v3539_v27 = vld [vmem:[#allocation2 + $0x90] sm:$0xff]  ;;  %v3541_v28 = vld [vmem:[#allocation2 + $0x98] sm:$0xff]  ;;  %v3543_v29 = vld [vmem:[#allocation2 + $0x88] sm:$0xff]  ;;  %s3188_s9 = sshll.u32 %s3269_s8, 4  ;;  %s3189_s9 = int_to_ptr.vmem [resolvable:$false] %s3188_s9 }
  0x89   : > { %407 = vadd.xlane.f32.xlu1 %v406_v20  ;;  %v3545_v30 = vld [vmem:[#allocation2 + $0xa8] sm:$0xff]  ;;  %v3547_v31 = vld [vmem:[#allocation2 + $0xb0] sm:$0xff]  ;;  %v421_v33 = vadd.f32 %v3541_v28, %v3539_v27  ;;  %v3552_v34 = vld [vmem:[#allocation2 + $0xa0] sm:$0xff]  ;;  %p3186_p8 = pnand %p3185_p2, %p5276_p12  ;;  %s3190_s12 = scalar_lea.vmem %s3189_s9, 25600 }
  0x8a   : > { %v414_v32 = vadd.f32 %v413_v24, %v3532_v23  ;;  %v3554_v35 = vld [vmem:[#allocation2 + $0xc0] sm:$0xff]  ;;  %v3556_v36 = vld [vmem:[#allocation2 + $0xc8] sm:$0xff]  ;;  %v418_v37 = vadd.f32 %v417_v26, %v3543_v29  ;;  %v425_v38 = vadd.f32 %v3547_v31, %v3545_v30  ;;  %v3561_v39 = vld [vmem:[#allocation2 + $0xb8] sm:$0xff]  ;;  %p3191_p13 = scmp.lt.s32.totalorder %s4950_s28, %s3189_s9  ;;  %p3192_p7 = scmp.lt.s32.totalorder %s3190_s12, %s3184_s14 }
  0x8b   : > { %403 = vadd.xlane.f32.xlu0 %v402_v19  ;;  %v3563_v40 = vld [vmem:[#allocation2 + $0xd8] sm:$0xff]  ;;  %v3565_v41 = vld [vmem:[#allocation2 + $0xe0] sm:$0xff]  ;;  %v422_v42 = vadd.f32 %v421_v33, %v3552_v34  ;;  %v429_v43 = vadd.f32 %v3556_v36, %v3554_v35  ;;  %v3570_v44 = vld [vmem:[#allocation2 + $0xd0] sm:$0xff]  ;;  %p3187_p6 = pneg %p3186_p8 }
  0x8c   : > { %v3572_v45 = vld [vmem:[#allocation2 + $0xf0] sm:$0xff]  ;;  %v3574_v46 = vld [vmem:[#allocation2 + $0xf8] sm:$0xff]  ;;  %v426_v47 = vadd.f32 %v425_v38, %v3561_v39  ;;  %v433_v48 = vadd.f32 %v3565_v41, %v3563_v40  ;;  %v3579_v49 = vld [vmem:[#allocation2 + $0xe8] sm:$0xff]  ;;  %p3193_p9 = por %p3192_p7, %p3191_p13 }
  0x8d   : > { %411 = vadd.xlane.f32.xlu1 %v410_v25  ;;  %v3581_v50 = vld [vmem:[#allocation2 + $0x108] sm:$0xff]  ;;  %v3583_v51 = vld [vmem:[#allocation2 + $0x110] sm:$0xff]  ;;  %v430_v52 = vadd.f32 %v429_v43, %v3570_v44  ;;  %v437_v53 = vadd.f32 %v3574_v46, %v3572_v45  ;;  %v3588_v54 = vld [vmem:[#allocation2 + $0x100] sm:$0xff] }
  0x8e   : > { %v3590_v55 = vld [vmem:[#allocation2 + $0x120] sm:$0xff]  ;;  %v3592_v56 = vld [vmem:[#allocation2 + $0x128] sm:$0xff]  ;;  %v434_v57 = vadd.f32 %v433_v48, %v3579_v49  ;;  %v441_v58 = vadd.f32 %v3583_v51, %v3581_v50  ;;  %v3597_v59 = vld [vmem:[#allocation2 + $0x118] sm:$0xff]  ;;  %p3194_p10 = pnand %p3193_p9, %p3187_p6 }
  0x8f   : > { %415 = vadd.xlane.f32.xlu0 %v414_v32  ;;  %v3599_v60 = vld [vmem:[#allocation2 + $0x138] sm:$0xff]  ;;  %v3601_v61 = vld [vmem:[#allocation2 + $0x140] sm:$0xff]  ;;  %v438_v62 = vadd.f32 %v437_v53, %v3588_v54  ;;  %v3604_v63 = vld [vmem:[#allocation2 + $0x130] sm:$0xff]  ;;  %v445_v3 = vadd.f32 %v3592_v56, %v3590_v55 }
  0x90   : > { %v3608_v7 = vld [vmem:[#allocation2 + $0x150] sm:$0xff]  ;;  %v3610_v11 = vld [vmem:[#allocation2 + $0x158] sm:$0xff]  ;;  %v3612_v12 = vld [vmem:[#allocation2 + $0x148] sm:$0xff]  ;;  %v442_v20 = vadd.f32 %v441_v58, %v3597_v59  ;;  %v449_v24 = vadd.f32 %v3601_v61, %v3599_v60 }
  0x91   : > { %419 = vadd.xlane.f32.xlu1 %v418_v37  ;;  %5109 = vst [vmem:[#allocation16_spill] sm:$0xff] %v3610_v11  ;;  %v3614_v16 = vld [vmem:[#allocation2 + $0x168] sm:$0xff]  ;;  %v3616_v19 = vld [vmem:[#allocation2 + $0x170] sm:$0xff]  ;;  %v446_v25 = vadd.f32 %v445_v3, %v3604_v63  ;;  %v3622_v26 = vld [vmem:[#allocation2 + $0x160] sm:$0xff]  ;;  %v453_v32 = vadd.f32 %v3610_v11, %v3608_v7 }
  0x92   : > { %5110 = vst [vmem:[#allocation17_spill] sm:$0xff] %v3616_v19  ;;  %5111 = vst [vmem:[#allocation18_spill] sm:$0xff] %v3622_v26  ;;  %v3626_v33 = vld [vmem:[#allocation2 + $0x180] sm:$0xff]  ;;  %v3628_v37 = vld [vmem:[#allocation2 + $0x178] sm:$0xff]  ;;  %v457_v48 = vadd.f32 %v3616_v19, %v3614_v16 }
  0x93   : > { %423 = vadd.xlane.f32.xlu0 %v422_v42  ;;  %5112 = vst [vmem:[#allocation19_spill] sm:$0xff] %v3626_v33  ;;  %5113 = vst [vmem:[#allocation20_spill] sm:$0xff] %v3628_v37  ;;  %v3630_v38 = vld [vmem:[#allocation2 + $0x198] sm:$0xff]  ;;  %v3632_v42 = vld [vmem:[#allocation2 + $0x1a0] sm:$0xff]  ;;  %v454_v53 = vadd.f32 %v453_v32, %v3622_v26 }
  0x94   : > { %5114 = vst [vmem:[#allocation21_spill] sm:$0xff] %v3632_v42  ;;  %v3634_v43 = vld [vmem:[#allocation2 + $0x188] sm:$0xff]  ;;  %v3644_v58 = vld [vmem:[#allocation2 + $0x1b0] sm:$0xff]  ;;  %v465_v11 = vadd.f32 %v3632_v42, %v3630_v38  ;;  %v3662_v26 = vld [vmem:[#allocation2 + $0x1e0] sm:$0xff] }
  0x95   : > { %427 = vadd.xlane.f32.xlu1 %v426_v47  ;;  %5115 = vst [vmem:[#allocation22_spill] sm:$0xff] %v3634_v43  ;;  %v450_v47 = vadd.f32 %v449_v24, %v3612_v12  ;;  %5117 = vst [vmem:[#allocation24_spill] sm:$0xff] %v3644_v58  ;;  %v3648_v3 = vld [vmem:[#allocation2 + $0x1a8] sm:$0xff]  ;;  %v458_v24 = vadd.f32 %v457_v48, %v3628_v37  ;;  %v3664_v19 = vld [vmem:[#allocation2 + $0x1d8] sm:$0xff] }
  0x96   : > { %5122 = vst [vmem:[#allocation29_spill] sm:$0xff] %v3662_v26  ;;  %5123 = vst [vmem:[#allocation30_spill] sm:$0xff] %v3664_v19  ;;  %v3668_v48 = vld [vmem:[#allocation2 + $0x200] sm:$0xff]  ;;  %v3670_v37 = vld [vmem:[#allocation2 + $0x1e8] sm:$0xff] }
  0x97   : > { %431 = vadd.xlane.f32.xlu0 %v430_v52  ;;  %v3639_v52 = vld [vmem:[#allocation2 + $0x190] sm:$0xff]  ;;  %5125 = vst [vmem:[#allocation32_spill] sm:$0xff] %v3668_v48  ;;  %5126 = vst [vmem:[#allocation33_spill] sm:$0xff] %v3670_v37  ;;  %v3680_v42 = vld [vmem:[#allocation2 + $0x208] sm:$0xff] }
  0x98   : > { %5116 = vst [vmem:[#allocation23_spill] sm:$0xff] %v3639_v52  ;;  %5128 = vst [vmem:[#allocation35_spill] sm:$0xff] %v3680_v42 }
  0x99   : > { %435 = vadd.xlane.f32.xlu1 %v434_v57  ;;  %v461_v57 = vadd.f32 %v3634_v43, %v3626_v33  ;;  %v3658_v43 = vld [vmem:[#allocation2 + $0x1c0] sm:$0xff] }
  0x9a   : > { %5121 = vst [vmem:[#allocation28_spill] sm:$0xff] %v3658_v43 }
  0x9b   : > { %439 = vadd.xlane.f32.xlu0 %v438_v62  ;;  %v3646_v62 = vld [vmem:[#allocation2 + $0x1b8] sm:$0xff]  ;;  %v462_v32 = vadd.f32 %v461_v57, %v3639_v52  ;;  %v3675_v52 = vld [vmem:[#allocation2 + $0x1f0] sm:$0xff] }
  0x9c   : > { %5118 = vst [vmem:[#allocation25_spill] sm:$0xff] %v3646_v62  ;;  %v469_v33 = vadd.f32 %v3646_v62, %v3644_v58  ;;  %5127 = vst [vmem:[#allocation34_spill] sm:$0xff] %v3675_v52  ;;  %v477_v58 = vadd.f32 %v3670_v37, %v3662_v26  ;;  %v2855_v37 = vld [vmem:[%s3483_s15 + $0xe4] ss:$16 sps:$4 sm:$0xff]  }
  0x9d   : > { %443 = vadd.xlane.f32.xlu1 %v442_v20  ;;  %v3650_v20 = vld [vmem:[#allocation2 + $0x1c8] sm:$0xff]  ;;  %v2858_v26 = vld [vmem:[%s3483_s15 + $0xc4] ss:$16 sps:$4 sm:$0xff]   ;;  %1744 = vmatprep.subr.bf16.mxu0 %v2855_v37  ;;  %v2866_v37 = vld [vmem:[%s3483_s15 + $0x80] ss:$16 sps:$4 sm:$0xff]  }
  0x9e   : > { %5119 = vst [vmem:[#allocation26_spill] sm:$0xff] %v3650_v20  ;;  %v470_v62 = vadd.f32 %v469_v33, %v3658_v43 }
  0x9f   : > { %447 = vadd.xlane.f32.xlu0 %v446_v25  ;;  %v3655_v25 = vld [vmem:[#allocation2 + $0x1d0] sm:$0xff] }
  0xa0   : > { %5120 = vst [vmem:[#allocation27_spill] sm:$0xff] %v3655_v25  ;;  %v473_v57 = vadd.f32 %v3655_v25, %v3650_v20 }
  0xa1   : > { %451 = vadd.xlane.f32.xlu1 %v450_v47  ;;  %v3666_v47 = vld [vmem:[#allocation2 + $0x1f8] sm:$0xff] }
  0xa2   : > { %5124 = vst [vmem:[#allocation31_spill] sm:$0xff] %v3666_v47 }
  0xa3   : > { %455 = vadd.xlane.f32.xlu0 %v454_v53  ;;  %v466_v53 = vadd.f32 %v465_v11, %v3648_v3  ;;  %v474_v11 = vadd.f32 %v473_v57, %v3664_v19  ;;  %v2860_v57 = vld [vmem:[%s3483_s15 + $0xc0] ss:$16 sps:$4 sm:$0xff]  }
  0xa5   : > { %459 = vadd.xlane.f32.xlu1 %v458_v24  ;;  %v481_v24 = vadd.f32 %v3668_v48, %v3666_v47 }
  0xa7   : > { %463 = vadd.xlane.f32.xlu0 %v462_v32  ;;  %v478_v32 = vadd.f32 %v477_v58, %v3675_v52  ;;  %v482_v33 = vadd.f32 %v481_v24, %v3680_v42  ;;  %v2879_v58 = vld [vmem:[%s3483_s15 + $0x2e4] ss:$16 sps:$4 sm:$0xff]   ;;  %v2883_v52 = vld [vmem:[%s3483_s15 + $0x2e0] ss:$16 sps:$4 sm:$0xff]   ;;  %v3724_v42 = vld [vmem:[#allocation2 + $0x238] sm:$0xff] }
  0xa8   : > { %1905 = vmatprep.subr.bf16.mxu1 %v2879_v58  ;;  %v2864_v24 = vld [vmem:[%s3483_s15 + $0x84] ss:$16 sps:$4 sm:$0xff]  }
  0xa9   : > { %467 = vadd.xlane.f32.xlu1 %v466_v53  ;;  %v2857_v53 = vld [vmem:[%s3483_s15 + $0xe0] ss:$16 sps:$4 sm:$0xff]   ;;  %1906 = vmatpush1.bf16.msra.mxu1 %v2883_v52  ;;  %v2876_v58 = vld [vmem:[%s3483_s15 + $0x4] ss:$16 sps:$4 sm:$0xff]  }
  0xaa   : > { %1745 = vmatpush1.bf16.msra.mxu0 %v2857_v53  ;;  %v2872_v53 = vld [vmem:[%s3483_s15 + $0x40] ss:$16 sps:$4 sm:$0xff]  }
  0xab   : > { %471 = vadd.xlane.f32.xlu0 %v470_v62  ;;  %1746 = vmatprep.subr.bf16.mxu0 %v2858_v26  ;;  %v2861_v62 = vld [vmem:[%s3483_s15 + $0xa4] ss:$16 sps:$4 sm:$0xff]   ;;  %v2869_v26 = vld [vmem:[%s3483_s15 + $0x60] ss:$16 sps:$4 sm:$0xff]  }
  0xac   : > { %v2878_v52 = vld [vmem:[%s3483_s15] ss:$16 sps:$4 sm:$0xff]  }
  0xad   : > { %475 = vadd.xlane.f32.xlu1 %v474_v11  ;;  %v2863_v11 = vld [vmem:[%s3483_s15 + $0xa0] ss:$16 sps:$4 sm:$0xff]  }
  0xae   : > { %1747 = vmatpush1.bf16.msra.mxu0 %v2860_v57  ;;  %v2873_v57 = vld [vmem:[%s3483_s15 + $0x24] ss:$16 sps:$4 sm:$0xff]  }
  0xaf   : > { %479 = vadd.xlane.f32.xlu0 %v478_v32  ;;  %1748 = vmatprep.subr.bf16.mxu0 %v2861_v62  ;;  %v2867_v32 = vld [vmem:[%s3483_s15 + $0x64] ss:$16 sps:$4 sm:$0xff]   ;;  %v2875_v62 = vld [vmem:[%s3483_s15 + $0x20] ss:$16 sps:$4 sm:$0xff]  }
  0xb1   : > { %483 = vadd.xlane.f32.xlu1 %v482_v33  ;;  %v2870_v33 = vld [vmem:[%s3483_s15 + $0x44] ss:$16 sps:$4 sm:$0xff]  }
  0xb2   : > { %1749 = vmatpush1.bf16.msra.mxu0 %v2863_v11  ;;  %v2881_v11 = vld [vmem:[%s3483_s15 + $0x1e4] ss:$16 sps:$4 sm:$0xff]  }
  0xb3   : > { %1750 = vmatprep.subr.bf16.mxu0 %v2864_v24  ;;  %v3706_v24 = vld [vmem:[#allocation2 + $0x210] sm:$0xff] }
  0xb4   : > { %5129 = vst [vmem:[#allocation36_spill] sm:$0xff] %v3706_v24 }
  0xb6   : > { %1751 = vmatpush1.bf16.msra.mxu0 %v2866_v37  ;;  %v3708_v37 = vld [vmem:[#allocation2 + $0x218] sm:$0xff] }
  0xb7   : > { %1752 = vmatprep.subr.bf16.mxu0 %v2867_v32  ;;  %5130 = vst [vmem:[#allocation37_spill] sm:$0xff] %v3708_v37  ;;  %v3710_v32 = vld [vmem:[#allocation2 + $0x228] sm:$0xff] }
  0xb8   : > { %5131 = vst [vmem:[#allocation38_spill] sm:$0xff] %v3710_v32 }
  0xba   : > { %1753 = vmatpush1.bf16.msra.mxu0 %v2869_v26  ;;  %v3712_v26 = vld [vmem:[#allocation2 + $0x230] sm:$0xff] }
  0xbb   : > { %1754 = vmatprep.subr.bf16.mxu0 %v2870_v33  ;;  %5132 = vst [vmem:[#allocation39_spill] sm:$0xff] %v3712_v26  ;;  %v3714_v33 = vld [vmem:[#allocation2 + $0x240] sm:$0xff] }
  0xbe   : > { %1755 = vmatpush1.bf16.msra.mxu0 %v2872_v53  ;;  %v3716_v53 = vld [vmem:[#allocation2 + $0x248] sm:$0xff] }
  0xbf   : > { %1756 = vmatprep.subr.bf16.mxu0 %v2873_v57  ;;  %5133 = vst [vmem:[#allocation40_spill] sm:$0xff] %v3716_v53  ;;  %v493_v47 = vadd.f32 %v3716_v53, %v3714_v33 }
  0xc2   : > { %1757 = vmatpush1.bf16.msra.mxu0 %v2875_v62  ;;  %v485_v62 = vadd.f32 %v3708_v37, %v3706_v24 }
  0xc3   : > { %1758 = vmatprep.subr.bf16.mxu0 %v2876_v58  ;;  %v489_v58 = vadd.f32 %v3712_v26, %v3710_v32  ;;  %v3737_v26 = vld [vmem:[#allocation2 + $0x250] sm:$0xff] }
  0xc5   : > { %v3741_v25 = vadd.f32 %v489_v58, %v3724_v42 }
  0xc6   : > { %1759 = vmatpush1.bf16.msra.mxu0 %v2878_v52 }
  0xc7   : > { %1760 = vmatprep.subr.bf16.mxu0 %v2881_v11  ;;  %v3722_v11 = vld [vmem:[#allocation2 + $0x220] sm:$0xff] }
  0xc8   : > { %v486_v32 = vadd.f32 %v485_v62, %v3722_v11 }
 0x110   : > { %v400_v57 = vpop.xlane.xlu0 %399 }
 0x111   : > { %v498_v52 = vmul.f32 0.0026041667, %v400_v57 }
 0x112   : > { %v408_v48 = vpop.xlane.xlu1 %407 }
 0x113   : > { %v3729_v43 = vsub.f32 %v3489_v0, %v498_v52  ;;  %v3732_v19 = vsub.f32 %v3491_v1, %v498_v52  ;;  %v3735_v37 = vsub.f32 %v3493_v2, %v498_v52  ;;  %v500_v24 = vmul.f32 0.0026041667, %v408_v48 }
 0x114   : > { %v404_v57 = vpop.xlane.xlu0 %403  ;;  %v3759_v52 = vadd.f32 %v493_v47, %v3737_v26 }
 0x115   : > { %5134 = vst [vmem:[#allocation41_spill] sm:$0xff] %v3729_v43  ;;  %5135 = vst [vmem:[#allocation42_spill] sm:$0xff] %v3732_v19  ;;  %v499_v20 = vmul.f32 0.0026041667, %v404_v57  ;;  %v3744_v53 = vsub.f32 %v3505_v8, %v500_v24  ;;  %v3747_v0 = vsub.f32 %v3507_v9, %v500_v24  ;;  %v3750_v1 = vsub.f32 %v3509_v10, %v500_v24 }
 0x116   : > { %5136 = vst [vmem:[#allocation43_spill] sm:$0xff] %v3735_v37  ;;  %v598_v2 = vmul.f32 %v3729_v43, %v3729_v43  ;;  %v599_v48 = vmul.f32 %v3732_v19, %v3732_v19  ;;  %v600_v62 = vmul.f32 %v3735_v37, %v3735_v37  ;;  %v412_v58 = vpop.xlane.xlu1 %411 }
 0x117   : > { %5137 = vst [vmem:[#allocation44_spill] sm:$0xff] %v3744_v53  ;;  %5138 = vst [vmem:[#allocation45_spill] sm:$0xff] %v3747_v0  ;;  %v3762_v8 = vsub.f32 %v3497_v4, %v499_v20  ;;  %v3765_v9 = vsub.f32 %v3499_v5, %v499_v20  ;;  %v3768_v10 = vsub.f32 %v3501_v6, %v499_v20  ;;  %v501_v24 = vmul.f32 0.0026041667, %v412_v58 }
 0x118   : > { %5139 = vst [vmem:[#allocation46_spill] sm:$0xff] %v3750_v1  ;;  %v673_v57 = vadd.f32 %v599_v48, %v598_v2  ;;  %v416_v43 = vpop.xlane.xlu0 %415  ;;  %v604_v19 = vmul.f32 %v3744_v53, %v3744_v53  ;;  %v605_v37 = vmul.f32 %v3747_v0, %v3747_v0  ;;  %v606_v47 = vmul.f32 %v3750_v1, %v3750_v1 }
 0x119   : > { %5140 = vst [vmem:[#allocation47_spill] sm:$0xff] %v3762_v8  ;;  %v3777_v4 = vsub.f32 %v3514_v13, %v501_v24  ;;  %v3780_v5 = vsub.f32 %v3516_v14, %v501_v24  ;;  %v3783_v6 = vsub.f32 %v3518_v15, %v501_v24  ;;  %v601_v20 = vmul.f32 %v3762_v8, %v3762_v8 }
 0x11a   : > { %v674_v2 = vadd.f32 %v673_v57, %v600_v62  ;;  %v602_v48 = vmul.f32 %v3765_v9, %v3765_v9  ;;  %v603_v58 = vmul.f32 %v3768_v10, %v3768_v10  ;;  %v420_v53 = vpop.xlane.xlu1 %419  ;;  %v502_v1 = vmul.f32 0.0026041667, %v416_v43 }
 0x11b   : > { %5141 = vst [vmem:[#allocation48_spill] sm:$0xff] %v3777_v4  ;;  %v503_v13 = vmul.f32 0.0026041667, %v420_v53  ;;  %v681_v0 = vadd.f32 %v605_v37, %v604_v19  ;;  %v607_v14 = vmul.f32 %v3777_v4, %v3777_v4  ;;  %v608_v15 = vmul.f32 %v3780_v5, %v3780_v5 }
 0x11c   : > { %675 = vadd.xlane.f32.xlu0 %v674_v2  ;;  %v677_v24 = vadd.f32 %v602_v48, %v601_v20  ;;  %v3796_v62 = vsub.f32 %v3528_v21, %v502_v1  ;;  %v3799_v57 = vsub.f32 %v3530_v22, %v502_v1  ;;  %v3802_v8 = vsub.f32 %v3532_v23, %v502_v1  ;;  %v424_v43 = vpop.xlane.xlu0 %423 }
 0x11d   : > { %v3805_v19 = vsub.f32 %v3522_v17, %v503_v13  ;;  %v3808_v37 = vsub.f32 %v3524_v18, %v503_v13  ;;  %v3811_v53 = vsub.f32 %v3543_v29, %v503_v13  ;;  %v682_v20 = vadd.f32 %v681_v0, %v606_v47 }
 0x11e   : > { %v678_v2 = vadd.f32 %v677_v24, %v603_v58  ;;  %v428_v21 = vpop.xlane.xlu1 %427  ;;  %v504_v48 = vmul.f32 0.0026041667, %v424_v43  ;;  %v609_v22 = vmul.f32 %v3783_v6, %v3783_v6  ;;  %v685_v4 = vadd.f32 %v608_v15, %v607_v14 }
 0x11f   : > { %v505_v23 = vmul.f32 0.0026041667, %v428_v21  ;;  %v613_v1 = vmul.f32 %v3805_v19, %v3805_v19  ;;  %v614_v17 = vmul.f32 %v3808_v37, %v3808_v37  ;;  %v615_v18 = vmul.f32 %v3811_v53, %v3811_v53 }
 0x120   : > { %487 = vadd.xlane.f32.xlu0 %v486_v32  ;;  %679 = vadd.xlane.f32.xlu1 %v678_v2  ;;  %v3822_v29 = vsub.f32 %v3539_v27, %v504_v48  ;;  %v3825_v0 = vsub.f32 %v3541_v28, %v504_v48  ;;  %v3828_v47 = vsub.f32 %v3552_v34, %v504_v48  ;;  %v432_v58 = vpop.xlane.xlu0 %431 }
 0x121   : > { %v3831_v13 = vsub.f32 %v3545_v30, %v505_v23  ;;  %v3834_v14 = vsub.f32 %v3547_v31, %v505_v23  ;;  %v3837_v15 = vsub.f32 %v3561_v39, %v505_v23  ;;  %v686_v32 = vadd.f32 %v685_v4, %v609_v22 }
 0x122   : > { %v436_v24 = vpop.xlane.xlu1 %435  ;;  %v506_v27 = vmul.f32 0.0026041667, %v432_v58  ;;  %v693_v43 = vadd.f32 %v614_v17, %v613_v1  ;;  %v610_v28 = vmul.f32 %v3796_v62, %v3796_v62  ;;  %v611_v34 = vmul.f32 %v3799_v57, %v3799_v57 }
 0x123   : > { %5142 = vst [vmem:[#allocation49_spill] sm:$0xff] %v3831_v13  ;;  %v507_v2 = vmul.f32 0.0026041667, %v436_v24  ;;  %v612_v30 = vmul.f32 %v3802_v8, %v3802_v8  ;;  %v619_v31 = vmul.f32 %v3831_v13, %v3831_v13  ;;  %v620_v39 = vmul.f32 %v3834_v14, %v3834_v14  ;;  %v2884_v24 = vld [vmem:[%s3483_s15 + $0x1e0] ss:$16 sps:$4 sm:$0xff]  }
 0x124   : > { %683 = vadd.xlane.f32.xlu0 %v682_v20  ;;  %491 = vadd.xlane.f32.xlu1 %v3741_v25  ;;  %v3851_v4 = vsub.f32 %v3554_v35, %v506_v27  ;;  %v3854_v21 = vsub.f32 %v3556_v36, %v506_v27  ;;  %v3857_v48 = vsub.f32 %v3570_v44, %v506_v27  ;;  %v440_v22 = vpop.xlane.xlu0 %439 }
 0x125   : > { %v3860_v23 = vsub.f32 %v3563_v40, %v507_v2  ;;  %v3863_v1 = vsub.f32 %v3565_v41, %v507_v2  ;;  %v3866_v20 = vsub.f32 %v3579_v49, %v507_v2  ;;  %v694_v25 = vadd.f32 %v693_v43, %v615_v18  ;;  %v2885_v2 = vld [vmem:[%s3483_s15 + $0x2c4] ss:$16 sps:$4 sm:$0xff]   ;;  %1761 = vmatpush2.bf16.msra.mxu0 %v2884_v24 }
 0x126   : > { %v689_v17 = vadd.f32 %v611_v34, %v610_v28  ;;  %v444_v35 = vpop.xlane.xlu1 %443  ;;  %v508_v58 = vmul.f32 0.0026041667, %v440_v22  ;;  %v621_v36 = vmul.f32 %v3837_v15, %v3837_v15  ;;  %v701_v44 = vadd.f32 %v620_v39, %v619_v31  ;;  %1907 = vmatprep.subr.bf16.mxu1 %v2885_v2 }
 0x127   : > { %v509_v27 = vmul.f32 0.0026041667, %v444_v35  ;;  %v616_v40 = vmul.f32 %v3822_v29, %v3822_v29  ;;  %v617_v41 = vmul.f32 %v3825_v0, %v3825_v0  ;;  %v618_v49 = vmul.f32 %v3828_v47, %v3828_v47 }
 0x128   : > { %495 = vadd.xlane.f32.xlu0 %v3759_v52  ;;  %687 = vadd.xlane.f32.xlu1 %v686_v32  ;;  %v690_v18 = vadd.f32 %v689_v17, %v612_v30  ;;  %v3879_v43 = vsub.f32 %v3572_v45, %v508_v58  ;;  %v3882_v28 = vsub.f32 %v3574_v46, %v508_v58  ;;  %v448_v34 = vpop.xlane.xlu0 %447  ;;  %v2887_v45 = vld [vmem:[%s3483_s15 + $0x1c4] ss:$16 sps:$4 sm:$0xff]   ;;  %v2889_v32 = vld [vmem:[%s3483_s15 + $0x2c0] ss:$16 sps:$4 sm:$0xff]  }
 0x129   : > { %v3886_v31 = vsub.f32 %v3581_v50, %v509_v27  ;;  %v3889_v39 = vsub.f32 %v3583_v51, %v509_v27  ;;  %v3892_v22 = vsub.f32 %v3597_v59, %v509_v27  ;;  %v3895_v52 = vsub.f32 %v3588_v54, %v508_v58  ;;  %v2890_v51 = vld [vmem:[%s3483_s15 + $0x1c0] ss:$16 sps:$4 sm:$0xff]   ;;  %1762 = vmatprep.subr.bf16.mxu0 %v2887_v45 }
 0x12a   : > { %5143 = vst [vmem:[#allocation50_spill] sm:$0xff] %v3879_v43  ;;  %v702_v46 = vadd.f32 %v701_v44, %v621_v36  ;;  %v697_v30 = vadd.f32 %v617_v41, %v616_v40  ;;  %v452_v17 = vpop.xlane.xlu1 %451  ;;  %v510_v35 = vmul.f32 0.0026041667, %v448_v34  ;;  %v625_v50 = vmul.f32 %v3860_v23, %v3860_v23  ;;  %1908 = vmatpush1.bf16.msra.mxu1 %v2889_v32  ;;  %v2891_v40 = vld [vmem:[%s3483_s15 + $0x2a4] ss:$16 sps:$4 sm:$0xff]  }
 0x12b   : > { %5144 = vst [vmem:[#allocation51_spill] sm:$0xff] %v3886_v31  ;;  %5145 = vst [vmem:[#allocation52_spill] sm:$0xff] %v3892_v22  ;;  %v511_v13 = vmul.f32 0.0026041667, %v452_v17  ;;  %v626_v59 = vmul.f32 %v3863_v1, %v3863_v1  ;;  %v627_v54 = vmul.f32 %v3866_v20, %v3866_v20  ;;  %v622_v58 = vmul.f32 %v3851_v4, %v3851_v4  ;;  %v2896_v32 = vld [vmem:[%s3483_s15 + $0x1a0] ss:$16 sps:$4 sm:$0xff]  }
 0x12c   : > { %695 = vadd.xlane.f32.xlu0 %v694_v25  ;;  %691 = vadd.xlane.f32.xlu1 %v690_v18  ;;  %v698_v36 = vadd.f32 %v697_v30, %v618_v49  ;;  %v3909_v44 = vsub.f32 %v3590_v55, %v510_v35  ;;  %v3912_v24 = vsub.f32 %v3592_v56, %v510_v35  ;;  %v456_v27 = vpop.xlane.xlu0 %455  ;;  %v2893_v55 = vld [vmem:[%s3483_s15 + $0x1a4] ss:$16 sps:$4 sm:$0xff]   ;;  %v2895_v49 = vld [vmem:[%s3483_s15 + $0x2a0] ss:$16 sps:$4 sm:$0xff]  }
 0x12d   : > { %v3916_v41 = vsub.f32 %v3599_v60, %v511_v13  ;;  %v3919_v34 = vsub.f32 %v3601_v61, %v511_v13  ;;  %v3922_v2 = vsub.f32 %v3612_v12, %v511_v13  ;;  %v3925_v25 = vsub.f32 %v3604_v63, %v510_v35  ;;  %1763 = vmatpush2.bf16.msra.mxu0 %v2890_v51 }
 0x12e   : > { %5146 = vst [vmem:[#allocation53_spill] sm:$0xff] %v3909_v44  ;;  %5147 = vst [vmem:[#allocation54_spill] sm:$0xff] %v3912_v24  ;;  %v709_v56 = vadd.f32 %v626_v59, %v625_v50  ;;  %v623_v18 = vmul.f32 %v3854_v21, %v3854_v21  ;;  %v624_v60 = vmul.f32 %v3857_v48, %v3857_v48  ;;  %v460_v45 = vpop.xlane.xlu1 %459  ;;  %v512_v61 = vmul.f32 0.0026041667, %v456_v27  ;;  %v2897_v59 = vld [vmem:[%s3483_s15 + $0x284] ss:$16 sps:$4 sm:$0xff]  }
 0x12f   : > { %5148 = vst [vmem:[#allocation55_spill] sm:$0xff] %v3916_v41  ;;  %5149 = vst [vmem:[#allocation56_spill] sm:$0xff] %v3919_v34  ;;  %1909 = vmatprep.subr.bf16.mxu1 %v2891_v40  ;;  %v513_v12 = vmul.f32 0.0026041667, %v460_v45  ;;  %v631_v63 = vmul.f32 %v3886_v31, %v3886_v31  ;;  %v632_v13 = vmul.f32 %v3889_v39, %v3889_v39  ;;  %1764 = vmatprep.subr.bf16.mxu0 %v2893_v55  ;;  %v5154_v40 = vld [vmem:[#allocation17_spill] sm:$0xff]  ;;  %v5156_v31 = vld [vmem:[#allocation20_spill] sm:$0xff] }
 0x130   : > { %5150 = vst [vmem:[#allocation57_spill] sm:$0xff] %v3922_v2  ;;  %5151 = vst [vmem:[#allocation58_spill] sm:$0xff] %v3925_v25  ;;  %v633_v30 = vmul.f32 %v3892_v22, %v3892_v22  ;;  %1910 = vmatpush1.bf16.msra.mxu1 %v2895_v49  ;;  %703 = vadd.xlane.f32.xlu0 %v702_v46  ;;  %v710_v17 = vadd.f32 %v709_v56, %v627_v54  ;;  %v464_v51 = vpop.xlane.xlu0 %463  ;;  %v5158_v55 = vld [vmem:[#allocation16_spill] sm:$0xff]  ;;  %v2899_v54 = vld [vmem:[%s3483_s15 + $0x184] ss:$16 sps:$4 sm:$0xff]  }
 0x131   : > { %699 = vadd.xlane.f32.xlu1 %v698_v36  ;;  %v705_v35 = vadd.f32 %v623_v18, %v622_v58  ;;  %v3941_v50 = vsub.f32 %v3608_v7, %v512_v61  ;;  %v3945_v27 = vsub.f32 %v3614_v16, %v513_v12  ;;  %v3948_v45 = vsub.f32 %v5154_v40, %v513_v12  ;;  %v2901_v58 = vld [vmem:[%s3483_s15 + $0x280] ss:$16 sps:$4 sm:$0xff]   ;;  %v5159_v36 = vld [vmem:[#allocation18_spill] sm:$0xff] }
 0x132   : > { %v3951_v22 = vsub.f32 %v5156_v31, %v513_v12  ;;  %v3954_v46 = vsub.f32 %v5158_v55, %v512_v61  ;;  %1765 = vmatpush2.bf16.msra.mxu0 %v2896_v32  ;;  %v3959_v49 = vsub.f32 %v5159_v36, %v512_v61  ;;  %v717_v56 = vadd.f32 %v632_v13, %v631_v63  ;;  %v468_v18 = vpop.xlane.xlu1 %467  ;;  %v2902_v40 = vld [vmem:[%s3483_s15 + $0x180] ss:$16 sps:$4 sm:$0xff]  }
 0x133   : > { %5152 = vst [vmem:[#allocation59_spill] sm:$0xff] %v3941_v50  ;;  %5153 = vst [vmem:[#allocation60_spill] sm:$0xff] %v3945_v27  ;;  %v706_v7 = vadd.f32 %v705_v35, %v624_v60  ;;  %v628_v16 = vmul.f32 %v3879_v43, %v3879_v43  ;;  %1911 = vmatprep.subr.bf16.mxu1 %v2897_v59  ;;  %v629_v31 = vmul.f32 %v3882_v28, %v3882_v28  ;;  %v2903_v59 = vld [vmem:[%s3483_s15 + $0x264] ss:$16 sps:$4 sm:$0xff]  }
 0x134   : > { %5155 = vst [vmem:[#allocation17_spill] sm:$0xff] %v3948_v45  ;;  %5157 = vst [vmem:[#allocation20_spill] sm:$0xff] %v3951_v22  ;;  %v630_v32 = vmul.f32 %v3895_v52, %v3895_v52  ;;  %v515_v12 = vmul.f32 0.0026041667, %v468_v18  ;;  %v514_v60 = vmul.f32 0.0026041667, %v464_v51  ;;  %1766 = vmatprep.subr.bf16.mxu0 %v2899_v54  ;;  %1912 = vmatpush1.bf16.msra.mxu1 %v2901_v58  ;;  %v472_v35 = vpop.xlane.xlu0 %471 }
 0x135   : > { %711 = vadd.xlane.f32.xlu0 %v710_v17  ;;  %707 = vadd.xlane.f32.xlu1 %v706_v7  ;;  %v718_v61 = vadd.f32 %v717_v56, %v633_v30  ;;  %v637_v63 = vmul.f32 %v3916_v41, %v3916_v41  ;;  %v638_v13 = vmul.f32 %v3919_v34, %v3919_v34  ;;  %v5161_v51 = vld [vmem:[#allocation21_spill] sm:$0xff]  ;;  %v5163_v58 = vld [vmem:[#allocation19_spill] sm:$0xff]  ;;  %v5164_v56 = vld [vmem:[#allocation22_spill] sm:$0xff] }
 0x136   : > { %v713_v55 = vadd.f32 %v629_v31, %v628_v16  ;;  %v3974_v36 = vsub.f32 %v3630_v38, %v515_v12  ;;  %v3977_v18 = vsub.f32 %v5161_v51, %v515_v12  ;;  %v3980_v17 = vsub.f32 %v3648_v3, %v515_v12  ;;  %1767 = vmatpush2.bf16.msra.mxu0 %v2902_v40  ;;  %v2905_v30 = vld [vmem:[%s3483_s15 + $0x164] ss:$16 sps:$4 sm:$0xff]   ;;  %v2907_v54 = vld [vmem:[%s3483_s15 + $0x260] ss:$16 sps:$4 sm:$0xff]   ;;  %v476_v31 = vpop.xlane.xlu1 %475 }
 0x137   : > { %v3985_v7 = vsub.f32 %v5163_v58, %v514_v60  ;;  %v3988_v41 = vsub.f32 %v5164_v56, %v514_v60  ;;  %v5165_v34 = vld [vmem:[#allocation23_spill] sm:$0xff]  ;;  %v639_v38 = vmul.f32 %v3922_v2, %v3922_v2  ;;  %1913 = vmatprep.subr.bf16.mxu1 %v2903_v59  ;;  %v725_v40 = vadd.f32 %v638_v13, %v637_v63  ;;  %v5166_v2 = vld [vmem:[#allocation26_spill] sm:$0xff] }
 0x138   : > { %5160 = vst [vmem:[#allocation16_spill] sm:$0xff] %v3974_v36  ;;  %5162 = vst [vmem:[#allocation18_spill] sm:$0xff] %v3977_v18  ;;  %v3991_v16 = vsub.f32 %v5165_v34, %v514_v60  ;;  %v2908_v3 = vld [vmem:[%s3483_s15 + $0x160] ss:$16 sps:$4 sm:$0xff]   ;;  %v714_v12 = vadd.f32 %v713_v55, %v630_v32  ;;  %v634_v51 = vmul.f32 %v3909_v44, %v3909_v44  ;;  %1768 = vmatprep.subr.bf16.mxu0 %v2905_v30  ;;  %v2909_v32 = vld [vmem:[%s3483_s15 + $0x244] ss:$16 sps:$4 sm:$0xff]  }
 0x139   : > { %v635_v58 = vmul.f32 %v3912_v24, %v3912_v24  ;;  %719 = vadd.xlane.f32.xlu0 %v718_v61  ;;  %v636_v34 = vmul.f32 %v3925_v25, %v3925_v25  ;;  %v517_v60 = vmul.f32 0.0026041667, %v476_v31  ;;  %v516_v56 = vmul.f32 0.0026041667, %v472_v35  ;;  %1914 = vmatpush1.bf16.msra.mxu1 %v2907_v54  ;;  %v2911_v30 = vld [vmem:[%s3483_s15 + $0x144] ss:$16 sps:$4 sm:$0xff]  }
 0x13a   : > { %v643_v59 = vmul.f32 %v3945_v27, %v3945_v27  ;;  %715 = vadd.xlane.f32.xlu1 %v714_v12  ;;  %v726_v63 = vadd.f32 %v725_v40, %v639_v38  ;;  %v644_v55 = vmul.f32 %v3948_v45, %v3948_v45  ;;  %v645_v61 = vmul.f32 %v3951_v22, %v3951_v22  ;;  %v2913_v44 = vld [vmem:[%s3483_s15 + $0x240] ss:$16 sps:$4 sm:$0xff]   ;;  %v5169_v54 = vld [vmem:[#allocation30_spill] sm:$0xff]  ;;  %v5171_v12 = vld [vmem:[#allocation24_spill] sm:$0xff]  ;;  %v484_v40 = vpop.xlane.xlu1 %483 }
 0x13b   : > { %v721_v13 = vadd.f32 %v635_v58, %v634_v51  ;;  %v4012_v31 = vsub.f32 %v5166_v2, %v517_v60  ;;  %v5168_v35 = vld [vmem:[#allocation27_spill] sm:$0xff]  ;;  %v4018_v27 = vsub.f32 %v5169_v54, %v517_v60  ;;  %v4021_v38 = vsub.f32 %v5171_v12, %v516_v56  ;;  %v480_v51 = vpop.xlane.xlu0 %479  ;;  %1769 = vmatpush2.bf16.msra.mxu0 %v2908_v3  ;;  %v5173_v45 = vld [vmem:[#allocation25_spill] sm:$0xff]  ;;  %v5174_v2 = vld [vmem:[#allocation28_spill] sm:$0xff] }
 0x13c   : > { %v4015_v25 = vsub.f32 %v5168_v35, %v517_v60  ;;  %v2914_v58 = vld [vmem:[%s3483_s15 + $0x140] ss:$16 sps:$4 sm:$0xff]   ;;  %v4025_v24 = vsub.f32 %v5173_v45, %v516_v56  ;;  %v4028_v43 = vsub.f32 %v5174_v2, %v516_v56  ;;  %v733_v35 = vadd.f32 %v644_v55, %v643_v59  ;;  %1915 = vmatprep.subr.bf16.mxu1 %v2909_v32  ;;  %v2915_v45 = vld [vmem:[%s3483_s15 + $0x224] ss:$16 sps:$4 sm:$0xff]  }
 0x13d   : > { %5167 = vst [vmem:[#allocation21_spill] sm:$0xff] %v4012_v31  ;;  %5170 = vst [vmem:[#allocation19_spill] sm:$0xff] %v4018_v27  ;;  %v722_v22 = vadd.f32 %v721_v13, %v636_v34  ;;  %727 = vadd.xlane.f32.xlu0 %v726_v63  ;;  %v640_v60 = vmul.f32 %v3941_v50, %v3941_v50  ;;  %v641_v54 = vmul.f32 %v3954_v46, %v3954_v46  ;;  %v2917_v63 = vld [vmem:[%s3483_s15 + $0x124] ss:$16 sps:$4 sm:$0xff]   ;;  %v5178_v50 = vld [vmem:[#allocation32_spill] sm:$0xff] }
 0x13e   : > { %5172 = vst [vmem:[#allocation22_spill] sm:$0xff] %v4021_v38  ;;  %5175 = vst [vmem:[#allocation23_spill] sm:$0xff] %v4028_v43  ;;  %v642_v3 = vmul.f32 %v3959_v49, %v3959_v49  ;;  %v519_v34 = vmul.f32 0.0026041667, %v484_v40  ;;  %1770 = vmatprep.subr.bf16.mxu0 %v2911_v30  ;;  %v734_v13 = vadd.f32 %v733_v35, %v645_v61  ;;  %v518_v56 = vmul.f32 0.0026041667, %v480_v51 }
 0x13f   : > { %723 = vadd.xlane.f32.xlu1 %v722_v22  ;;  %v649_v59 = vmul.f32 %v3974_v36, %v3974_v36  ;;  %v650_v32 = vmul.f32 %v3977_v18, %v3977_v18  ;;  %1916 = vmatpush1.bf16.msra.mxu1 %v2913_v44  ;;  %v729_v55 = vadd.f32 %v641_v54, %v640_v60  ;;  %v5176_v12 = vld [vmem:[#allocation31_spill] sm:$0xff]  ;;  %v5182_v61 = vld [vmem:[#allocation29_spill] sm:$0xff]  ;;  %v5185_v44 = vld [vmem:[#allocation34_spill] sm:$0xff] }
 0x140   : > { %v4043_v2 = vsub.f32 %v5176_v12, %v519_v34  ;;  %v4046_v40 = vsub.f32 %v5178_v50, %v519_v34  ;;  %v5180_v30 = vld [vmem:[#allocation35_spill] sm:$0xff]  ;;  %1771 = vmatpush2.bf16.msra.mxu0 %v2914_v58  ;;  %v4052_v51 = vsub.f32 %v5182_v61, %v518_v56  ;;  %v5184_v35 = vld [vmem:[#allocation33_spill] sm:$0xff]  ;;  %v4058_v18 = vsub.f32 %v5185_v44, %v518_v56 }
 0x141   : > { %v4049_v22 = vsub.f32 %v5180_v30, %v519_v34  ;;  %v4055_v36 = vsub.f32 %v5184_v35, %v518_v56  ;;  %v651_v60 = vmul.f32 %v3980_v17, %v3980_v17  ;;  %1917 = vmatprep.subr.bf16.mxu1 %v2915_v45  ;;  %v2919_v50 = vld [vmem:[%s3483_s15 + $0x220] ss:$16 sps:$4 sm:$0xff]   ;;  %735 = vadd.xlane.f32.xlu0 %v734_v13  ;;  %v2921_v35 = vld [vmem:[%s3483_s15 + $0x204] ss:$16 sps:$4 sm:$0xff]  }
 0x142   : > { %5177 = vst [vmem:[#allocation26_spill] sm:$0xff] %v4043_v2  ;;  %5179 = vst [vmem:[#allocation27_spill] sm:$0xff] %v4046_v40  ;;  %v730_v54 = vadd.f32 %v729_v55, %v642_v3  ;;  %v741_v34 = vadd.f32 %v650_v32, %v649_v59  ;;  %v646_v58 = vmul.f32 %v3985_v7, %v3985_v7  ;;  %1772 = vmatprep.subr.bf16.mxu0 %v2917_v63  ;;  %v2920_v13 = vld [vmem:[%s3483_s15 + $0x120] ss:$16 sps:$4 sm:$0xff]  }
 0x143   : > { %5181 = vst [vmem:[#allocation30_spill] sm:$0xff] %v4049_v22  ;;  %5183 = vst [vmem:[#allocation24_spill] sm:$0xff] %v4052_v51  ;;  %v647_v12 = vmul.f32 %v3988_v41, %v3988_v41  ;;  %v648_v30 = vmul.f32 %v3991_v16, %v3991_v16  ;;  %v655_v56 = vmul.f32 %v4012_v31, %v4012_v31  ;;  %1918 = vmatpush1.bf16.msra.mxu1 %v2919_v50 }
 0x144   : > { %5186 = vst [vmem:[#allocation25_spill] sm:$0xff] %v4058_v18  ;;  %v656_v45 = vmul.f32 %v4015_v25, %v4015_v25  ;;  %v657_v3 = vmul.f32 %v4018_v27, %v4018_v27  ;;  %731 = vadd.xlane.f32.xlu1 %v730_v54  ;;  %v742_v59 = vadd.f32 %v741_v34, %v651_v60  ;;  %v2923_v60 = vld [vmem:[%s3483_s15 + $0x104] ss:$16 sps:$4 sm:$0xff]   ;;  %v2925_v54 = vld [vmem:[%s3483_s15 + $0x200] ss:$16 sps:$4 sm:$0xff]  }
 0x145   : > { %v737_v32 = vadd.f32 %v647_v12, %v646_v58  ;;  %v652_v55 = vmul.f32 %v4021_v38, %v4021_v38  ;;  %v653_v61 = vmul.f32 %v4025_v24, %v4025_v24  ;;  %v654_v31 = vmul.f32 %v4028_v43, %v4028_v43  ;;  %1773 = vmatpush2.bf16.msra.mxu0 %v2920_v13  ;;  %v2926_v43 = vld [vmem:[%s3483_s15 + $0x100] ss:$16 sps:$4 sm:$0xff]   ;;  %v2929_v13 = vld [vmem:[%s3483_s15 + $0xec] ss:$16 sps:$4 sm:$0xff]  }
 0x146   : > { %v749_v44 = vadd.f32 %v656_v45, %v655_v56  ;;  %v661_v27 = vmul.f32 %v4043_v2, %v4043_v2  ;;  %v662_v63 = vmul.f32 %v4046_v40, %v4046_v40  ;;  %743 = vadd.xlane.f32.xlu0 %v742_v59  ;;  %v663_v12 = vmul.f32 %v4049_v22, %v4049_v22 }
 0x147   : > { %v738_v34 = vadd.f32 %v737_v32, %v648_v30  ;;  %v745_v58 = vadd.f32 %v653_v61, %v652_v55  ;;  %v658_v56 = vmul.f32 %v4052_v51, %v4052_v51  ;;  %v659_v2 = vmul.f32 %v4055_v36, %v4055_v36  ;;  %1919 = vmatprep.subr.bf16.mxu1 %v2921_v35 }
 0x148   : > { %v750_v45 = vadd.f32 %v749_v44, %v657_v3  ;;  %v757_v38 = vadd.f32 %v662_v63, %v661_v27  ;;  %v660_v30 = vmul.f32 %v4058_v18, %v4058_v18  ;;  %1774 = vmatprep.subr.bf16.mxu0 %v2923_v60  ;;  %1920 = vmatpush1.bf16.msra.mxu1 %v2925_v54  ;;  %v5060_v3 = vmov 0  }
 0x149   : > { %739 = vadd.xlane.f32.xlu1 %v738_v34  ;;  %v746_v50 = vadd.f32 %v745_v58, %v654_v31  ;;  %v753_v59 = vadd.f32 %v659_v2, %v658_v56  ;;  %1937 = vmatprep.mubr.bf16.mxu1 %v5060_v3  ;;  %v2944_v31 = vld [vmem:[%s3483_s15 + $0x2ec] ss:$16 sps:$4 sm:$0xff]   ;;  %v925_v63 = vlaneseq  ;;  %v5189_v58 = vld [vmem:[#allocation37_spill] sm:$0xff] }
 0x14a   : > { %751 = vadd.xlane.f32.xlu0 %v750_v45  ;;  %v758_v32 = vadd.f32 %v757_v38, %v663_v12  ;;  %1775 = vmatpush2.bf16.msra.mxu0 %v2926_v43  ;;  %v5187_v34 = vld [vmem:[#allocation36_spill] sm:$0xff] }
 0x14b   : > { %v754_v27 = vadd.f32 %v753_v59, %v660_v30  ;;  %2066 = vmatprep.subr.bf16.mxu1 %v2929_v13  ;;  %2227 = vmatprep.subr.bf16.mxu0 %v2944_v31  ;;  %v4110_v30 = vshrl.u32 %v925_v63, 7 }
 0x14d   : > { %747 = vadd.xlane.f32.xlu1 %v746_v50  ;;  %5192 = vst [vmem:[#allocation35_spill] sm:$0xff] %v4110_v30 }
 0x14e   : > { %759 = vadd.xlane.f32.xlu0 %v758_v32 }
 0x151   : > { %755 = vadd.xlane.f32.xlu1 %v754_v27 }
 0x1a5   : > { %v676_v55 = vpop.xlane.xlu0 %675 }
 0x1a6   : > { %v773_v61 = vmul.f32 0.0026041667, %v676_v55  ;;  %v5193_v55 = vld [vmem:[#allocation38_spill] sm:$0xff] }
 0x1a8   : > { %v798_v35 = vadd.f32 1e-06, %v773_v61 }
 0x1a9   : > { %v680_v2 = vpop.xlane.xlu1 %679  ;;  %v488_v44 = vpop.xlane.xlu0 %487 }
 0x1aa   : > { %2999 = vrsqrt.f32 %v798_v35  ;;  %v774_v38 = vmul.f32 0.0026041667, %v680_v2  ;;  %v520_v60 = vmul.f32 0.0026041667, %v488_v44 }
 0x1ac   : > { %v799_v54 = vadd.f32 1e-06, %v774_v38  ;;  %v4102_v43 = vsub.f32 %v5187_v34, %v520_v60  ;;  %v4105_v12 = vsub.f32 %v5189_v58, %v520_v60  ;;  %v4108_v56 = vsub.f32 %v3722_v11, %v520_v60  ;;  %v5195_v11 = vld [vmem:[#allocation39_spill] sm:$0xff] }
 0x1ad   : > { %v492_v45 = vpop.xlane.xlu1 %491  ;;  %v684_v50 = vpop.xlane.xlu0 %683  ;;  %v4131_v34 = vsub.s32 2, %v4110_v30 }
 0x1ae   : > { %5188 = vst [vmem:[#allocation28_spill] sm:$0xff] %v4102_v43  ;;  %5190 = vst [vmem:[#allocation31_spill] sm:$0xff] %v4105_v12  ;;  %3001 = vrsqrt.f32 %v799_v54  ;;  %v521_v59 = vmul.f32 0.0026041667, %v492_v45  ;;  %v775_v32 = vmul.f32 0.0026041667, %v684_v50  ;;  %v664_v27 = vmul.f32 %v4102_v43, %v4102_v43 }
 0x1af   : > { %5191 = vst [vmem:[#allocation32_spill] sm:$0xff] %v4108_v56  ;;  %v665_v13 = vmul.f32 %v4105_v12, %v4105_v12  ;;  %v666_v31 = vmul.f32 %v4108_v56, %v4108_v56  ;;  %v4128_v54 = vsub.s32 1, %v4110_v30  ;;  %5199 = vst [vmem:[#allocation37_spill] sm:$0xff] %v4131_v34 }
 0x1b0   : > { %v4119_v61 = vsub.f32 %v5193_v55, %v521_v59  ;;  %v4122_v35 = vsub.f32 %v5195_v11, %v521_v59  ;;  %v800_v2 = vadd.f32 1e-06, %v775_v32  ;;  %v4125_v44 = vsub.f32 %v3724_v42, %v521_v59  ;;  %v923_v55 = vld [vmem:[#allocation5] sm:$0x7]  ;;  %v5202_v11 = vld [vmem:[#allocation40_spill] sm:$0xff] }
 0x1b1   : > { %v688_v63 = vpop.xlane.xlu1 %687  ;;  %v496_v38 = vpop.xlane.xlu0 %495  ;;  %v761_v60 = vadd.f32 %v665_v13, %v664_v27  ;;  %5198 = vst [vmem:[#allocation36_spill] sm:$0xff] %v4128_v54  ;;  %v4138_v59 = vsub.s32 0, %v4110_v30  ;;  %v4152_v30 = vrot.slane %v923_v55, %v4128_v54 }
 0x1b2   : > { %5194 = vst [vmem:[#allocation29_spill] sm:$0xff] %v4119_v61  ;;  %5196 = vst [vmem:[#allocation33_spill] sm:$0xff] %v4122_v35  ;;  %3003 = vrsqrt.f32 %v800_v2  ;;  %v776_v58 = vmul.f32 0.0026041667, %v688_v63  ;;  %v522_v45 = vmul.f32 0.0026041667, %v496_v38  ;;  %v667_v50 = vmul.f32 %v4119_v61, %v4119_v61 }
 0x1b3   : > { %5197 = vst [vmem:[#allocation34_spill] sm:$0xff] %v4125_v44  ;;  %v762_v32 = vadd.f32 %v761_v60, %v666_v31  ;;  %v668_v42 = vmul.f32 %v4122_v35, %v4122_v35  ;;  %5200 = vst [vmem:[#allocation38_spill] sm:$0xff] %v4138_v59  ;;  %v669_v31 = vmul.f32 %v4125_v44, %v4125_v44 }
 0x1b4   : > { %v801_v27 = vadd.f32 1e-06, %v776_v58  ;;  %v4141_v13 = vsub.f32 %v3714_v33, %v522_v45  ;;  %v4144_v3 = vsub.f32 %v5202_v11, %v522_v45  ;;  %v4147_v2 = vsub.f32 %v3737_v26, %v522_v45  ;;  %v1015_v45 = vld [vmem:[#allocation7] sm:$0x7] }
 0x1b5   : > { %763 = vadd.xlane.f32.xlu1 %v762_v32  ;;  %v692_v63 = vpop.xlane.xlu1 %691  ;;  %v696_v38 = vpop.xlane.xlu0 %695  ;;  %v765_v60 = vadd.f32 %v668_v42, %v667_v50  ;;  %v4155_v58 = vrot.slane %v923_v55, %v4131_v34  ;;  %v4164_v42 = vrot.slane %v923_v55, %v4138_v59 }
 0x1b6   : > { %5201 = vst [vmem:[#allocation39_spill] sm:$0xff] %v4141_v13  ;;  %5203 = vst [vmem:[#allocation40_spill] sm:$0xff] %v4144_v3  ;;  %3005 = vrsqrt.f32 %v801_v27  ;;  %v777_v33 = vmul.f32 0.0026041667, %v692_v63  ;;  %v778_v11 = vmul.f32 0.0026041667, %v696_v38  ;;  %v670_v26 = vmul.f32 %v4141_v13, %v4141_v13 }
 0x1b7   : > { %5204 = vst [vmem:[#allocation61_spill] sm:$0xff] %v4147_v2  ;;  %v3000_v32 = vpop.eup %2999  ;;  %v766_v61 = vadd.f32 %v765_v60, %v669_v31  ;;  %v671_v35 = vmul.f32 %v4144_v3, %v4144_v3  ;;  %v672_v50 = vmul.f32 %v4147_v2, %v4147_v2  ;;  %v5205_v27 = vld [vmem:[#allocation42_spill] sm:$0xff]  ;;  %v5206_v38 = vld [vmem:[#allocation43_spill] sm:$0xff]  ;;  %v4169_v31 = vrot.slane %v1015_v45, %v4128_v54  ;;  %v5207_v60 = vld [vmem:[#allocation41_spill] sm:$0xff] }
 0x1b8   : > { %v802_v44 = vadd.f32 1e-06, %v777_v33  ;;  %v803_v43 = vadd.f32 1e-06, %v778_v11  ;;  %v849_v63 = vmul.f32 %v3000_v32, %v5205_v27  ;;  %v850_v56 = vmul.f32 %v3000_v32, %v5206_v38 }
 0x1b9   : > { %767 = vadd.xlane.f32.xlu0 %v766_v61  ;;  %v704_v12 = vpop.xlane.xlu0 %703  ;;  %v769_v51 = vadd.f32 %v671_v35, %v670_v26  ;;  %v848_v3 = vmul.f32 %v3000_v32, %v5207_v60  ;;  %v4175_v61 = vrot.slane %v1015_v45, %v4131_v34  ;;  %v4180_v32 = vrot.slane %v1015_v45, %v4138_v59  ;;  %v5211_v34 = vld [vmem:[#allocation44_spill] sm:$0xff] }
 0x1ba   : > { %v700_v13 = vpop.xlane.xlu1 %699  ;;  %3007 = vrsqrt.f32 %v802_v44  ;;  %v780_v22 = vmul.f32 0.0026041667, %v704_v12  ;;  %v941_v55 = vmul.f32 %v4152_v30, %v849_v63  ;;  %v942_v27 = vmul.f32 %v4155_v58, %v850_v56 }
 0x1bb   : > { %v779_v2 = vmul.f32 0.0026041667, %v700_v13  ;;  %v3002_v33 = vpop.eup %3001  ;;  %3009 = vrsqrt.f32 %v803_v43  ;;  %v770_v11 = vadd.f32 %v769_v51, %v672_v50  ;;  %v940_v26 = vmul.f32 %v4164_v42, %v848_v3  ;;  %v5208_v43 = vld [vmem:[#allocation47_spill] sm:$0xff] }
 0x1bc   : > { %v852_v35 = vmul.f32 %v3002_v33, %v3765_v9  ;;  %v853_v13 = vmul.f32 %v3002_v33, %v3768_v10  ;;  %v851_v51 = vmul.f32 %v3002_v33, %v5208_v43  ;;  %v805_v50 = vadd.f32 1e-06, %v780_v22  ;;  %v5209_v33 = vld [vmem:[#allocation45_spill] sm:$0xff] }
 0x1bd   : > { %v804_v38 = vadd.f32 1e-06, %v779_v2  ;;  %771 = vadd.xlane.f32.xlu1 %v770_v11  ;;  %v1033_v2 = vadd.f32 %v4169_v31, %v941_v55  ;;  %v1034_v45 = vadd.f32 %v4175_v61, %v942_v27  ;;  %v1032_v22 = vadd.f32 %v4180_v32, %v940_v26  ;;  %v2932_v26 = vld [vmem:[%s3483_s15 + $0xcc] ss:$16 sps:$4 sm:$0xff]  }
 0x1be   : > { %v708_v12 = vpop.xlane.xlu1 %707  ;;  %v712_v44 = vpop.xlane.xlu0 %711  ;;  %v944_v63 = vmul.f32 %v4152_v30, %v852_v35  ;;  %v945_v3 = vmul.f32 %v4155_v58, %v853_v13  ;;  %v943_v11 = vmul.f32 %v4164_v42, %v851_v51  ;;  %v5210_v13 = vld [vmem:[#allocation46_spill] sm:$0xff] }
 0x1bf   : > { %v781_v56 = vmul.f32 0.0026041667, %v708_v12  ;;  %v3004_v60 = vpop.eup %3003  ;;  %v782_v9 = vmul.f32 0.0026041667, %v712_v44  ;;  %3011 = vrsqrt.f32 %v804_v38 }
 0x1c0   : > { %v1036_v10 = vadd.f32 %v4169_v31, %v944_v63  ;;  %v855_v12 = vmul.f32 %v3004_v60, %v5209_v33  ;;  %v1037_v55 = vadd.f32 %v4175_v61, %v945_v3  ;;  %v1035_v44 = vadd.f32 %v4180_v32, %v943_v11  ;;  %v2927_v63 = vld [vmem:[%s3483_s15 + $0xe8] ss:$16 sps:$4 sm:$0xff]  }
 0x1c1   : > { %v856_v43 = vmul.f32 %v3004_v60, %v5210_v13  ;;  %v854_v27 = vmul.f32 %v3004_v60, %v5211_v34  ;;  %3013 = vrsqrt.f32 %v805_v50  ;;  %v806_v51 = vadd.f32 1e-06, %v781_v56  ;;  %v4205_v11 = vld [vmem:[%s3483_s15 + $0x2e8] ss:$16 sps:$4 sm:$0xff]  }
 0x1c2   : > { %v720_v35 = vpop.xlane.xlu0 %719  ;;  %v4196_v54 = vpack.c.bf16 %v1036_v10, %v1033_v2  ;;  %v807_v33 = vadd.f32 1e-06, %v782_v9  ;;  %v4200_v40 = vpack.c.bf16 %v1037_v55, %v1034_v45  ;;  %v4202_v3 = vpack.c.bf16 %v1035_v44, %v1032_v22  ;;  %5215 = vst [vmem:[#allocation47_spill] sm:$0xff] %v4205_v11  ;;  %v4212_v2 = vld [vmem:[%s3483_s15 + $0x2cc] ss:$16 sps:$4 sm:$0xff]  }
 0x1c3   : > { %v716_v38 = vpop.xlane.xlu1 %715  ;;  %v3006_v59 = vpop.eup %3005  ;;  %v784_v18 = vmul.f32 0.0026041667, %v720_v35  ;;  %v947_v50 = vmul.f32 %v4152_v30, %v855_v12  ;;  %5216 = vst [vmem:[#allocation45_spill] sm:$0xff] %v4212_v2  ;;  %v948_v9 = vmul.f32 %v4155_v58, %v856_v43  ;;  %v5217_v45 = vld [vmem:[#allocation48_spill] sm:$0xff]  ;;  %v946_v22 = vmul.f32 %v4164_v42, %v854_v27 }
 0x1c4   : > { %5212 = vst [vmem:[#allocation42_spill] sm:$0xff] %v4196_v54  ;;  %5213 = vst [vmem:[#allocation43_spill] sm:$0xff] %v4200_v40  ;;  %1776 = vmatprep.mubr.bf16.mxu0 %v4196_v54  ;;  %v858_v34 = vmul.f32 %v3006_v59, %v3780_v5  ;;  %v859_v56 = vmul.f32 %v3006_v59, %v3783_v6  ;;  %1938 = vmatmul.mubr.bf16.vlgmr.msra.gmra.mxu1 %v4200_v40  ;;  %3015 = vrsqrt.f32 %v806_v51  ;;  %v5218_v35 = vmov 0   ;;  %v2930_v44 = vld [vmem:[%s3483_s15 + $0xc8] ss:$16 sps:$4 sm:$0xff]  }
 0x1c5   : > { %5214 = vst [vmem:[#allocation41_spill] sm:$0xff] %v4202_v3  ;;  %1777 = vmatmul.mubr.bf16.vlgmr.msra.gmra.mxu0 %v4202_v3  ;;  %v857_v10 = vmul.f32 %v3006_v59, %v5217_v45  ;;  %v783_v5 = vmul.f32 0.0026041667, %v716_v38  ;;  %1947 = vmatprep.mubr.bf16.mxu1 %v5218_v35  ;;  %3017 = vrsqrt.f32 %v807_v33  ;;  %v809_v43 = vadd.f32 1e-06, %v784_v18 }
 0x1c6   : > { %v728_v60 = vpop.xlane.xlu0 %727  ;;  %v950_v6 = vmul.f32 %v4152_v30, %v858_v34  ;;  %v951_v55 = vmul.f32 %v4155_v58, %v859_v56  ;;  %2067 = vmatpush1.bf16.msra.mxu1 %v2927_v63  ;;  %v2935_v27 = vld [vmem:[%s3483_s15 + $0xac] ss:$16 sps:$4 sm:$0xff]   ;;  %2228 = vmatpush1.bf16.msra.mxu0 %v4205_v11  ;;  %v4227_v51 = vld [vmem:[%s3483_s15 + $0x2c8] ss:$16 sps:$4 sm:$0xff]   ;;  %v1039_v45 = vadd.f32 %v4169_v31, %v947_v50 }
 0x1c7   : > { %v3008_v13 = vpop.eup %3007  ;;  %v949_v59 = vmul.f32 %v4164_v42, %v857_v10  ;;  %2068 = vmatprep.subr.bf16.mxu1 %v2932_v26  ;;  %v1040_v63 = vadd.f32 %v4175_v61, %v948_v9  ;;  %2229 = vmatprep.subr.bf16.mxu0 %v4212_v2  ;;  %v4235_v18 = vld [vmem:[%s3483_s15 + $0x2ac] ss:$16 sps:$4 sm:$0xff]   ;;  %v1038_v33 = vadd.f32 %v4180_v32, %v946_v22  ;;  %v808_v11 = vadd.f32 1e-06, %v783_v5  ;;  %v2933_v2 = vld [vmem:[%s3483_s15 + $0xa8] ss:$16 sps:$4 sm:$0xff]  }
 0x1c8   : > { %v724_v12 = vpop.xlane.xlu1 %723  ;;  %v3010_v38 = vpop.eup %3009  ;;  %v1042_v34 = vadd.f32 %v4169_v31, %v950_v6  ;;  %v1043_v56 = vadd.f32 %v4175_v61, %v951_v55  ;;  %v861_v40 = vmul.f32 %v3008_v13, %v3799_v57  ;;  %v786_v6 = vmul.f32 0.0026041667, %v728_v60  ;;  %v2938_v57 = vld [vmem:[%s3483_s15 + $0x8c] ss:$16 sps:$4 sm:$0xff]  }
 0x1c9   : > { %v1041_v10 = vadd.f32 %v4180_v32, %v949_v59  ;;  %v864_v50 = vmul.f32 %v3010_v38, %v3808_v37  ;;  %v785_v37 = vmul.f32 0.0026041667, %v724_v12  ;;  %v862_v60 = vmul.f32 %v3008_v13, %v3802_v8 }
 0x1ca   : > { %v736_v26 = vpop.xlane.xlu0 %735  ;;  %v4241_v9 = vpack.c.bf16 %v1042_v34, %v1039_v45  ;;  %v4243_v55 = vpack.c.bf16 %v1043_v56, %v1040_v63  ;;  %2069 = vmatpush1.bf16.msra.mxu1 %v2930_v44  ;;  %v953_v22 = vmul.f32 %v4152_v30, %v861_v40  ;;  %2230 = vmatpush1.bf16.msra.mxu0 %v4227_v51  ;;  %v4256_v44 = vld [vmem:[%s3483_s15 + $0x2a8] ss:$16 sps:$4 sm:$0xff]   ;;  %3019 = vrsqrt.f32 %v809_v43  ;;  %v4270_v63 = vld [vmem:[%s3483_s15 + $0x28c] ss:$16 sps:$4 sm:$0xff]  }
 0x1cb   : > { %v4246_v54 = vpack.c.bf16 %v1041_v10, %v1038_v33  ;;  %v956_v59 = vmul.f32 %v4152_v30, %v864_v50  ;;  %2070 = vmatprep.subr.bf16.mxu1 %v2935_v27  ;;  %v865_v5 = vmul.f32 %v3010_v38, %v3811_v53  ;;  %2231 = vmatprep.subr.bf16.mxu0 %v4235_v18  ;;  %v2936_v53 = vld [vmem:[%s3483_s15 + $0x88] ss:$16 sps:$4 sm:$0xff]   ;;  %3021 = vrsqrt.f32 %v808_v11 }
 0x1cc   : > { %1786 = vmatprep.mubr.bf16.mxu0 %v4241_v9  ;;  %v4259_v40 = vpop.eup %3011  ;;  %1948 = vmatmul.mubr.bf16.gmra.mxu1 %v4243_v55  ;;  %v1045_v12 = vadd.f32 %v4169_v31, %v953_v22  ;;  %v860_v8 = vmul.f32 %v3008_v13, %v3796_v62  ;;  %v811_v45 = vadd.f32 1e-06, %v786_v6  ;;  %v788_v34 = vmul.f32 0.0026041667, %v736_v26  ;;  %v2941_v13 = vld [vmem:[%s3483_s15 + $0x6c] ss:$16 sps:$4 sm:$0xff]  }
 0x1cd   : > { %v732_v3 = vpop.xlane.xlu1 %731  ;;  %1787 = vmatmul.mubr.bf16.gmra.mxu0 %v4246_v54  ;;  %v1048_v27 = vadd.f32 %v4169_v31, %v956_v59  ;;  %1957 = vmatprep.mubr.bf16.mxu1 %v5218_v35  ;;  %v954_v43 = vmul.f32 %v4155_v58, %v862_v60  ;;  %v957_v50 = vmul.f32 %v4155_v58, %v865_v5  ;;  %v810_v26 = vadd.f32 1e-06, %v785_v37 }
 0x1ce   : > { %2071 = vmatpush1.bf16.msra.mxu1 %v2933_v2  ;;  %v3014_v56 = vpop.eup %3013  ;;  %v863_v62 = vmul.f32 %v3010_v38, %v3805_v19  ;;  %v952_v11 = vmul.f32 %v4164_v42, %v860_v8  ;;  %v787_v6 = vmul.f32 0.0026041667, %v732_v3  ;;  %2232 = vmatpush1.bf16.msra.mxu0 %v4256_v44  ;;  %v4281_v2 = vld [vmem:[%s3483_s15 + $0x288] ss:$16 sps:$4 sm:$0xff]   ;;  %3023 = vrsqrt.f32 %v811_v45  ;;  %v2947_v45 = vld [vmem:[%s3483_s15 + $0x4c] ss:$16 sps:$4 sm:$0xff]  }
 0x1cf   : > { %v744_v33 = vpop.xlane.xlu0 %743  ;;  %v4272_v10 = vpack.c.bf16 %v1048_v27, %v1045_v12  ;;  %2072 = vmatprep.subr.bf16.mxu1 %v2938_v57  ;;  %v1046_v22 = vadd.f32 %v4175_v61, %v954_v43  ;;  %v1049_v60 = vadd.f32 %v4175_v61, %v957_v50  ;;  %v867_v57 = vmul.f32 %v4259_v40, %v3825_v0  ;;  %v2939_v12 = vld [vmem:[%s3483_s15 + $0x68] ss:$16 sps:$4 sm:$0xff]  }
 0x1d0   : > { %v955_v19 = vmul.f32 %v4164_v42, %v863_v62  ;;  %v1044_v38 = vadd.f32 %v4180_v32, %v952_v11  ;;  %v813_v3 = vadd.f32 1e-06, %v788_v34  ;;  %v790_v37 = vmul.f32 0.0026041667, %v744_v33  ;;  %2233 = vmatprep.subr.bf16.mxu0 %v4270_v63  ;;  %v4304_v62 = vld [vmem:[%s3483_s15 + $0x26c] ss:$16 sps:$4 sm:$0xff]  }
 0x1d1   : > { %1796 = vmatprep.mubr.bf16.mxu0 %v4272_v10  ;;  %v870_v5 = vmul.f32 %v3014_v56, %v3834_v14  ;;  %v4292_v27 = vpop.eup %3015  ;;  %v4294_v8 = vpack.c.bf16 %v1049_v60, %v1046_v22  ;;  %v959_v50 = vmul.f32 %v4152_v30, %v867_v57  ;;  %v868_v0 = vmul.f32 %v4259_v40, %v3828_v47  ;;  %v2945_v60 = vld [vmem:[%s3483_s15 + $0x48] ss:$16 sps:$4 sm:$0xff]  }
 0x1d2   : > { %v740_v59 = vpop.xlane.xlu1 %739  ;;  %2073 = vmatpush1.bf16.msra.mxu1 %v2936_v53  ;;  %v1047_v43 = vadd.f32 %v4180_v32, %v955_v19  ;;  %v3018_v14 = vpop.eup %3017  ;;  %3025 = vrsqrt.f32 %v810_v26  ;;  %v812_v53 = vadd.f32 1e-06, %v787_v6  ;;  %2234 = vmatpush1.bf16.msra.mxu0 %v4281_v2  ;;  %v871_v47 = vmul.f32 %v3014_v56, %v3837_v15  ;;  %v4313_v26 = vld [vmem:[%s3483_s15 + $0x268] ss:$16 sps:$4 sm:$0xff]  }
 0x1d3   : > { %2074 = vmatprep.subr.bf16.mxu1 %v2941_v13  ;;  %v789_v34 = vmul.f32 0.0026041667, %v740_v59  ;;  %v962_v33 = vmul.f32 %v4152_v30, %v870_v5  ;;  %v1051_v22 = vadd.f32 %v4169_v31, %v959_v50  ;;  %v960_v13 = vmul.f32 %v4155_v58, %v868_v0  ;;  %v752_v19 = vpop.xlane.xlu0 %751  ;;  %v5219_v5 = vld [vmem:[#allocation49_spill] sm:$0xff]  ;;  %2235 = vmatprep.subr.bf16.mxu0 %v4304_v62 }
 0x1d4   : > { %1958 = vmatmul.mubr.bf16.gmra.mxu1 %v4294_v8  ;;  %v4307_v11 = vpack.c.bf16 %v1047_v43, %v1044_v38  ;;  %3027 = vrsqrt.f32 %v813_v3  ;;  %v815_v6 = vadd.f32 1e-06, %v790_v37  ;;  %v963_v38 = vmul.f32 %v4155_v58, %v871_v47  ;;  %v2950_v3 = vld [vmem:[%s3483_s15 + $0x2c] ss:$16 sps:$4 sm:$0xff]  }
 0x1d5   : > { %v1054_v59 = vadd.f32 %v4169_v31, %v962_v33  ;;  %1967 = vmatprep.mubr.bf16.mxu1 %v5218_v35  ;;  %v1052_v57 = vadd.f32 %v4175_v61, %v960_v13  ;;  %v866_v15 = vmul.f32 %v4259_v40, %v3822_v29  ;;  %v869_v43 = vmul.f32 %v3014_v56, %v5219_v5 }
 0x1d6   : > { %2075 = vmatpush1.bf16.msra.mxu1 %v2939_v12  ;;  %1797 = vmatmul.mubr.bf16.gmra.mxu0 %v4307_v11  ;;  %3029 = vrsqrt.f32 %v812_v53  ;;  %v814_v37 = vadd.f32 1e-06, %v789_v34  ;;  %v748_v12 = vpop.xlane.xlu1 %747  ;;  %v1055_v0 = vadd.f32 %v4175_v61, %v963_v38  ;;  %v873_v29 = vmul.f32 %v4292_v27, %v3854_v21 }
 0x1d7   : > { %v4325_v50 = vpack.c.bf16 %v1054_v59, %v1051_v22  ;;  %2076 = vmatprep.subr.bf16.mxu1 %v2947_v45  ;;  %v958_v33 = vmul.f32 %v4164_v42, %v866_v15  ;;  %v961_v47 = vmul.f32 %v4164_v42, %v869_v43  ;;  %2236 = vmatpush1.bf16.msra.mxu0 %v4313_v26  ;;  %v3020_v40 = vpop.eup %3019  ;;  %3031 = vrsqrt.f32 %v815_v6  ;;  %v2956_v43 = vld [vmem:[%s3483_s15 + $0xc] ss:$16 sps:$4 sm:$0xff]  }
 0x1d8   : > { %v792_v56 = vmul.f32 0.0026041667, %v752_v19  ;;  %v876_v45 = vmul.f32 %v3018_v14, %v3863_v1  ;;  %v874_v53 = vmul.f32 %v4292_v27, %v3857_v48  ;;  %v3022_v34 = vpop.eup %3021  ;;  %v4338_v22 = vpack.c.bf16 %v1055_v0, %v1052_v57  ;;  %v2948_v48 = vld [vmem:[%s3483_s15 + $0x28] ss:$16 sps:$4 sm:$0xff]  }
 0x1d9   : > { %1806 = vmatprep.mubr.bf16.mxu0 %v4325_v50  ;;  %v1050_v21 = vadd.f32 %v4180_v32, %v958_v33  ;;  %v1053_v13 = vadd.f32 %v4180_v32, %v961_v47  ;;  %v965_v6 = vmul.f32 %v4152_v30, %v873_v29  ;;  %v791_v59 = vmul.f32 0.0026041667, %v748_v12 }
 0x1da   : > { %2077 = vmatpush1.bf16.msra.mxu1 %v2945_v60  ;;  %v968_v19 = vmul.f32 %v4152_v30, %v876_v45  ;;  %v877_v1 = vmul.f32 %v3018_v14, %v3866_v20  ;;  %v966_v38 = vmul.f32 %v4155_v58, %v874_v53  ;;  %v872_v15 = vmul.f32 %v4292_v27, %v3851_v4 }
 0x1db   : > { %2078 = vmatprep.subr.bf16.mxu1 %v2950_v3  ;;  %v4348_v60 = vpack.c.bf16 %v1053_v13, %v1050_v21  ;;  %v1057_v57 = vadd.f32 %v4169_v31, %v965_v6  ;;  %v875_v5 = vmul.f32 %v3018_v14, %v3860_v23  ;;  %v879_v0 = vmul.f32 %v3022_v34, %v3882_v28  ;;  %v4360_v33 = vpop.eup %3023  ;;  %v5220_v28 = vld [vmem:[#allocation52_spill] sm:$0xff]  ;;  %v760_v6 = vpop.xlane.xlu0 %759 }
 0x1dc   : > { %1968 = vmatmul.mubr.bf16.gmra.mxu1 %v4338_v22  ;;  %v1060_v3 = vadd.f32 %v4169_v31, %v968_v19  ;;  %v969_v20 = vmul.f32 %v4155_v58, %v877_v1  ;;  %v1058_v12 = vadd.f32 %v4175_v61, %v966_v38  ;;  %v964_v4 = vmul.f32 %v4164_v42, %v872_v15  ;;  %v2954_v21 = vld [vmem:[%s3483_s15 + $0x8] ss:$16 sps:$4 sm:$0xff]  }
 0x1dd   : > { %1977 = vmatprep.mubr.bf16.mxu1 %v5218_v35  ;;  %v967_v23 = vmul.f32 %v4164_v42, %v875_v5  ;;  %v882_v27 = vmul.f32 %v3020_v40, %v3889_v39  ;;  %v880_v14 = vmul.f32 %v3022_v34, %v3895_v52  ;;  %v971_v45 = vmul.f32 %v4152_v30, %v879_v0  ;;  %v4377_v52 = vld [vmem:[%s3483_s15 + $0x24c] ss:$16 sps:$4 sm:$0xff]   ;;  %v5223_v0 = vld [vmem:[#allocation51_spill] sm:$0xff] }
 0x1de   : > { %1807 = vmatmul.mubr.bf16.gmra.mxu0 %v4348_v60  ;;  %v4367_v47 = vpack.c.bf16 %v1060_v3, %v1057_v57  ;;  %v1061_v29 = vadd.f32 %v4175_v61, %v969_v20  ;;  %v883_v53 = vmul.f32 %v3020_v40, %v5220_v28  ;;  %2079 = vmatpush1.bf16.msra.mxu1 %v2948_v48  ;;  %3033 = vrsqrt.f32 %v814_v37  ;;  %v5221_v15 = vld [vmem:[#allocation50_spill] sm:$0xff] }
 0x1df   : > { %v3026_v13 = vpop.eup %3025  ;;  %v1056_v19 = vadd.f32 %v4180_v32, %v964_v4  ;;  %v1059_v1 = vadd.f32 %v4180_v32, %v967_v23  ;;  %v974_v39 = vmul.f32 %v4152_v30, %v882_v27  ;;  %2080 = vmatprep.subr.bf16.mxu1 %v2956_v43  ;;  %v817_v38 = vadd.f32 1e-06, %v792_v56  ;;  %2237 = vmatprep.subr.bf16.mxu0 %v4377_v52  ;;  %v5224_v27 = vld [vmem:[#allocation54_spill] sm:$0xff] }
 0x1e0   : > { %1816 = vmatprep.mubr.bf16.mxu0 %v4367_v47  ;;  %v1063_v57 = vadd.f32 %v4169_v31, %v971_v45  ;;  %v972_v48 = vmul.f32 %v4155_v58, %v880_v14  ;;  %v878_v5 = vmul.f32 %v3022_v34, %v5221_v15  ;;  %v4385_v3 = vpack.c.bf16 %v1061_v29, %v1058_v12  ;;  %v5225_v45 = vld [vmem:[#allocation56_spill] sm:$0xff]  ;;  %v756_v29 = vpop.xlane.xlu1 %755 }
 0x1e1   : > { %v4383_v37 = vpop.eup %3027  ;;  %v1066_v20 = vadd.f32 %v4169_v31, %v974_v39  ;;  %v975_v43 = vmul.f32 %v4155_v58, %v883_v53  ;;  %v881_v4 = vmul.f32 %v3020_v40, %v5223_v0  ;;  %v816_v56 = vadd.f32 1e-06, %v791_v59  ;;  %v2959_v53 = vld [vmem:[%s3483_s15 + $0x1ec] ss:$16 sps:$4 sm:$0xff]   ;;  %v2957_v15 = vld [vmem:[%s3483_s15 + $0x1e8] ss:$16 sps:$4 sm:$0xff]  }
 0x1e2   : > { %5222 = vst [vmem:[#allocation46_spill] sm:$0xff] %v4385_v3  ;;  %v794_v23 = vmul.f32 0.0026041667, %v760_v6  ;;  %v885_v14 = vmul.f32 %v3026_v13, %v5224_v27  ;;  %v888_v34 = vmul.f32 %v4360_v33, %v5225_v45  ;;  %2081 = vmatpush1.bf16.msra.mxu1 %v2954_v21  ;;  %v4397_v28 = vpack.c.bf16 %v1059_v1, %v1056_v19  ;;  %v4419_v45 = vld [vmem:[%s3483_s15 + $0x248] ss:$16 sps:$4 sm:$0xff]  }
 0x1e3   : > { %v4394_v12 = vpop.eup %3029  ;;  %v970_v40 = vmul.f32 %v4164_v42, %v878_v5  ;;  %v973_v59 = vmul.f32 %v4164_v42, %v881_v4  ;;  %3035 = vrsqrt.f32 %v817_v38  ;;  %v4402_v6 = vpack.c.bf16 %v1066_v20, %v1063_v57  ;;  %v5228_v5 = vld [vmem:[#allocation58_spill] sm:$0xff]  ;;  %v5229_v57 = vld [vmem:[#allocation57_spill] sm:$0xff]  ;;  %2082 = vmatprep.subr.bf16.mxu1 %v2959_v53  ;;  %2238 = vmatpush1.bf16.msra.mxu0 %v4419_v45 }
 0x1e4   : > { %1978 = vmatmul.mubr.bf16.gmra.mxu1 %v4385_v3  ;;  %5226 = vst [vmem:[#allocation44_spill] sm:$0xff] %v4397_v28  ;;  %v977_v21 = vmul.f32 %v4152_v30, %v885_v14  ;;  %v980_v39 = vmul.f32 %v4152_v30, %v888_v34  ;;  %v4408_v0 = vpop.eup %3031  ;;  %v1064_v19 = vadd.f32 %v4175_v61, %v972_v48  ;;  %v2965_v4 = vld [vmem:[%s3483_s15 + $0x1cc] ss:$16 sps:$4 sm:$0xff]   ;;  %3037 = vrsqrt.f32 %v816_v56  ;;  %v5230_v48 = vld [vmem:[#allocation53_spill] sm:$0xff] }
 0x1e5   : > { %5227 = vst [vmem:[#allocation48_spill] sm:$0xff] %v4402_v6  ;;  %1987 = vmatprep.mubr.bf16.mxu1 %v5218_v35  ;;  %v1067_v1 = vadd.f32 %v4175_v61, %v975_v43  ;;  %v886_v38 = vmul.f32 %v3026_v13, %v5228_v5  ;;  %v889_v20 = vmul.f32 %v4360_v33, %v5229_v57  ;;  %v793_v27 = vmul.f32 0.0026041667, %v756_v29  ;;  %v5231_v43 = vld [vmem:[#allocation55_spill] sm:$0xff]  ;;  %v5232_v29 = vld [vmem:[#allocation17_spill] sm:$0xff] }
 0x1e6   : > { %1817 = vmatmul.mubr.bf16.gmra.mxu0 %v4397_v28  ;;  %v819_v14 = vadd.f32 1e-06, %v794_v23  ;;  %v1062_v34 = vadd.f32 %v4180_v32, %v970_v40  ;;  %v1065_v3 = vadd.f32 %v4180_v32, %v973_v59  ;;  %v884_v28 = vmul.f32 %v3026_v13, %v5230_v48  ;;  %2083 = vmatpush2.bf16.msra.mxu1 %v2957_v15  ;;  %v4461_v48 = vld [vmem:[%s3483_s15 + $0x228] ss:$16 sps:$4 sm:$0xff]  }
 0x1e7   : > { %1826 = vmatprep.mubr.bf16.mxu0 %v4402_v6  ;;  %v887_v5 = vmul.f32 %v4360_v33, %v5231_v43  ;;  %v1069_v57 = vadd.f32 %v4169_v31, %v977_v21  ;;  %v1072_v56 = vadd.f32 %v4169_v31, %v980_v39  ;;  %v891_v23 = vmul.f32 %v4394_v12, %v3954_v46  ;;  %v2963_v39 = vld [vmem:[%s3483_s15 + $0x1c8] ss:$16 sps:$4 sm:$0xff]  }
 0x1e8   : > { %v894_v6 = vmul.f32 %v4383_v37, %v5232_v29  ;;  %v4432_v40 = vpack.c.bf16 %v1067_v1, %v1064_v19  ;;  %v978_v13 = vmul.f32 %v4155_v58, %v886_v38  ;;  %v981_v33 = vmul.f32 %v4155_v58, %v889_v20  ;;  %2084 = vmatprep.subr.bf16.mxu1 %v2965_v4  ;;  %v2968_v20 = vld [vmem:[%s3483_s15 + $0x1ac] ss:$16 sps:$4 sm:$0xff]  }
 0x1e9   : > { %v818_v59 = vadd.f32 1e-06, %v793_v27  ;;  %v4438_v53 = vpack.c.bf16 %v1065_v3, %v1062_v34  ;;  %v976_v46 = vmul.f32 %v4164_v42, %v884_v28  ;;  %v979_v21 = vmul.f32 %v4164_v42, %v887_v5  ;;  %v5233_v27 = vld [vmem:[#allocation20_spill] sm:$0xff]  ;;  %v5234_v5 = vld [vmem:[#allocation59_spill] sm:$0xff] }
 0x1ea   : > { %3039 = vrsqrt.f32 %v819_v14  ;;  %v4443_v19 = vpack.c.bf16 %v1072_v56, %v1069_v57  ;;  %v983_v1 = vmul.f32 %v4152_v30, %v891_v23  ;;  %v986_v38 = vmul.f32 %v4152_v30, %v894_v6  ;;  %v4457_v34 = vld [vmem:[%s3483_s15 + $0x22c] ss:$16 sps:$4 sm:$0xff]   ;;  %2085 = vmatpush2.bf16.msra.mxu1 %v2963_v39 }
 0x1eb   : > { %v3034_v15 = vpop.eup %3033  ;;  %v1070_v3 = vadd.f32 %v4175_v61, %v978_v13  ;;  %v1073_v28 = vadd.f32 %v4175_v61, %v981_v33  ;;  %v892_v4 = vmul.f32 %v4394_v12, %v3959_v49  ;;  %v895_v14 = vmul.f32 %v4383_v37, %v5233_v27  ;;  %v5235_v56 = vld [vmem:[#allocation60_spill] sm:$0xff]  ;;  %v5236_v33 = vld [vmem:[#allocation18_spill] sm:$0xff]  ;;  %2086 = vmatprep.subr.bf16.mxu1 %v2968_v20 }
 0x1ec   : > { %1988 = vmatmul.mubr.bf16.gmra.mxu1 %v4432_v40  ;;  %3041 = vrsqrt.f32 %v818_v59  ;;  %v1068_v6 = vadd.f32 %v4180_v32, %v976_v46  ;;  %v1071_v43 = vadd.f32 %v4180_v32, %v979_v21  ;;  %v890_v57 = vmul.f32 %v4394_v12, %v5234_v5  ;;  %2239 = vmatprep.subr.bf16.mxu0 %v4457_v34  ;;  %v2966_v20 = vld [vmem:[%s3483_s15 + $0x1a8] ss:$16 sps:$4 sm:$0xff]   ;;  %v2974_v27 = vld [vmem:[%s3483_s15 + $0x18c] ss:$16 sps:$4 sm:$0xff]  }
 0x1ed   : > { %1997 = vmatprep.mubr.bf16.mxu1 %v5218_v35  ;;  %v893_v49 = vmul.f32 %v4383_v37, %v5235_v56  ;;  %v1075_v23 = vadd.f32 %v4169_v31, %v983_v1  ;;  %v1078_v29 = vadd.f32 %v4169_v31, %v986_v38  ;;  %v897_v13 = vmul.f32 %v3034_v15, %v3988_v41 }
 0x1ee   : > { %1827 = vmatmul.mubr.bf16.gmra.mxu0 %v4438_v53  ;;  %v900_v59 = vmul.f32 %v4408_v0, %v5236_v33  ;;  %v4476_v21 = vpack.c.bf16 %v1073_v28, %v1070_v3  ;;  %v984_v12 = vmul.f32 %v4155_v58, %v892_v4  ;;  %v987_v37 = vmul.f32 %v4155_v58, %v895_v14 }
 0x1ef   : > { %1836 = vmatprep.mubr.bf16.mxu0 %v4443_v19  ;;  %2240 = vmatpush1.bf16.msra.mxu0 %v4461_v48  ;;  %v4483_v41 = vpack.c.bf16 %v1071_v43, %v1068_v6  ;;  %v982_v1 = vmul.f32 %v4164_v42, %v890_v57  ;;  %v985_v38 = vmul.f32 %v4164_v42, %v893_v49  ;;  %v4501_v57 = vld [vmem:[%s3483_s15 + $0x20c] ss:$16 sps:$4 sm:$0xff]  }
 0x1f0   : > { %v4474_v46 = vpop.eup %3035  ;;  %v4488_v3 = vpack.c.bf16 %v1078_v29, %v1075_v23  ;;  %v989_v28 = vmul.f32 %v4152_v30, %v897_v13  ;;  %v992_v4 = vmul.f32 %v4152_v30, %v900_v59  ;;  %v1076_v14 = vadd.f32 %v4175_v61, %v984_v12  ;;  %v5237_v49 = vld [vmem:[#allocation16_spill] sm:$0xff]  ;;  %2087 = vmatpush2.bf16.msra.mxu1 %v2966_v20 }
 0x1f1   : > { %v3038_v39 = vpop.eup %3037  ;;  %v1079_v6 = vadd.f32 %v4175_v61, %v987_v37  ;;  %v898_v43 = vmul.f32 %v3034_v15, %v3991_v16  ;;  %v901_v5 = vmul.f32 %v4408_v0, %v3980_v17  ;;  %v896_v56 = vmul.f32 %v3034_v15, %v3985_v7  ;;  %v4508_v29 = vld [vmem:[%s3483_s15 + $0x208] ss:$16 sps:$4 sm:$0xff]   ;;  %2088 = vmatprep.subr.bf16.mxu1 %v2974_v27 }
 0x1f2   : > { %v899_v23 = vmul.f32 %v4408_v0, %v5237_v49  ;;  %v1074_v13 = vadd.f32 %v4180_v32, %v982_v1  ;;  %v1077_v33 = vadd.f32 %v4180_v32, %v985_v38  ;;  %v903_v16 = vmul.f32 %v3038_v39, %v4025_v24  ;;  %v2972_v15 = vld [vmem:[%s3483_s15 + $0x188] ss:$16 sps:$4 sm:$0xff]   ;;  %v2977_v38 = vld [vmem:[%s3483_s15 + $0x16c] ss:$16 sps:$4 sm:$0xff]   ;;  %2241 = vmatprep.subr.bf16.mxu0 %v4501_v57 }
 0x1f3   : > { %v906_v17 = vmul.f32 %v4474_v46, %v4015_v25  ;;  %v1081_v59 = vadd.f32 %v4169_v31, %v989_v28  ;;  %v1084_v7 = vadd.f32 %v4169_v31, %v992_v4  ;;  %v4518_v0 = vpack.c.bf16 %v1079_v6, %v1076_v14  ;;  %2242 = vmatpush1.bf16.msra.mxu0 %v4508_v29  ;;  %v5241_v6 = vld [vmem:[#allocation23_spill] sm:$0xff] }
 0x1f4   : > { %1998 = vmatmul.mubr.bf16.gmra.mxu1 %v4476_v21  ;;  %v990_v37 = vmul.f32 %v4155_v58, %v898_v43  ;;  %v993_v1 = vmul.f32 %v4155_v58, %v901_v5  ;;  %v988_v24 = vmul.f32 %v4164_v42, %v896_v56  ;;  %v991_v25 = vmul.f32 %v4164_v42, %v899_v23  ;;  %v2975_v5 = vld [vmem:[%s3483_s15 + $0x168] ss:$16 sps:$4 sm:$0xff]   ;;  %v5242_v23 = vld [vmem:[#allocation19_spill] sm:$0xff] }
 0x1f5   : > { %2007 = vmatprep.mubr.bf16.mxu1 %v5218_v35  ;;  %5238 = vst [vmem:[#allocation49_spill] sm:$0xff] %v4518_v0  ;;  %v4528_v28 = vpack.c.bf16 %v1077_v33, %v1074_v13  ;;  %v995_v4 = vmul.f32 %v4152_v30, %v903_v16  ;;  %v998_v27 = vmul.f32 %v4152_v30, %v906_v17  ;;  %v2983_v33 = vld [vmem:[%s3483_s15 + $0x14c] ss:$16 sps:$4 sm:$0xff]  }
 0x1f6   : > { %1837 = vmatmul.mubr.bf16.gmra.mxu0 %v4483_v41  ;;  %v4532_v14 = vpack.c.bf16 %v1084_v7, %v1081_v59  ;;  %v904_v43 = vmul.f32 %v3038_v39, %v5241_v6  ;;  %2089 = vmatpush2.bf16.msra.mxu1 %v2972_v15  ;;  %v1082_v56 = vadd.f32 %v4175_v61, %v990_v37  ;;  %v5243_v15 = vld [vmem:[#allocation22_spill] sm:$0xff]  ;;  %v5244_v6 = vld [vmem:[#allocation21_spill] sm:$0xff] }
 0x1f7   : > { %1846 = vmatprep.mubr.bf16.mxu0 %v4488_v3  ;;  %v3040_v12 = vpop.eup %3039  ;;  %5239 = vst [vmem:[#allocation52_spill] sm:$0xff] %v4528_v28  ;;  %v1085_v49 = vadd.f32 %v4175_v61, %v993_v1  ;;  %v907_v13 = vmul.f32 %v4474_v46, %v5242_v23  ;;  %2090 = vmatprep.subr.bf16.mxu1 %v2977_v38 }
 0x1f8   : > { %5240 = vst [vmem:[#allocation50_spill] sm:$0xff] %v4532_v14  ;;  %v1080_v16 = vadd.f32 %v4180_v32, %v988_v24  ;;  %v1083_v17 = vadd.f32 %v4180_v32, %v991_v25  ;;  %v1087_v59 = vadd.f32 %v4169_v31, %v995_v4  ;;  %v1090_v7 = vadd.f32 %v4169_v31, %v998_v27  ;;  %v2981_v24 = vld [vmem:[%s3483_s15 + $0x148] ss:$16 sps:$4 sm:$0xff]   ;;  %v2986_v4 = vld [vmem:[%s3483_s15 + $0x12c] ss:$16 sps:$4 sm:$0xff]  }
 0x1f9   : > { %v3042_v20 = vpop.eup %3041  ;;  %v902_v37 = vmul.f32 %v3038_v39, %v5243_v15  ;;  %v905_v1 = vmul.f32 %v4474_v46, %v5244_v6  ;;  %v996_v23 = vmul.f32 %v4155_v58, %v904_v43  ;;  %v999_v25 = vmul.f32 %v4155_v58, %v907_v13  ;;  %v5246_v13 = vld [vmem:[#allocation25_spill] sm:$0xff]  ;;  %v5249_v6 = vld [vmem:[#allocation26_spill] sm:$0xff] }
 0x1fa   : > { %v909_v38 = vmul.f32 %v3042_v20, %v4055_v36  ;;  %2091 = vmatpush2.bf16.msra.mxu1 %v2975_v5  ;;  %v4560_v39 = vpack.c.bf16 %v1083_v17, %v1080_v16  ;;  %v4562_v46 = vpack.c.bf16 %v1090_v7, %v1087_v59  ;;  %v5247_v16 = vld [vmem:[#allocation30_spill] sm:$0xff] }
 0x1fb   : > { %2092 = vmatprep.subr.bf16.mxu1 %v2983_v33  ;;  %v994_v36 = vmul.f32 %v4164_v42, %v902_v37  ;;  %v1088_v27 = vadd.f32 %v4175_v61, %v996_v23  ;;  %v910_v33 = vmul.f32 %v3042_v20, %v5246_v13  ;;  %v913_v17 = vmul.f32 %v3040_v12, %v5247_v16  ;;  %v2992_v59 = vld [vmem:[%s3483_s15 + $0x10c] ss:$16 sps:$4 sm:$0xff]  }
 0x1fc   : > { %2008 = vmatmul.mubr.bf16.gmra.mxu1 %v4518_v0  ;;  %v5245_v0 = vld [vmem:[#allocation27_spill] sm:$0xff]  ;;  %v1001_v43 = vmul.f32 %v4152_v30, %v909_v38 }
 0x1fd   : > { %2017 = vmatprep.mubr.bf16.mxu1 %v5218_v35  ;;  %v1086_v7 = vadd.f32 %v4180_v32, %v994_v36  ;;  %v1005_v13 = vmul.f32 %v4155_v58, %v913_v17 }
 0x1fe   : > { %1847 = vmatmul.mubr.bf16.gmra.mxu0 %v4528_v28  ;;  %v912_v28 = vmul.f32 %v3040_v12, %v5245_v0  ;;  %v997_v0 = vmul.f32 %v4164_v42, %v905_v1  ;;  %2093 = vmatpush2.bf16.msra.mxu1 %v2981_v24  ;;  %v911_v1 = vmul.f32 %v3040_v12, %v5249_v6  ;;  %v2990_v24 = vld [vmem:[%s3483_s15 + $0x108] ss:$16 sps:$4 sm:$0xff]  }
 0x1ff   : > { %1856 = vmatprep.mubr.bf16.mxu0 %v4532_v14  ;;  %v4555_v14 = vpack.c.bf16 %v1085_v49, %v1082_v56  ;;  %v2984_v56 = vld [vmem:[%s3483_s15 + $0x128] ss:$16 sps:$4 sm:$0xff]   ;;  %v1091_v49 = vadd.f32 %v4175_v61, %v999_v25  ;;  %2094 = vmatprep.subr.bf16.mxu1 %v2986_v4  ;;  %v1093_v23 = vadd.f32 %v4169_v31, %v1001_v43 }
 0x200   : > { %v1004_v5 = vmul.f32 %v4152_v30, %v912_v28  ;;  %v1089_v15 = vadd.f32 %v4180_v32, %v997_v0  ;;  %v5248_v28 = vld [vmem:[#allocation24_spill] sm:$0xff]  ;;  %v1002_v4 = vmul.f32 %v4155_v58, %v910_v33  ;;  %v1097_v43 = vadd.f32 %v4175_v61, %v1005_v13 }
 0x201   : > { %v908_v37 = vmul.f32 %v3042_v20, %v5248_v28  ;;  %v4584_v25 = vpack.c.bf16 %v1091_v49, %v1088_v27  ;;  %v1003_v20 = vmul.f32 %v4164_v42, %v911_v1  ;;  %v5252_v13 = vld [vmem:[#allocation32_spill] sm:$0xff] }
 0x202   : > { %v1096_v38 = vadd.f32 %v4169_v31, %v1004_v5  ;;  %2095 = vmatpush2.bf16.msra.mxu1 %v2984_v56  ;;  %v4589_v36 = vpack.c.bf16 %v1089_v15, %v1086_v7  ;;  %v1094_v27 = vadd.f32 %v4175_v61, %v1002_v4  ;;  %v3049_v5 = vld [vmem:[%s3483_s15 + $0x2ec] ss:$16 sps:$4 sm:$0xff]  }
 0x203   : > { %2096 = vmatprep.subr.bf16.mxu1 %v2992_v59  ;;  %v1000_v12 = vmul.f32 %v4164_v42, %v908_v37  ;;  %v1095_v49 = vadd.f32 %v4180_v32, %v1003_v20  ;;  %v5253_v20 = vld [vmem:[#allocation28_spill] sm:$0xff] }
 0x204   : > { %2018 = vmatmul.mubr.bf16.gmra.mxu1 %v4555_v14  ;;  %v4593_v0 = vpack.c.bf16 %v1096_v38, %v1093_v23  ;;  %v4603_v33 = vpack.c.bf16 %v1097_v43, %v1094_v27 }
 0x205   : > { %2027 = vmatprep.mubr.bf16.mxu1 %v5218_v35  ;;  %v1092_v56 = vadd.f32 %v4180_v32, %v1000_v12 }
 0x206   : > { %1857 = vmatmul.mubr.bf16.gmra.mxu0 %v4560_v39  ;;  %2097 = vmatpush2.bf16.msra.mxu1 %v2990_v24  ;;  %5250 = vst [vmem:[#allocation51_spill] sm:$0xff] %v4603_v33  ;;  %v5251_v24 = vld [vmem:[#allocation31_spill] sm:$0xff] }
 0x207   : > { %1866 = vmatprep.mubr.bf16.mxu0 %v4562_v46  ;;  %2745 = vmatprep.subr.bf16.mxu1 %v3049_v5  ;;  %v4606_v16 = vpack.c.bf16 %v1095_v49, %v1092_v56  ;;  %v5254_v49 = vld [vmem:[#allocation33_spill] sm:$0xff] }
 0x20c   : > { %2028 = vmatmul.mubr.bf16.gmra.mxu1 %v4584_v25 }
 0x20d   : > { %2037 = vmatprep.mubr.bf16.mxu1 %v5218_v35 }
 0x20e   : > { %1867 = vmatmul.mubr.bf16.gmra.mxu0 %v4589_v36 }
 0x20f   : > { %1876 = vmatprep.mubr.bf16.mxu0 %v4593_v0 }
 0x214   : > { %2038 = vmatmul.mubr.bf16.gmra.mxu1 %v4603_v33 }
 0x215   : > { %2047 = vmatprep.mubr.bf16.mxu1 %v5218_v35 }
 0x216   : > { %1877 = vmatmul.mubr.bf16.gmra.mxu0 %v4606_v16 }
 0x23e   : > { %v764_v17 = vpop.xlane.xlu1 %763 }
 0x23f   : > { %v795_v59 = vmul.f32 0.0026041667, %v764_v17 }
 0x241   : > { %v820_v7 = vadd.f32 1e-06, %v795_v59  ;;  %v5255_v59 = vld [vmem:[#allocation34_spill] sm:$0xff] }
 0x242   : > { %v768_v15 = vpop.xlane.xlu0 %767 }
 0x243   : > { %3043 = vrsqrt.f32 %v820_v7  ;;  %v796_v28 = vmul.f32 0.0026041667, %v768_v15  ;;  %v5256_v15 = vld [vmem:[#allocation29_spill] sm:$0xff] }
 0x245   : > { %v821_v37 = vadd.f32 1e-06, %v796_v28 }
 0x246   : > { %v772_v6 = vpop.xlane.xlu1 %771 }
 0x247   : > { %3045 = vrsqrt.f32 %v821_v37  ;;  %v797_v1 = vmul.f32 0.0026041667, %v772_v6 }
 0x249   : > { %v822_v23 = vadd.f32 1e-06, %v797_v1 }
 0x24b   : > { %3047 = vrsqrt.f32 %v822_v23 }
 0x250   : > { %v3044_v38 = vpop.eup %3043 }
 0x251   : > { %v915_v4 = vmul.f32 %v3044_v38, %v5251_v24  ;;  %v916_v12 = vmul.f32 %v3044_v38, %v5252_v13  ;;  %v914_v27 = vmul.f32 %v3044_v38, %v5253_v20  ;;  %v5257_v20 = vld [vmem:[#allocation40_spill] sm:$0xff] }
 0x253   : > { %v1007_v5 = vmul.f32 %v4152_v30, %v915_v4  ;;  %v1008_v56 = vmul.f32 %v4155_v58, %v916_v12  ;;  %v1006_v37 = vmul.f32 %v4164_v42, %v914_v27 }
 0x254   : > { %v3046_v43 = vpop.eup %3045 }
 0x255   : > { %v918_v17 = vmul.f32 %v3046_v43, %v5254_v49  ;;  %v919_v7 = vmul.f32 %v3046_v43, %v5255_v59  ;;  %v917_v28 = vmul.f32 %v3046_v43, %v5256_v15  ;;  %v1099_v38 = vadd.f32 %v4169_v31, %v1007_v5  ;;  %v5258_v43 = vld [vmem:[#allocation61_spill] sm:$0xff] }
 0x256   : > { %v1100_v24 = vadd.f32 %v4175_v61, %v1008_v56  ;;  %v1098_v27 = vadd.f32 %v4180_v32, %v1006_v37 }
 0x257   : > { %v1010_v6 = vmul.f32 %v4152_v30, %v918_v17  ;;  %v1011_v1 = vmul.f32 %v4155_v58, %v919_v7  ;;  %v1009_v4 = vmul.f32 %v4164_v42, %v917_v28  ;;  %v5259_v7 = vld [vmem:[#allocation39_spill] sm:$0xff] }
 0x258   : > { %v3048_v23 = vpop.eup %3047 }
 0x259   : > { %v1102_v13 = vadd.f32 %v4169_v31, %v1010_v6  ;;  %v1103_v12 = vadd.f32 %v4175_v61, %v1011_v1  ;;  %v921_v49 = vmul.f32 %v3048_v23, %v5257_v20  ;;  %v922_v59 = vmul.f32 %v3048_v23, %v5258_v43 }
 0x25a   : > { %v1101_v17 = vadd.f32 %v4180_v32, %v1009_v4  ;;  %v920_v15 = vmul.f32 %v3048_v23, %v5259_v7  ;;  %v5264_v4 = vld [vmem:[#allocation45_spill] sm:$0xff] }
 0x25b   : > { %v4631_v33 = vpack.c.bf16 %v1102_v13, %v1099_v38  ;;  %v4633_v5 = vpack.c.bf16 %v1103_v12, %v1100_v24  ;;  %v1013_v56 = vmul.f32 %v4152_v30, %v921_v49  ;;  %v1014_v28 = vmul.f32 %v4155_v58, %v922_v59  ;;  %v5261_v24 = vld [vmem:[#allocation41_spill] sm:$0xff]  ;;  %v5268_v49 = vld [vmem:[#allocation48_spill] sm:$0xff] }
 0x25c   : > { %v4637_v6 = vpack.c.bf16 %v1101_v17, %v1098_v27  ;;  %v1012_v1 = vmul.f32 %v4164_v42, %v920_v15 }
 0x25d   : > { %1886 = vmatprep.mubr.bf16.mxu0 %v4631_v33  ;;  %2048 = vmatmul.mubr.bf16.gmra.mxu1 %v4633_v5  ;;  %v1105_v37 = vadd.f32 %v4169_v31, %v1013_v56  ;;  %v1106_v30 = vadd.f32 %v4175_v61, %v1014_v28  ;;  %v5260_v31 = vld [vmem:[#allocation42_spill] sm:$0xff]  ;;  %v5262_v61 = vld [vmem:[#allocation47_spill] sm:$0xff] }
 0x25e   : > { %1887 = vmatmul.mubr.bf16.gmra.mxu0 %v4637_v6  ;;  %2057 = vmatprep.mubr.bf16.mxu1 %v5218_v35  ;;  %v1104_v58 = vadd.f32 %v4180_v32, %v1012_v1  ;;  %v5263_v32 = vld [vmem:[#allocation43_spill] sm:$0xff] }
 0x25f   : > { %v4645_v23 = vpack.c.bf16 %v1105_v37, %v1105_v37  ;;  %v4650_v38 = vpack.c.bf16 %v1106_v30, %v1106_v30 }
 0x260   : > { %v4652_v42 = vpack.c.bf16 %v1104_v58, %v1104_v58 }
 0x261   : > { %1896 = vmatprep.mubr.bf16.mxu0 %v4645_v23 }
 0x265   : > { %2058 = vmatmul.mubr.bf16.gmra.mxu1 %v4650_v38 }
 0x266   : > { %1897 = vmatmul.mubr.bf16.gmra.mxu0 %v4652_v42  ;;  %2098 = vmatprep.mubr.bf16.mxu1 %v5260_v31 }
 0x267   : > { %2259 = vmatprep.mubr.bf16.mxu0 %v5218_v35 }
 0x26d   : > { %2099 = vmatmul.mubr.bf16.vlgmr.msra.gmra.mxu1 %v5261_v24 }
 0x26e   : > { %2753 = vmatpush1.bf16.msra.mxu1 %v5262_v61  ;;  %2108 = vmatprep.mubr.bf16.mxu1 %v4241_v9  ;;  %v5266_v9 = vld [vmem:[#allocation36_spill] sm:$0xff] }
 0x26f   : > { %2260 = vmatmul.mubr.bf16.vlgmr.msra.gmra.mxu0 %v5263_v32  ;;  %2746 = vmatprep.subr.bf16.mxu1 %v5264_v4 }
 0x270   : > { %2269 = vmatprep.mubr.bf16.mxu0 %v5218_v35 }
 0x272   : > { %2754 = vmatpush1.bf16.msra.mxu1 %v4227_v51  ;;  %v5265_v51 = vld [vmem:[#allocation38_spill] sm:$0xff] }
 0x273   : > { %2747 = vmatprep.subr.bf16.mxu1 %v4235_v18 }
 0x275   : > { %2109 = vmatmul.mubr.bf16.gmra.mxu1 %v4246_v54  ;;  %v4679_v54 = vld [vmem:[%s286_s17] sm:$0xf] }
 0x276   : > { %2118 = vmatprep.mubr.bf16.mxu1 %v4272_v10  ;;  %2755 = vmatpush1.bf16.msra.mxu1 %v4256_v44  ;;  %v4685_v18 = vrot.slane %v4679_v54, %v5265_v51 }
 0x277   : > { %2270 = vmatmul.mubr.bf16.gmra.mxu0 %v4243_v55  ;;  %2748 = vmatprep.subr.bf16.mxu1 %v4270_v63  ;;  %v4692_v55 = vrot.slane %v4679_v54, %v5266_v9 }
 0x278   : > { %2279 = vmatprep.mubr.bf16.mxu0 %v5218_v35 }
 0x27a   : > { %2756 = vmatpush1.bf16.msra.mxu1 %v4281_v2 }
 0x27b   : > { %2749 = vmatprep.subr.bf16.mxu1 %v4304_v62 }
 0x27d   : > { %2119 = vmatmul.mubr.bf16.gmra.mxu1 %v4307_v11 }
 0x27e   : > { %2128 = vmatprep.mubr.bf16.mxu1 %v4325_v50  ;;  %2757 = vmatpush1.bf16.msra.mxu1 %v4313_v26 }
 0x27f   : > { %2280 = vmatmul.mubr.bf16.gmra.mxu0 %v4294_v8  ;;  %2750 = vmatprep.subr.bf16.mxu1 %v4377_v52 }
 0x280   : > { %2289 = vmatprep.mubr.bf16.mxu0 %v5218_v35 }
 0x282   : > { %2758 = vmatpush1.bf16.msra.mxu1 %v4419_v45 }
 0x283   : > { %2751 = vmatprep.subr.bf16.mxu1 %v4457_v34 }
 0x284   : > { %v1939_v44 = vpop.f32.mrf.mxu1 }
 0x285   : > { %2129 = vmatmul.mubr.bf16.gmra.mxu1 %v4348_v60  ;;  %v1778_v63 = vpop.f32.mrf.mxu0 }
 0x286   : > { %v1779_v10 = vadd.f32 %v1778_v63, %v4685_v18  ;;  %2138 = vmatprep.mubr.bf16.mxu1 %v4367_v47  ;;  %2759 = vmatpush1.bf16.msra.mxu1 %v4461_v48  ;;  %v1941_v2 = vpop.f32.mrf.mxu1 }
 0x287   : > { %2290 = vmatmul.mubr.bf16.gmra.mxu0 %v4338_v22  ;;  %v1780_v8 = vpop.f32.mrf.mxu0  ;;  %2752 = vmatprep.subr.bf16.mxu1 %v4501_v57  ;;  %v5267_v57 = vld [vmem:[#allocation44_spill] sm:$0xff] }
 0x288   : > { %v1940_v62 = vadd.f32 %v1939_v44, %v1779_v10  ;;  %v1781_v11 = vadd.f32 %v1780_v8, %v4692_v55  ;;  %2299 = vmatprep.mubr.bf16.mxu0 %v5218_v35  ;;  %v1943_v26 = vpop.f32.mrf.mxu1 }
 0x289   : > { %v1782_v50 = vpop.f32.mrf.mxu0 }
 0x28a   : > { %2388 = vst [vmem:[%s4702_s10] sm:$0xff] %v1940_v62  ;;  %v1942_v60 = vadd.f32 %v1941_v2, %v1781_v11  ;;  %v1783_v22 = vadd.f32 %v1782_v50, %v4685_v18  ;;  %2760 = vmatpush1.bf16.msra.mxu1 %v4508_v29  ;;  %v1945_v47 = vpop.f32.mrf.mxu1  ;;  %v5269_v29 = vld [vmem:[#allocation46_spill] sm:$0xff] }
 0x28b   : > { %v1784_v52 = vpop.f32.mrf.mxu0 }
 0x28c   : > { %2389 = vst [vmem:[%s4702_s10 + $0x8] sm:$0xff] %v1942_v60  ;;  %v1944_v45 = vadd.f32 %v1943_v26, %v1783_v22  ;;  %v1785_v34 = vadd.f32 %v1784_v52, %v4692_v55  ;;  %v1949_v48 = vpop.f32.mrf.mxu1 }
 0x28d   : > { %2139 = vmatmul.mubr.bf16.gmra.mxu1 %v5267_v57  ;;  %v1788_v13 = vpop.f32.mrf.mxu0 }
 0x28e   : > { %2392 = vst [vmem:[%s4702_s10 + $0x20] sm:$0xff] %v1944_v45  ;;  %v1946_v12 = vadd.f32 %v1945_v47, %v1785_v34  ;;  %v1789_v20 = vadd.f32 %v1788_v13, %v4685_v18  ;;  %2148 = vmatprep.mubr.bf16.mxu1 %v5268_v49  ;;  %v1951_v43 = vpop.f32.mrf.mxu1 }
 0x28f   : > { %2300 = vmatmul.mubr.bf16.gmra.mxu0 %v5269_v29  ;;  %v1790_v59 = vpop.f32.mrf.mxu0  ;;  %v5271_v29 = vld [vmem:[#allocation50_spill] sm:$0xff] }
 0x290   : > { %2393 = vst [vmem:[%s4702_s10 + $0x28] sm:$0xff] %v1946_v12  ;;  %v1950_v27 = vadd.f32 %v1949_v48, %v1789_v20  ;;  %v1791_v17 = vadd.f32 %v1790_v59, %v4692_v55  ;;  %2309 = vmatprep.mubr.bf16.mxu0 %v5218_v35  ;;  %v1953_v7 = vpop.f32.mrf.mxu1  ;;  %v5270_v12 = vld [vmem:[#allocation52_spill] sm:$0xff]  ;;  %v5272_v59 = vld [vmem:[#allocation49_spill] sm:$0xff] }
 0x291   : > { %v1792_v15 = vpop.f32.mrf.mxu0 }
 0x292   : > { %2396 = vst [vmem:[%s4702_s10 + $0x40] sm:$0xff] %v1950_v27  ;;  %v1952_v56 = vadd.f32 %v1951_v43, %v1791_v17  ;;  %v1793_v28 = vadd.f32 %v1792_v15, %v4685_v18  ;;  %v1955_v1 = vpop.f32.mrf.mxu1 }
 0x293   : > { %v1794_v37 = vpop.f32.mrf.mxu0 }
 0x294   : > { %2397 = vst [vmem:[%s4702_s10 + $0x48] sm:$0xff] %v1952_v56  ;;  %v1954_v30 = vadd.f32 %v1953_v7, %v1793_v28  ;;  %v1795_v58 = vadd.f32 %v1794_v37, %v4692_v55  ;;  %v1959_v31 = vpop.f32.mrf.mxu1 }
 0x295   : > { %2149 = vmatmul.mubr.bf16.gmra.mxu1 %v4438_v53 }
 0x296   : > { %2400 = vst [vmem:[%s4702_s10 + $0x60] sm:$0xff] %v1954_v30  ;;  %v1956_v24 = vadd.f32 %v1955_v1, %v1795_v58  ;;  %2158 = vmatprep.mubr.bf16.mxu1 %v4443_v19  ;;  %v1798_v61 = vpop.f32.mrf.mxu0  ;;  %v1961_v32 = vpop.f32.mrf.mxu1 }
 0x297   : > { %2310 = vmatmul.mubr.bf16.gmra.mxu0 %v4432_v40  ;;  %v1799_v4 = vadd.f32 %v1798_v61, %v4685_v18 }
 0x298   : > { %2401 = vst [vmem:[%s4702_s10 + $0x68] sm:$0xff] %v1956_v24  ;;  %2319 = vmatprep.mubr.bf16.mxu0 %v5218_v35  ;;  %v1800_v51 = vpop.f32.mrf.mxu0  ;;  %v1963_v9 = vpop.f32.mrf.mxu1 }
 0x299   : > { %v1960_v44 = vadd.f32 %v1959_v31, %v1799_v4  ;;  %v1801_v53 = vadd.f32 %v1800_v51, %v4692_v55 }
 0x29a   : > { %v1802_v63 = vpop.f32.mrf.mxu0  ;;  %v1965_v10 = vpop.f32.mrf.mxu1 }
 0x29b   : > { %2404 = vst [vmem:[%s4702_s10 + $0x80] sm:$0xff] %v1960_v44  ;;  %v1962_v19 = vadd.f32 %v1961_v32, %v1801_v53  ;;  %v1803_v2 = vadd.f32 %v1802_v63, %v4685_v18 }
 0x29c   : > { %v1804_v40 = vpop.f32.mrf.mxu0  ;;  %v1969_v8 = vpop.f32.mrf.mxu1 }
 0x29d   : > { %2159 = vmatmul.mubr.bf16.gmra.mxu1 %v4483_v41  ;;  %2405 = vst [vmem:[%s4702_s10 + $0x88] sm:$0xff] %v1962_v19  ;;  %v1964_v62 = vadd.f32 %v1963_v9, %v1803_v2  ;;  %v1805_v11 = vadd.f32 %v1804_v40, %v4692_v55 }
 0x29e   : > { %2168 = vmatprep.mubr.bf16.mxu1 %v4488_v3  ;;  %v1808_v26 = vpop.f32.mrf.mxu0  ;;  %v1971_v50 = vpop.f32.mrf.mxu1 }
 0x29f   : > { %2320 = vmatmul.mubr.bf16.gmra.mxu0 %v4476_v21  ;;  %2408 = vst [vmem:[%s4702_s10 + $0xa0] sm:$0xff] %v1964_v62  ;;  %v1966_v60 = vadd.f32 %v1965_v10, %v1805_v11  ;;  %v1809_v22 = vadd.f32 %v1808_v26, %v4685_v18 }
 0x2a0   : > { %2329 = vmatprep.mubr.bf16.mxu0 %v5218_v35  ;;  %v1810_v47 = vpop.f32.mrf.mxu0  ;;  %v1973_v41 = vpop.f32.mrf.mxu1 }
 0x2a1   : > { %2409 = vst [vmem:[%s4702_s10 + $0xa8] sm:$0xff] %v1966_v60  ;;  %v1970_v52 = vadd.f32 %v1969_v8, %v1809_v22  ;;  %v1811_v45 = vadd.f32 %v1810_v47, %v4692_v55 }
 0x2a2   : > { %v1812_v34 = vpop.f32.mrf.mxu0  ;;  %v1975_v3 = vpop.f32.mrf.mxu1 }
 0x2a3   : > { %2412 = vst [vmem:[%s4702_s10 + $0xc0] sm:$0xff] %v1970_v52  ;;  %v1972_v48 = vadd.f32 %v1971_v50, %v1811_v45  ;;  %v1813_v21 = vadd.f32 %v1812_v34, %v4685_v18 }
 0x2a4   : > { %v1814_v57 = vpop.f32.mrf.mxu0  ;;  %v1979_v13 = vpop.f32.mrf.mxu1 }
 0x2a5   : > { %2169 = vmatmul.mubr.bf16.gmra.mxu1 %v5270_v12  ;;  %2413 = vst [vmem:[%s4702_s10 + $0xc8] sm:$0xff] %v1972_v48  ;;  %v1974_v20 = vadd.f32 %v1973_v41, %v1813_v21  ;;  %v1815_v49 = vadd.f32 %v1814_v57, %v4692_v55 }
 0x2a6   : > { %2178 = vmatprep.mubr.bf16.mxu1 %v5271_v29  ;;  %v1818_v43 = vpop.f32.mrf.mxu0  ;;  %v1981_v27 = vpop.f32.mrf.mxu1 }
 0x2a7   : > { %2330 = vmatmul.mubr.bf16.gmra.mxu0 %v5272_v59  ;;  %2416 = vst [vmem:[%s4702_s10 + $0xe0] sm:$0xff] %v1974_v20  ;;  %v1976_v17 = vadd.f32 %v1975_v3, %v1815_v49  ;;  %v1819_v7 = vadd.f32 %v1818_v43, %v4685_v18  ;;  %v5273_v20 = vld [vmem:[#allocation51_spill] sm:$0xff] }
 0x2a8   : > { %2339 = vmatprep.mubr.bf16.mxu0 %v5218_v35  ;;  %v1820_v15 = vpop.f32.mrf.mxu0  ;;  %v1983_v56 = vpop.f32.mrf.mxu1 }
 0x2a9   : > { %2417 = vst [vmem:[%s4702_s10 + $0xe8] sm:$0xff] %v1976_v17  ;;  %v1980_v28 = vadd.f32 %v1979_v13, %v1819_v7  ;;  %v1821_v1 = vadd.f32 %v1820_v15, %v4692_v55 }
 0x2aa   : > { %v1822_v37 = vpop.f32.mrf.mxu0  ;;  %v1985_v30 = vpop.f32.mrf.mxu1 }
 0x2ab   : > { %2420 = vst [vmem:[%s4702_s10 + $0x100] sm:$0xff] %v1980_v28  ;;  %v1982_v58 = vadd.f32 %v1981_v27, %v1821_v1  ;;  %v1823_v31 = vadd.f32 %v1822_v37, %v4685_v18 }
 0x2ac   : > { %v1824_v24 = vpop.f32.mrf.mxu0  ;;  %v1989_v61 = vpop.f32.mrf.mxu1 }
 0x2ad   : > { %2179 = vmatmul.mubr.bf16.gmra.mxu1 %v4560_v39  ;;  %2421 = vst [vmem:[%s4702_s10 + $0x108] sm:$0xff] %v1982_v58  ;;  %v1984_v32 = vadd.f32 %v1983_v56, %v1823_v31  ;;  %v1825_v4 = vadd.f32 %v1824_v24, %v4692_v55 }
 0x2ae   : > { %2188 = vmatprep.mubr.bf16.mxu1 %v4562_v46  ;;  %v1828_v51 = vpop.f32.mrf.mxu0  ;;  %v1991_v9 = vpop.f32.mrf.mxu1 }
 0x2af   : > { %2340 = vmatmul.mubr.bf16.gmra.mxu0 %v4555_v14  ;;  %2424 = vst [vmem:[%s4702_s10 + $0x120] sm:$0xff] %v1984_v32  ;;  %v1986_v44 = vadd.f32 %v1985_v30, %v1825_v4  ;;  %v1829_v53 = vadd.f32 %v1828_v51, %v4685_v18 }
 0x2b0   : > { %2349 = vmatprep.mubr.bf16.mxu0 %v5218_v35  ;;  %v1830_v63 = vpop.f32.mrf.mxu0  ;;  %v1993_v39 = vpop.f32.mrf.mxu1 }
 0x2b1   : > { %2425 = vst [vmem:[%s4702_s10 + $0x128] sm:$0xff] %v1986_v44  ;;  %v1990_v10 = vadd.f32 %v1989_v61, %v1829_v53  ;;  %v1831_v19 = vadd.f32 %v1830_v63, %v4692_v55 }
 0x2b2   : > { %v1832_v2 = vpop.f32.mrf.mxu0  ;;  %v1995_v46 = vpop.f32.mrf.mxu1 }
 0x2b3   : > { %2428 = vst [vmem:[%s4702_s10 + $0x140] sm:$0xff] %v1990_v10  ;;  %v1992_v40 = vadd.f32 %v1991_v9, %v1831_v19  ;;  %v1833_v14 = vadd.f32 %v1832_v2, %v4685_v18 }
 0x2b4   : > { %v1834_v8 = vpop.f32.mrf.mxu0  ;;  %v1999_v62 = vpop.f32.mrf.mxu1 }
 0x2b5   : > { %2189 = vmatmul.mubr.bf16.gmra.mxu1 %v4589_v36  ;;  %2429 = vst [vmem:[%s4702_s10 + $0x148] sm:$0xff] %v1992_v40  ;;  %v1994_v11 = vadd.f32 %v1993_v39, %v1833_v14  ;;  %v1835_v26 = vadd.f32 %v1834_v8, %v4692_v55 }
 0x2b6   : > { %2198 = vmatprep.mubr.bf16.mxu1 %v4593_v0  ;;  %v1838_v50 = vpop.f32.mrf.mxu0  ;;  %v2001_v60 = vpop.f32.mrf.mxu1 }
 0x2b7   : > { %2350 = vmatmul.mubr.bf16.gmra.mxu0 %v4584_v25  ;;  %2432 = vst [vmem:[%s4702_s10 + $0x160] sm:$0xff] %v1994_v11  ;;  %v1996_v22 = vadd.f32 %v1995_v46, %v1835_v26  ;;  %v1839_v47 = vadd.f32 %v1838_v50, %v4685_v18 }
 0x2b8   : > { %2359 = vmatprep.mubr.bf16.mxu0 %v5218_v35  ;;  %v1840_v41 = vpop.f32.mrf.mxu0  ;;  %v2003_v36 = vpop.f32.mrf.mxu1 }
 0x2b9   : > { %2433 = vst [vmem:[%s4702_s10 + $0x168] sm:$0xff] %v1996_v22  ;;  %v2000_v52 = vadd.f32 %v1999_v62, %v1839_v47  ;;  %v1841_v45 = vadd.f32 %v1840_v41, %v4692_v55 }
 0x2ba   : > { %v1842_v34 = vpop.f32.mrf.mxu0  ;;  %v2005_v0 = vpop.f32.mrf.mxu1 }
 0x2bb   : > { %2436 = vst [vmem:[%s4702_s10 + $0x180] sm:$0xff] %v2000_v52  ;;  %v2002_v3 = vadd.f32 %v2001_v60, %v1841_v45  ;;  %v1843_v25 = vadd.f32 %v1842_v34, %v4685_v18 }
 0x2bc   : > { %v1844_v48 = vpop.f32.mrf.mxu0  ;;  %v2009_v21 = vpop.f32.mrf.mxu1 }
 0x2bd   : > { %2199 = vmatmul.mubr.bf16.gmra.mxu1 %v4606_v16  ;;  %2437 = vst [vmem:[%s4702_s10 + $0x188] sm:$0xff] %v2002_v3  ;;  %v2004_v57 = vadd.f32 %v2003_v36, %v1843_v25  ;;  %v1845_v13 = vadd.f32 %v1844_v48, %v4692_v55 }
 0x2be   : > { %2208 = vmatprep.mubr.bf16.mxu1 %v4631_v33  ;;  %v1848_v12 = vpop.f32.mrf.mxu0  ;;  %v2011_v49 = vpop.f32.mrf.mxu1 }
 0x2bf   : > { %2360 = vmatmul.mubr.bf16.gmra.mxu0 %v5273_v20  ;;  %2440 = vst [vmem:[%s4702_s10 + $0x1a0] sm:$0xff] %v2004_v57  ;;  %v2006_v29 = vadd.f32 %v2005_v0, %v1845_v13  ;;  %v1849_v43 = vadd.f32 %v1848_v12, %v4685_v18 }
 0x2c0   : > { %v1850_v59 = vpop.f32.mrf.mxu0  ;;  %v2013_v27 = vpop.f32.mrf.mxu1 }
 0x2c1   : > { %2441 = vst [vmem:[%s4702_s10 + $0x1a8] sm:$0xff] %v2006_v29  ;;  %v2010_v16 = vadd.f32 %v2009_v21, %v1849_v43  ;;  %v1851_v17 = vadd.f32 %v1850_v59, %v4692_v55 }
 0x2c2   : > { %v1852_v7 = vpop.f32.mrf.mxu0  ;;  %v2015_v15 = vpop.f32.mrf.mxu1 }
 0x2c3   : > { %2444 = vst [vmem:[%s4702_s10 + $0x1c0] sm:$0xff] %v2010_v16  ;;  %v2012_v33 = vadd.f32 %v2011_v49, %v1851_v17  ;;  %v1853_v56 = vadd.f32 %v1852_v7, %v4685_v18 }
 0x2c4   : > { %v1854_v28 = vpop.f32.mrf.mxu0  ;;  %v2019_v1 = vpop.f32.mrf.mxu1 }
 0x2c5   : > { %2209 = vmatmul.mubr.bf16.gmra.mxu1 %v4637_v6  ;;  %2445 = vst [vmem:[%s4702_s10 + $0x1c8] sm:$0xff] %v2012_v33  ;;  %v2014_v37 = vadd.f32 %v2013_v27, %v1853_v56  ;;  %v1855_v30 = vadd.f32 %v1854_v28, %v4692_v55 }
 0x2c6   : > { %2218 = vmatprep.mubr.bf16.mxu1 %v4645_v23  ;;  %v1858_v58 = vpop.f32.mrf.mxu0  ;;  %v2021_v31 = vpop.f32.mrf.mxu1 }
 0x2c7   : > { %2448 = vst [vmem:[%s4702_s10 + $0x1e0] sm:$0xff] %v2014_v37  ;;  %v2016_v24 = vadd.f32 %v2015_v15, %v1855_v30  ;;  %v1859_v61 = vadd.f32 %v1858_v58, %v4685_v18 }
 0x2c8   : > { %v1860_v32 = vpop.f32.mrf.mxu0  ;;  %v2023_v4 = vpop.f32.mrf.mxu1 }
 0x2c9   : > { %2449 = vst [vmem:[%s4702_s10 + $0x1e8] sm:$0xff] %v2016_v24  ;;  %v2020_v51 = vadd.f32 %v2019_v1, %v1859_v61  ;;  %v1861_v6 = vadd.f32 %v1860_v32, %v4692_v55 }
 0x2ca   : > { %v1862_v9 = vpop.f32.mrf.mxu0  ;;  %v2025_v44 = vpop.f32.mrf.mxu1 }
 0x2cb   : > { %2452 = vst [vmem:[%s4702_s10 + $0x200] sm:$0xff] %v2020_v51  ;;  %v2022_v53 = vadd.f32 %v2021_v31, %v1861_v6  ;;  %v1863_v23 = vadd.f32 %v1862_v9, %v4685_v18  ;;  %v5274_v9 = vld [vmem:[#allocation35_spill] sm:$0xff] }
 0x2cc   : > { %v1864_v63 = vpop.f32.mrf.mxu0  ;;  %v2029_v39 = vpop.f32.mrf.mxu1 }
 0x2cd   : > { %2219 = vmatmul.mubr.bf16.gmra.mxu1 %v4652_v42  ;;  %2453 = vst [vmem:[%s4702_s10 + $0x208] sm:$0xff] %v2022_v53  ;;  %v2024_v10 = vadd.f32 %v2023_v4, %v1863_v23  ;;  %v1865_v19 = vadd.f32 %v1864_v63, %v4692_v55 }
 0x2ce   : > { %2369 = vmatprep.mubr.bf16.mxu1 %v5218_v35  ;;  %v1868_v2 = vpop.f32.mrf.mxu0  ;;  %v2031_v46 = vpop.f32.mrf.mxu1 }
 0x2cf   : > { %2456 = vst [vmem:[%s4702_s10 + $0x220] sm:$0xff] %v2024_v10  ;;  %v2026_v40 = vadd.f32 %v2025_v44, %v1865_v19  ;;  %v1869_v14 = vadd.f32 %v1868_v2, %v4685_v18  ;;  %v1258_v44 = vsub.s32 3, %v5274_v9  ;;  %v5275_v10 = vld [vmem:[#allocation37_spill] sm:$0xff] }
 0x2d0   : > { %v1870_v8 = vpop.f32.mrf.mxu0  ;;  %v2033_v62 = vpop.f32.mrf.mxu1  ;;  %v4838_v19 = vrot.slane %v4679_v54, %v5275_v10 }
 0x2d1   : > { %2457 = vst [vmem:[%s4702_s10 + $0x228] sm:$0xff] %v2026_v40  ;;  %v2030_v11 = vadd.f32 %v2029_v39, %v1869_v14  ;;  %v1871_v42 = vadd.f32 %v1870_v8, %v4692_v55 }
 0x2d2   : > { %v1872_v26 = vpop.f32.mrf.mxu0  ;;  %v2035_v50 = vpop.f32.mrf.mxu1 }
 0x2d3   : > { %2460 = vst [vmem:[%s4702_s10 + $0x240] sm:$0xff] %v2030_v11  ;;  %v2032_v60 = vadd.f32 %v2031_v46, %v1871_v42  ;;  %v1873_v22 = vadd.f32 %v1872_v26, %v4685_v18 }
 0x2d4   : > { %v1874_v47 = vpop.f32.mrf.mxu0  ;;  %v2039_v41 = vpop.f32.mrf.mxu1 }
 0x2d5   : > { %2370 = vmatmul.mubr.bf16.vlgmr.msra.gmra.mxu1 %v4633_v5  ;;  %2461 = vst [vmem:[%s4702_s10 + $0x248] sm:$0xff] %v2032_v60  ;;  %v2034_v36 = vadd.f32 %v2033_v62, %v1873_v22  ;;  %v1875_v52 = vadd.f32 %v1874_v47, %v4692_v55 }
 0x2d6   : > { %2379 = vmatprep.mubr.bf16.mxu1 %v5218_v35  ;;  %v1878_v45 = vpop.f32.mrf.mxu0  ;;  %v2041_v34 = vpop.f32.mrf.mxu1 }
 0x2d7   : > { %2464 = vst [vmem:[%s4702_s10 + $0x260] sm:$0xff] %v2034_v36  ;;  %v2036_v0 = vadd.f32 %v2035_v50, %v1875_v52  ;;  %v1879_v3 = vadd.f32 %v1878_v45, %v4685_v18 }
 0x2d8   : > { %v1880_v25 = vpop.f32.mrf.mxu0  ;;  %v2043_v21 = vpop.f32.mrf.mxu1 }
 0x2d9   : > { %2465 = vst [vmem:[%s4702_s10 + $0x268] sm:$0xff] %v2036_v0  ;;  %v2040_v48 = vadd.f32 %v2039_v41, %v1879_v3  ;;  %v1881_v5 = vadd.f32 %v1880_v25, %v4692_v55 }
 0x2da   : > { %v1882_v57 = vpop.f32.mrf.mxu0  ;;  %v2045_v29 = vpop.f32.mrf.mxu1 }
 0x2db   : > { %2468 = vst [vmem:[%s4702_s10 + $0x280] sm:$0xff] %v2040_v48  ;;  %v2042_v13 = vadd.f32 %v2041_v34, %v1881_v5  ;;  %v1883_v35 = vadd.f32 %v1882_v57, %v4685_v18 }
 0x2dc   : > { %v1884_v12 = vpop.f32.mrf.mxu0 }
 0x2dd   : > { %2380 = vmatmul.mubr.bf16.gmra.mxu1 %v4650_v38  ;;  %2469 = vst [vmem:[%s4702_s10 + $0x288] sm:$0xff] %v2042_v13  ;;  %v2044_v20 = vadd.f32 %v2043_v21, %v1883_v35  ;;  %v1885_v49 = vadd.f32 %v1884_v12, %v4692_v55 }
 0x2df   : > { %2472 = vst [vmem:[%s4702_s10 + $0x2a0] sm:$0xff] %v2044_v20  ;;  %v2046_v43 = vadd.f32 %v2045_v29, %v1885_v49 }
 0x2e1   : > { %2473 = vst [vmem:[%s4702_s10 + $0x2a8] sm:$0xff] %v2046_v43 }
 0x31d   : > { %v2049_v59 = vpop.f32.mrf.mxu1 }
 0x31e   : > { %v1888_v27 = vpop.f32.mrf.mxu0 }
 0x31f   : > { %v1889_v16 = vadd.f32 %v1888_v27, %v4685_v18  ;;  %v2051_v17 = vpop.f32.mrf.mxu1 }
 0x320   : > { %v1890_v7 = vpop.f32.mrf.mxu0 }
 0x321   : > { %v2050_v15 = vadd.f32 %v2049_v59, %v1889_v16  ;;  %v1891_v38 = vadd.f32 %v1890_v7, %v4692_v55  ;;  %v2053_v33 = vpop.f32.mrf.mxu1 }
 0x322   : > { %v1892_v56 = vpop.f32.mrf.mxu0 }
 0x323   : > { %2476 = vst [vmem:[%s4702_s10 + $0x2c0] sm:$0xff] %v2050_v15  ;;  %v2052_v28 = vadd.f32 %v2051_v17, %v1891_v38  ;;  %v1893_v1 = vadd.f32 %v1892_v56, %v4685_v18  ;;  %v2055_v37 = vpop.f32.mrf.mxu1 }
 0x324   : > { %v1894_v30 = vpop.f32.mrf.mxu0 }
 0x325   : > { %2477 = vst [vmem:[%s4702_s10 + $0x2c8] sm:$0xff] %v2052_v28  ;;  %v2054_v58 = vadd.f32 %v2053_v33, %v1893_v1  ;;  %v1895_v31 = vadd.f32 %v1894_v30, %v4692_v55  ;;  %v2059_v24 = vpop.f32.mrf.mxu1 }
 0x326   : > { %v1898_v61 = vpop.f32.mrf.mxu0 }
 0x327   : > { %2480 = vst [vmem:[%s4702_s10 + $0x2e0] sm:$0xff] %v2054_v58  ;;  %v2056_v32 = vadd.f32 %v2055_v37, %v1895_v31  ;;  %v1899_v4 = vadd.f32 %v1898_v61, %v4685_v18  ;;  %v2061_v51 = vpop.f32.mrf.mxu1  ;;  %v4842_v18 = vrot.slane %v4679_v54, %v1258_v44 }
 0x328   : > { %v1900_v6 = vpop.f32.mrf.mxu0 }
 0x329   : > { %2481 = vst [vmem:[%s4702_s10 + $0x2e8] sm:$0xff] %v2056_v32  ;;  %v2060_v53 = vadd.f32 %v2059_v24, %v1899_v4  ;;  %v1901_v23 = vadd.f32 %v1900_v6, %v4692_v55  ;;  %v2063_v63 = vpop.f32.mrf.mxu1 }
 0x32a   : > { %v1902_v39 = vpop.f32.mrf.mxu0 }
 0x32b   : > { %2484 = vst [vmem:[%s4702_s10 + $0x300] sm:$0xff] %v2060_v53  ;;  %v2062_v2 = vadd.f32 %v2061_v51, %v1901_v23  ;;  %v2064_v46 = vpop.f32.mrf.mxu1 }
 0x32c   : > { %v1903_v40 = vpop.f32.mrf.mxu0 }
 0x32d   : > { %2485 = vst [vmem:[%s4702_s10 + $0x308] sm:$0xff] %v2062_v2  ;;  %v2100_v14 = vpop.f32.mrf.mxu1 }
 0x32e   : > { %v2101_v8 = vadd.f32 %v2100_v14, %v4838_v19 }
 0x32f   : > { %v2261_v55 = vpop.f32.mrf.mxu0  ;;  %v2102_v62 = vpop.f32.mrf.mxu1 }
 0x330   : > { %v2262_v11 = vadd.f32 %v2261_v55, %v2101_v8  ;;  %v2103_v42 = vadd.f32 %v2102_v62, %v4842_v18 }
 0x331   : > { %v2263_v26 = vpop.f32.mrf.mxu0  ;;  %v2104_v50 = vpop.f32.mrf.mxu1 }
 0x332   : > { %2390 = vst [vmem:[%s4702_s10 + $0x10] sm:$0xff] %v2262_v11  ;;  %v2264_v60 = vadd.f32 %v2263_v26, %v2103_v42  ;;  %v2105_v22 = vadd.f32 %v2104_v50, %v4838_v19 }
 0x333   : > { %v2265_v47 = vpop.f32.mrf.mxu0  ;;  %v2106_v54 = vpop.f32.mrf.mxu1 }
 0x334   : > { %2391 = vst [vmem:[%s4702_s10 + $0x18] sm:$0xff] %v2264_v60  ;;  %v2266_v41 = vadd.f32 %v2265_v47, %v2105_v22  ;;  %v2107_v36 = vadd.f32 %v2106_v54, %v4842_v18 }
 0x335   : > { %v2267_v52 = vpop.f32.mrf.mxu0  ;;  %v2110_v45 = vpop.f32.mrf.mxu1 }
 0x336   : > { %2394 = vst [vmem:[%s4702_s10 + $0x30] sm:$0xff] %v2266_v41  ;;  %v2268_v34 = vadd.f32 %v2267_v52, %v2107_v36  ;;  %v2111_v0 = vadd.f32 %v2110_v45, %v4838_v19 }
 0x337   : > { %v2271_v3 = vpop.f32.mrf.mxu0  ;;  %v2112_v25 = vpop.f32.mrf.mxu1 }
 0x338   : > { %2395 = vst [vmem:[%s4702_s10 + $0x38] sm:$0xff] %v2268_v34  ;;  %v2272_v48 = vadd.f32 %v2271_v3, %v2111_v0  ;;  %v2113_v5 = vadd.f32 %v2112_v25, %v4842_v18 }
 0x339   : > { %v2273_v21 = vpop.f32.mrf.mxu0  ;;  %v2114_v57 = vpop.f32.mrf.mxu1 }
 0x33a   : > { %2398 = vst [vmem:[%s4702_s10 + $0x50] sm:$0xff] %v2272_v48  ;;  %v2274_v13 = vadd.f32 %v2273_v21, %v2113_v5  ;;  %v2115_v35 = vadd.f32 %v2114_v57, %v4838_v19 }
 0x33b   : > { %v2275_v12 = vpop.f32.mrf.mxu0  ;;  %v2116_v20 = vpop.f32.mrf.mxu1 }
 0x33c   : > { %2399 = vst [vmem:[%s4702_s10 + $0x58] sm:$0xff] %v2274_v13  ;;  %v2276_v49 = vadd.f32 %v2275_v12, %v2115_v35  ;;  %v2117_v29 = vadd.f32 %v2116_v20, %v4842_v18 }
 0x33d   : > { %v2277_v43 = vpop.f32.mrf.mxu0  ;;  %v2120_v59 = vpop.f32.mrf.mxu1 }
 0x33e   : > { %2402 = vst [vmem:[%s4702_s10 + $0x70] sm:$0xff] %v2276_v49  ;;  %v2278_v27 = vadd.f32 %v2277_v43, %v2117_v29  ;;  %v2121_v16 = vadd.f32 %v2120_v59, %v4838_v19 }
 0x33f   : > { %v2281_v17 = vpop.f32.mrf.mxu0  ;;  %v2122_v7 = vpop.f32.mrf.mxu1 }
 0x340   : > { %2403 = vst [vmem:[%s4702_s10 + $0x78] sm:$0xff] %v2278_v27  ;;  %v2282_v15 = vadd.f32 %v2281_v17, %v2121_v16  ;;  %v2123_v38 = vadd.f32 %v2122_v7, %v4842_v18 }
 0x341   : > { %v2283_v33 = vpop.f32.mrf.mxu0  ;;  %v2124_v56 = vpop.f32.mrf.mxu1 }
 0x342   : > { %2406 = vst [vmem:[%s4702_s10 + $0x90] sm:$0xff] %v2282_v15  ;;  %v2284_v28 = vadd.f32 %v2283_v33, %v2123_v38  ;;  %v2125_v1 = vadd.f32 %v2124_v56, %v4838_v19 }
 0x343   : > { %v2285_v37 = vpop.f32.mrf.mxu0  ;;  %v2126_v30 = vpop.f32.mrf.mxu1 }
 0x344   : > { %2407 = vst [vmem:[%s4702_s10 + $0x98] sm:$0xff] %v2284_v28  ;;  %v2286_v58 = vadd.f32 %v2285_v37, %v2125_v1  ;;  %v2127_v31 = vadd.f32 %v2126_v30, %v4842_v18 }
 0x345   : > { %v2287_v24 = vpop.f32.mrf.mxu0  ;;  %v2130_v61 = vpop.f32.mrf.mxu1 }
 0x346   : > { %2410 = vst [vmem:[%s4702_s10 + $0xb0] sm:$0xff] %v2286_v58  ;;  %v2288_v32 = vadd.f32 %v2287_v24, %v2127_v31  ;;  %v2131_v4 = vadd.f32 %v2130_v61, %v4838_v19 }
 0x347   : > { %v2291_v51 = vpop.f32.mrf.mxu0  ;;  %v2132_v6 = vpop.f32.mrf.mxu1 }
 0x348   : > { %2411 = vst [vmem:[%s4702_s10 + $0xb8] sm:$0xff] %v2288_v32  ;;  %v2292_v9 = vadd.f32 %v2291_v51, %v2131_v4  ;;  %v2133_v44 = vadd.f32 %v2132_v6, %v4842_v18 }
 0x349   : > { %v2293_v53 = vpop.f32.mrf.mxu0  ;;  %v2134_v23 = vpop.f32.mrf.mxu1 }
 0x34a   : > { %2414 = vst [vmem:[%s4702_s10 + $0xd0] sm:$0xff] %v2292_v9  ;;  %v2294_v63 = vadd.f32 %v2293_v53, %v2133_v44  ;;  %v2135_v39 = vadd.f32 %v2134_v23, %v4838_v19 }
 0x34b   : > { %v2295_v10 = vpop.f32.mrf.mxu0  ;;  %v2136_v2 = vpop.f32.mrf.mxu1 }
 0x34c   : > { %2415 = vst [vmem:[%s4702_s10 + $0xd8] sm:$0xff] %v2294_v63  ;;  %v2296_v46 = vadd.f32 %v2295_v10, %v2135_v39  ;;  %v2137_v40 = vadd.f32 %v2136_v2, %v4842_v18 }
 0x34d   : > { %v2297_v14 = vpop.f32.mrf.mxu0  ;;  %v2140_v8 = vpop.f32.mrf.mxu1 }
 0x34e   : > { %2418 = vst [vmem:[%s4702_s10 + $0xf0] sm:$0xff] %v2296_v46  ;;  %v2298_v55 = vadd.f32 %v2297_v14, %v2137_v40  ;;  %v2141_v62 = vadd.f32 %v2140_v8, %v4838_v19 }
 0x34f   : > { %v2301_v11 = vpop.f32.mrf.mxu0  ;;  %v2142_v42 = vpop.f32.mrf.mxu1 }
 0x350   : > { %2419 = vst [vmem:[%s4702_s10 + $0xf8] sm:$0xff] %v2298_v55  ;;  %v2302_v26 = vadd.f32 %v2301_v11, %v2141_v62  ;;  %v2143_v50 = vadd.f32 %v2142_v42, %v4842_v18 }
 0x351   : > { %v2303_v60 = vpop.f32.mrf.mxu0  ;;  %v2144_v22 = vpop.f32.mrf.mxu1 }
 0x352   : > { %2422 = vst [vmem:[%s4702_s10 + $0x110] sm:$0xff] %v2302_v26  ;;  %v2304_v47 = vadd.f32 %v2303_v60, %v2143_v50  ;;  %v2145_v54 = vadd.f32 %v2144_v22, %v4838_v19 }
 0x353   : > { %v2305_v41 = vpop.f32.mrf.mxu0  ;;  %v2146_v36 = vpop.f32.mrf.mxu1 }
 0x354   : > { %2423 = vst [vmem:[%s4702_s10 + $0x118] sm:$0xff] %v2304_v47  ;;  %v2306_v52 = vadd.f32 %v2305_v41, %v2145_v54  ;;  %v2147_v45 = vadd.f32 %v2146_v36, %v4842_v18 }
 0x355   : > { %v2307_v34 = vpop.f32.mrf.mxu0  ;;  %v2150_v0 = vpop.f32.mrf.mxu1 }
 0x356   : > { %2426 = vst [vmem:[%s4702_s10 + $0x130] sm:$0xff] %v2306_v52  ;;  %v2308_v3 = vadd.f32 %v2307_v34, %v2147_v45  ;;  %v2151_v25 = vadd.f32 %v2150_v0, %v4838_v19 }
 0x357   : > { %v2311_v48 = vpop.f32.mrf.mxu0  ;;  %v2152_v5 = vpop.f32.mrf.mxu1 }
 0x358   : > { %2427 = vst [vmem:[%s4702_s10 + $0x138] sm:$0xff] %v2308_v3  ;;  %v2312_v21 = vadd.f32 %v2311_v48, %v2151_v25  ;;  %v2153_v57 = vadd.f32 %v2152_v5, %v4842_v18 }
 0x359   : > { %v2313_v13 = vpop.f32.mrf.mxu0  ;;  %v2154_v35 = vpop.f32.mrf.mxu1 }
 0x35a   : > { %2430 = vst [vmem:[%s4702_s10 + $0x150] sm:$0xff] %v2312_v21  ;;  %v2314_v12 = vadd.f32 %v2313_v13, %v2153_v57  ;;  %v2155_v20 = vadd.f32 %v2154_v35, %v4838_v19 }
 0x35b   : > { %v2315_v49 = vpop.f32.mrf.mxu0  ;;  %v2156_v29 = vpop.f32.mrf.mxu1 }
 0x35c   : > { %2431 = vst [vmem:[%s4702_s10 + $0x158] sm:$0xff] %v2314_v12  ;;  %v2316_v43 = vadd.f32 %v2315_v49, %v2155_v20  ;;  %v2157_v59 = vadd.f32 %v2156_v29, %v4842_v18 }
 0x35d   : > { %v2317_v27 = vpop.f32.mrf.mxu0  ;;  %v2160_v16 = vpop.f32.mrf.mxu1 }
 0x35e   : > { %2434 = vst [vmem:[%s4702_s10 + $0x170] sm:$0xff] %v2316_v43  ;;  %v2318_v17 = vadd.f32 %v2317_v27, %v2157_v59  ;;  %v2161_v7 = vadd.f32 %v2160_v16, %v4838_v19 }
 0x35f   : > { %v2321_v15 = vpop.f32.mrf.mxu0  ;;  %v2162_v38 = vpop.f32.mrf.mxu1 }
 0x360   : > { %2435 = vst [vmem:[%s4702_s10 + $0x178] sm:$0xff] %v2318_v17  ;;  %v2322_v33 = vadd.f32 %v2321_v15, %v2161_v7  ;;  %v2163_v56 = vadd.f32 %v2162_v38, %v4842_v18 }
 0x361   : > { %v2323_v28 = vpop.f32.mrf.mxu0  ;;  %v2164_v1 = vpop.f32.mrf.mxu1 }
 0x362   : > { %2438 = vst [vmem:[%s4702_s10 + $0x190] sm:$0xff] %v2322_v33  ;;  %v2324_v37 = vadd.f32 %v2323_v28, %v2163_v56  ;;  %v2165_v30 = vadd.f32 %v2164_v1, %v4838_v19 }
 0x363   : > { %v2325_v58 = vpop.f32.mrf.mxu0  ;;  %v2166_v31 = vpop.f32.mrf.mxu1 }
 0x364   : > { %2439 = vst [vmem:[%s4702_s10 + $0x198] sm:$0xff] %v2324_v37  ;;  %v2326_v24 = vadd.f32 %v2325_v58, %v2165_v30  ;;  %v2167_v61 = vadd.f32 %v2166_v31, %v4842_v18 }
 0x365   : > { %v2327_v32 = vpop.f32.mrf.mxu0  ;;  %v2170_v4 = vpop.f32.mrf.mxu1 }
 0x366   : > { %2442 = vst [vmem:[%s4702_s10 + $0x1b0] sm:$0xff] %v2326_v24  ;;  %v2328_v51 = vadd.f32 %v2327_v32, %v2167_v61  ;;  %v2171_v6 = vadd.f32 %v2170_v4, %v4838_v19 }
 0x367   : > { %v2331_v9 = vpop.f32.mrf.mxu0  ;;  %v2172_v44 = vpop.f32.mrf.mxu1 }
 0x368   : > { %2443 = vst [vmem:[%s4702_s10 + $0x1b8] sm:$0xff] %v2328_v51  ;;  %v2332_v53 = vadd.f32 %v2331_v9, %v2171_v6  ;;  %v2173_v23 = vadd.f32 %v2172_v44, %v4842_v18 }
 0x369   : > { %v2333_v63 = vpop.f32.mrf.mxu0  ;;  %v2174_v39 = vpop.f32.mrf.mxu1 }
 0x36a   : > { %2446 = vst [vmem:[%s4702_s10 + $0x1d0] sm:$0xff] %v2332_v53  ;;  %v2334_v10 = vadd.f32 %v2333_v63, %v2173_v23  ;;  %v2175_v2 = vadd.f32 %v2174_v39, %v4838_v19 }
 0x36b   : > { %v2335_v46 = vpop.f32.mrf.mxu0  ;;  %v2176_v40 = vpop.f32.mrf.mxu1 }
 0x36c   : > { %2447 = vst [vmem:[%s4702_s10 + $0x1d8] sm:$0xff] %v2334_v10  ;;  %v2336_v14 = vadd.f32 %v2335_v46, %v2175_v2  ;;  %v2177_v8 = vadd.f32 %v2176_v40, %v4842_v18 }
 0x36d   : > { %v2337_v55 = vpop.f32.mrf.mxu0  ;;  %v2180_v62 = vpop.f32.mrf.mxu1 }
 0x36e   : > { %2450 = vst [vmem:[%s4702_s10 + $0x1f0] sm:$0xff] %v2336_v14  ;;  %v2338_v11 = vadd.f32 %v2337_v55, %v2177_v8  ;;  %v2181_v42 = vadd.f32 %v2180_v62, %v4838_v19 }
 0x36f   : > { %v2341_v26 = vpop.f32.mrf.mxu0  ;;  %v2182_v50 = vpop.f32.mrf.mxu1 }
 0x370   : > { %2451 = vst [vmem:[%s4702_s10 + $0x1f8] sm:$0xff] %v2338_v11  ;;  %v2342_v60 = vadd.f32 %v2341_v26, %v2181_v42  ;;  %v2183_v22 = vadd.f32 %v2182_v50, %v4842_v18 }
 0x371   : > { %v2343_v47 = vpop.f32.mrf.mxu0  ;;  %v2184_v54 = vpop.f32.mrf.mxu1 }
 0x372   : > { %2454 = vst [vmem:[%s4702_s10 + $0x210] sm:$0xff] %v2342_v60  ;;  %v2344_v41 = vadd.f32 %v2343_v47, %v2183_v22  ;;  %v2185_v36 = vadd.f32 %v2184_v54, %v4838_v19 }
 0x373   : > { %v2345_v52 = vpop.f32.mrf.mxu0  ;;  %v2186_v45 = vpop.f32.mrf.mxu1 }
 0x374   : > { %2455 = vst [vmem:[%s4702_s10 + $0x218] sm:$0xff] %v2344_v41  ;;  %v2346_v34 = vadd.f32 %v2345_v52, %v2185_v36  ;;  %v2187_v0 = vadd.f32 %v2186_v45, %v4842_v18 }
 0x375   : > { %v2347_v3 = vpop.f32.mrf.mxu0  ;;  %v2190_v25 = vpop.f32.mrf.mxu1 }
 0x376   : > { %2458 = vst [vmem:[%s4702_s10 + $0x230] sm:$0xff] %v2346_v34  ;;  %v2348_v48 = vadd.f32 %v2347_v3, %v2187_v0  ;;  %v2191_v5 = vadd.f32 %v2190_v25, %v4838_v19 }
 0x377   : > { %v2351_v21 = vpop.f32.mrf.mxu0  ;;  %v2192_v57 = vpop.f32.mrf.mxu1 }
 0x378   : > { %2459 = vst [vmem:[%s4702_s10 + $0x238] sm:$0xff] %v2348_v48  ;;  %v2352_v13 = vadd.f32 %v2351_v21, %v2191_v5  ;;  %v2193_v35 = vadd.f32 %v2192_v57, %v4842_v18 }
 0x379   : > { %v2353_v12 = vpop.f32.mrf.mxu0  ;;  %v2194_v20 = vpop.f32.mrf.mxu1 }
 0x37a   : > { %2462 = vst [vmem:[%s4702_s10 + $0x250] sm:$0xff] %v2352_v13  ;;  %v2354_v49 = vadd.f32 %v2353_v12, %v2193_v35  ;;  %v2195_v29 = vadd.f32 %v2194_v20, %v4838_v19 }
 0x37b   : > { %v2355_v43 = vpop.f32.mrf.mxu0  ;;  %v2196_v59 = vpop.f32.mrf.mxu1 }
 0x37c   : > { %2463 = vst [vmem:[%s4702_s10 + $0x258] sm:$0xff] %v2354_v49  ;;  %v2356_v27 = vadd.f32 %v2355_v43, %v2195_v29  ;;  %v2197_v16 = vadd.f32 %v2196_v59, %v4842_v18 }
 0x37d   : > { %v2357_v17 = vpop.f32.mrf.mxu0  ;;  %v2200_v7 = vpop.f32.mrf.mxu1 }
 0x37e   : > { %2466 = vst [vmem:[%s4702_s10 + $0x270] sm:$0xff] %v2356_v27  ;;  %v2358_v15 = vadd.f32 %v2357_v17, %v2197_v16  ;;  %v2201_v38 = vadd.f32 %v2200_v7, %v4838_v19 }
 0x37f   : > { %v2361_v33 = vpop.f32.mrf.mxu0  ;;  %v2202_v56 = vpop.f32.mrf.mxu1 }
 0x380   : > { %2467 = vst [vmem:[%s4702_s10 + $0x278] sm:$0xff] %v2358_v15  ;;  %v2362_v28 = vadd.f32 %v2361_v33, %v2201_v38  ;;  %v2203_v1 = vadd.f32 %v2202_v56, %v4842_v18 }
 0x381   : > { %v2363_v37 = vpop.f32.mrf.mxu0  ;;  %v2204_v30 = vpop.f32.mrf.mxu1 }
 0x382   : > { %2470 = vst [vmem:[%s4702_s10 + $0x290] sm:$0xff] %v2362_v28  ;;  %v2364_v58 = vadd.f32 %v2363_v37, %v2203_v1  ;;  %v2205_v31 = vadd.f32 %v2204_v30, %v4838_v19 }
 0x383   : > { %v2365_v24 = vpop.f32.mrf.mxu0  ;;  %v2206_v61 = vpop.f32.mrf.mxu1 }
 0x384   : > { %2471 = vst [vmem:[%s4702_s10 + $0x298] sm:$0xff] %v2364_v58  ;;  %v2366_v32 = vadd.f32 %v2365_v24, %v2205_v31  ;;  %v2207_v4 = vadd.f32 %v2206_v61, %v4842_v18 }
 0x385   : > { %v2367_v51 = vpop.f32.mrf.mxu0  ;;  %v2210_v6 = vpop.f32.mrf.mxu1 }
 0x386   : > { %2474 = vst [vmem:[%s4702_s10 + $0x2b0] sm:$0xff] %v2366_v32  ;;  %v2368_v9 = vadd.f32 %v2367_v51, %v2207_v4  ;;  %v2211_v46 = vadd.f32 %v2210_v6, %v4838_v19 }
 0x387   : > { %v2212_v44 = vpop.f32.mrf.mxu1 }
 0x388   : > { %2475 = vst [vmem:[%s4702_s10 + $0x2b8] sm:$0xff] %v2368_v9  ;;  %v2213_v14 = vadd.f32 %v2212_v44, %v4842_v18 }
 0x389   : > { %v2214_v53 = vpop.f32.mrf.mxu1 }
 0x38a   : > { %v2215_v62 = vadd.f32 %v2214_v53, %v4838_v19 }
 0x38b   : > { %v2216_v23 = vpop.f32.mrf.mxu1 }
 0x38c   : > { %v2217_v26 = vadd.f32 %v2216_v23, %v4842_v18 }
 0x38d   : > { %v2220_v63 = vpop.f32.mrf.mxu1 }
 0x38e   : > { %v2221_v22 = vadd.f32 %v2220_v63, %v4838_v19 }
 0x38f   : > { %v2222_v39 = vpop.f32.mrf.mxu1 }
 0x390   : > { %v2223_v41 = vadd.f32 %v2222_v39, %v4842_v18 }
 0x391   : > { %v2224_v10 = vpop.f32.mrf.mxu1 }
 0x393   : > { %v2225_v2 = vpop.f32.mrf.mxu1 }
 0x395   : > { %v2371_v40 = vpop.f32.mrf.mxu1 }
 0x396   : > { %v2372_v8 = vadd.f32 %v2371_v40, %v2211_v46 }
 0x397   : > { %v2373_v55 = vpop.f32.mrf.mxu1 }
 0x398   : > { %2478 = vst [vmem:[%s4702_s10 + $0x2d0] sm:$0xff] %v2372_v8  ;;  %v2374_v11 = vadd.f32 %v2373_v55, %v2213_v14 }
 0x399   : > { %v2375_v42 = vpop.f32.mrf.mxu1 }
 0x39a   : > { %2479 = vst [vmem:[%s4702_s10 + $0x2d8] sm:$0xff] %v2374_v11  ;;  %v2376_v50 = vadd.f32 %v2375_v42, %v2215_v62 }
 0x39b   : > { %v2377_v60 = vpop.f32.mrf.mxu1 }
 0x39c   : > { %2482 = vst [vmem:[%s4702_s10 + $0x2f0] sm:$0xff] %v2376_v50  ;;  %v2378_v47 = vadd.f32 %v2377_v60, %v2217_v26 }
 0x39d   : > { %v2381_v54 = vpop.f32.mrf.mxu1 }
 0x39e   : > { %2483 = vst [vmem:[%s4702_s10 + $0x2f8] sm:$0xff] %v2378_v47  ;;  %v2382_v36 = vadd.f32 %v2381_v54, %v2221_v22 }
 0x39f   : > { %v2383_v52 = vpop.f32.mrf.mxu1 }
 0x3a0   : > { %2486 = vst [vmem:[%s4702_s10 + $0x310] sm:$0xff] %v2382_v36  ;;  %v2384_v19 = vadd.f32 %v2383_v52, %v2223_v41 }
 0x3a1   : > { %v2385_v45 = vpop.f32.mrf.mxu1 }
 0x3a2   : > { %2487 = vst [vmem:[%s4702_s10 + $0x318] sm:$0xff] %v2384_v19 }
 0x3a3   : > { %v2386_v34 = vpop.f32.mrf.mxu1 }
 0x3a4   : > { %3197 = shalt.err (!%p3194_p10)
}
 0x3a5   : > { %s3198_s7 = scalar_lea.hbm %s4948_s25, 12800  ;;  %s3202_s29 = scalar_lea.hbm %s4999_s5, 38400 }
 0x3a6   : > { %p3199_p1 = scmp.ne.s32.totalorder %s4948_s25, %s3198_s7  ;;  %p3203_p4 = scmp.lt.s32.totalorder %s4948_s25, %s4999_s5 }
 0x3a7   : > { %p3204_p11 = scmp.lt.s32.totalorder %s3202_s29, %s3198_s7 }
 0x3a8   : > { %p3200_p0 = pnand %p3199_p1, %p5276_p12 }
 0x3a9   : > { %p3205_p3 = por %p3204_p11, %p3203_p4 }
 0x3aa   : > { %p3201_p5 = pneg %p3200_p0 }
 0x3ac   : > { %p3206_p2 = pnand %p3205_p3, %p3201_p5 }
 0x3ae   : > { %3209 = shalt.err (!%p3206_p2)
}
 0x3af   : > { %s3270_s10 = smov 512   ;;  %s3271_s23 = smov 1536  }
 0x3b0   : > { %s3272_s11 = smov 32  }
 0x3b1   : > { %2780 = dma.vmem_to_hbm [thread:$0]  (%p5276_p12), %s4950_s28, 12800, %s4948_s25, %s2489_s22, %s3270_s10, %s3271_s23, %s3272_s11  }
 0x3b2 PF: > { %p2810_p8 = scmp.ge.s32.totalorder %s3256_s21, 2  ;;  %s2517_s13 = sand.u32 1, %s3244_s18  }
 0x3b3   : > { %p5277_p6 = scmp.ne.s32.totalorder %s5095_s6, 0  ;;  %s2518_s14 = scalar_lea.sflag [#allocation4], %s2517_s13 }
 0x3b5   : > { %p2800_p13 = pnand %p2810_p8, %p5277_p6 }
 0x3b7   : > { %p2801_p7 = pneg %p2800_p13 }
 0x3b9   : > { %3239 = dma.done.wait (%p2801_p7), %s2518_s14, 12800  }
 0x3ba   : > { %3241 = vsyncadd (%p2801_p7), %s2518_s14, 4294954496  ;;  %p20_p9 = scmp.ge.s32.totalorder %s3328_s24, 5   ;;  %s5278_s18 = smov %s3248_s19 }
 0x3bb   : > { %s5279_s19 = smov %s3252_s20  ;;  %s5280_s20 = smov %s3340_s27 }
 0x3bc   : > { %s5281_s21 = smov %s3328_s24  ;;  %22 = sbr.rel (!%p20_p9) target bundleno = 9 (0x9), region = 109 }
 0x3c1   :  { %2523 = vsyncpa [#allocation3], 1 }
 0x3c2   :  { %2525 = vsyncpa [#allocation3 + $0x1], 1 }
 0x3c3   :  { %2526 = vsyncpa [#allocation6], 1 }
 0x3c4   :  { %2527 = vsyncpa [#allocation9], 1 }
 0x3c5   :  { %2529 = vsyncpa [#allocation9 + $0x1], 1 }
 0x3c6   :  { %2530 = vsyncpa [#allocation4], 1 }
 0x3c7   :  { %2532 = vsyncpa [#allocation4 + $0x1], 1 }

</bundles_post_ra>
